<compile_context>
chip_gen: v6e
topology: v6e:2x2x1
jax: 0.10.0
libtpu: 0.0.40
codegen_flags: <defaults>
</compile_context>

<pallas_src>
import jax
import jax.numpy as jnp
from jax import lax
from jax.experimental import pallas as pl
from jax.experimental.pallas import tpu as pltpu

HIDDEN_LAYERS_NUM = 3          # -> 1 input linear, 2 hidden linears, 1 output linear
NEYRONS_NUM = 10               # module-level `neyrons_num` in the reference script
_LANE = 128                    # TPU lane width (last-dim tiling unit)
_CHUNK = 8                     # sublane rows per inner step -> one f32 vreg / feature


def _round_up(a, b):
    return (a + b - 1) // b * b


def _mlp_kernel(x_ref, w_in_ref, b_in_ref, w_h_ref, b_h_ref,
                w_out_ref, b_out_ref, o_ref):
    """Fused MLP forward for one (block_rows, 128) batch tile.

      x_ref, o_ref : (block_rows, 128)  VMEM, f32
      w_in_ref  : (n,)        SMEM   (torch Linear(1,n).weight flattened)
      b_in_ref  : (n,)        SMEM
      w_h_ref   : (L*n*n,)    SMEM   (index l*n*n + j*n + i == W_l[out=j, in=i])
      b_h_ref   : (L*n,)      SMEM
      w_out_ref : (n,)        SMEM   (torch Linear(n,1).weight flattened)
      b_out_ref : (1,)        SMEM
    """
    n = w_in_ref.shape[0]                 # feature width (10) -- static
    nh = b_h_ref.shape[0] // n            # number of Linear(n,n) layers -- static
    n_chunks = x_ref.shape[0] // _CHUNK   # static (block_rows % 8 == 0)

    def chunk_body(c, carry):
        r0 = pl.multiple_of(c * _CHUNK, _CHUNK)
        x = x_ref[pl.ds(r0, _CHUNK), :]                      # (8, 128) -- one vreg

        # Input Linear(1, n) + tanh: scalar-splat MAC per feature (VPU + EUP).
        h = [jnp.tanh(w_in_ref[j] * x + b_in_ref[j]) for j in range(n)]

        # Hidden Linear(n, n) + tanh layers: n*n scalar-splat MACs each,
        # everything stays lane/sublane-dense in vregs (no XLU traffic).
        for l in range(nh):
            new_h = []
            for j in range(n):
                base = l * n * n + j * n
                acc = w_h_ref[base] * h[0] + b_h_ref[l * n + j]
                for i in range(1, n):
                    acc = acc + w_h_ref[base + i] * h[i]
                new_h.append(jnp.tanh(acc))
            h = new_h

        # Output Linear(n, 1): scalar-splat MACs -> plain VPU sum, no reduce.
        out = w_out_ref[0] * h[0] + b_out_ref[0]
        for i in range(1, n):
            out = out + w_out_ref[i] * h[i]

        o_ref[pl.ds(r0, _CHUNK), :] = out.astype(o_ref.dtype)   # unmasked 8x128 vst
        return carry

    lax.fori_loop(0, n_chunks, chunk_body, 0, unroll=2)


def mlp_forward(x, params, *, block_rows=256):
    """x: (N, 1) float32.  params: dict of weights (see init_params)."""
    assert x.ndim == 2 and x.shape[1] == 1
    n_batch = x.shape[0]
    n = params["w_in"].shape[0]
    nh = params["w_h"].shape[0]

    # ---- (rows, 128) lane/sublane-dense re-layout of the batch ---------------
    rows = max(_CHUNK, _round_up(pl.cdiv(n_batch, _LANE), _CHUNK))
    block_rows = max(_CHUNK, _round_up(min(block_rows, rows), _CHUNK))
    if rows > block_rows:
        rows = _round_up(rows, block_rows)       # multi-block "parallel" grid
    else:
        block_rows = rows                        # tiny batch -> grid=(1,)
    grid = (rows // block_rows,)
    padded = rows * _LANE

    x_flat = x.reshape(-1).astype(jnp.float32)
    if padded != n_batch:
        x_flat = jnp.pad(x_flat, (0, padded - n_batch))
    x_2d = x_flat.reshape(rows, _LANE)

    # ---- weights: flattened 1D, resident in SMEM (scalar splats, no DMA churn)
    w_in_f = params["w_in"].reshape(-1).astype(jnp.float32)     # (n,)
    b_in_f = params["b_in"].reshape(-1).astype(jnp.float32)     # (n,)
    w_h_f = params["w_h"].reshape(-1).astype(jnp.float32)       # (nh*n*n,)
    b_h_f = params["b_h"].reshape(-1).astype(jnp.float32)       # (nh*n,)
    w_out_f = params["w_out"].reshape(-1).astype(jnp.float32)   # (n,)
    b_out_f = params["b_out"].reshape(-1).astype(jnp.float32)   # (1,)

    smem_spec = pl.BlockSpec(memory_space=pltpu.MemorySpace.SMEM)
    vec_spec = pl.BlockSpec((block_rows, _LANE), lambda i: (i, 0))

    cost = pl.CostEstimate(
        flops=2 * padded * (n + nh * n * n + n),
        transcendentals=padded * n * (nh + 1),
        bytes_accessed=8 * padded + 4 * (2 * n + nh * (n * n + n) + n + 1),
    )

    out_2d = pl.pallas_call(
        _mlp_kernel,
        out_shape=jax.ShapeDtypeStruct((rows, _LANE), jnp.float32),
        grid=grid,
        in_specs=[vec_spec, smem_spec, smem_spec, smem_spec,
                  smem_spec, smem_spec, smem_spec],
        out_specs=vec_spec,
        compiler_params=pltpu.CompilerParams(
            dimension_semantics=("parallel",),   # v7x: shards tiles across both TCs
        ),
        cost_estimate=cost,
    )(x_2d, w_in_f, b_in_f, w_h_f, b_h_f, w_out_f, b_out_f)

    # restore the module's (N, 1) output layout
    return out_2d.reshape(-1)[:n_batch].reshape(n_batch, 1)


def init_params(key, hidden_layers_num=HIDDEN_LAYERS_NUM, n=NEYRONS_NUM):
    """Deterministic synthetic init. Weights stored torch-style (out, in)."""
    nh = hidden_layers_num - 1
    ks = jax.random.split(key, 6)
    s = 0.5
    return {
        # Linear(1, n)
        "w_in": s * jax.random.normal(ks[0], (n, 1), jnp.float32),
        "b_in": s * jax.random.normal(ks[1], (n,), jnp.float32),
        # nh x Linear(n, n)
        "w_h": s * jax.random.normal(ks[2], (nh, n, n), jnp.float32),
        "b_h": s * jax.random.normal(ks[3], (nh, n), jnp.float32),
        # Linear(n, 1)
        "w_out": s * jax.random.normal(ks[4], (1, n), jnp.float32),
        "b_out": s * jax.random.normal(ks[5], (1,), jnp.float32),
    }


def mlp_forward_ref(x, params):
    """Pure-JAX reference (elementwise ops only -> exact f32, no matmul
    precision ambiguity)."""
    h = jnp.tanh(x * params["w_in"][:, 0] + params["b_in"])              # (N, n)
    for l in range(params["w_h"].shape[0]):
        z = jnp.sum(h[:, None, :] * params["w_h"][l][None, :, :], axis=-1)
        h = jnp.tanh(z + params["b_h"][l])                               # (N, n)
    return jnp.sum(h * params["w_out"][0], axis=-1, keepdims=True) + params["b_out"]


if __name__ == "__main__":
    key = jax.random.PRNGKey(0)
    k_x, k_p = jax.random.split(key)

    batch = 2048                                   # 16 dense (8,128) rows
    x = jax.random.normal(k_x, (batch, 1), jnp.float32)
    params = init_params(k_p)

    ref = mlp_forward_ref(x, params)

    # Default path: tiny batch collapses to a single block, grid=(1,).
    out = jax.block_until_ready(mlp_forward(x, params))
    assert out.shape == (batch, 1)
    assert jnp.allclose(out, ref, atol=1e-4, rtol=1e-4), float(jnp.abs(out - ref).max())

    # Also exercise the multi-block "parallel" grid path (grid=(2,)).
    out2 = jax.block_until_ready(mlp_forward(x, params, block_rows=8))
    assert jnp.allclose(out2, ref, atol=1e-4, rtol=1e-4), float(jnp.abs(out2 - ref).max())

    print("KERNEL_OK")
</pallas_src>

<mosaic_0001>
module attributes {stable_mosaic.version = 11 : i64} {
  func.func @_mlp_kernel(%arg0: i32, %arg1: memref<16x128xf32, #tpu.memory_space<vmem>>, %arg2: memref<10xf32, #tpu.memory_space<smem>>, %arg3: memref<10xf32, #tpu.memory_space<smem>>, %arg4: memref<200xf32, #tpu.memory_space<smem>>, %arg5: memref<20xf32, #tpu.memory_space<smem>>, %arg6: memref<10xf32, #tpu.memory_space<smem>>, %arg7: memref<1xf32, #tpu.memory_space<smem>>, %arg8: memref<16x128xf32, #tpu.memory_space<vmem>>) attributes {dimension_semantics = [#tpu.dimension_semantics<parallel>], iteration_bounds = array<i64: 1>, scalar_prefetch = 0 : i64, scratch_operands = 0 : i64, tpu.core_type = #tpu.core_type<tc>, window_params = [{transform_indices = @transform_0, window_bounds = array<i64: 16, 128>}, {transform_indices = @transform_1, window_bounds = array<i64: 10>}, {transform_indices = @transform_2, window_bounds = array<i64: 10>}, {transform_indices = @transform_3, window_bounds = array<i64: 200>}, {transform_indices = @transform_4, window_bounds = array<i64: 20>}, {transform_indices = @transform_5, window_bounds = array<i64: 10>}, {transform_indices = @transform_6, window_bounds = array<i64: 1>}, {transform_indices = @transform_7, window_bounds = array<i64: 16, 128>}]} {
    %c0_i32 = arith.constant 0 : i32
    %c8_i32 = arith.constant 8 : i32
    %0 = arith.muli %c0_i32, %c8_i32 : i32
    %1 = tpu.assume_multiple %0, 8 : i32
    %2 = arith.index_cast %1 : i32 to index
    %c0 = arith.constant 0 : index
    %3 = vector.load %arg1[%2, %c0] : memref<16x128xf32, #tpu.memory_space<vmem>>, vector<8x128xf32>
    %c0_0 = arith.constant 0 : index
    %4 = memref.load %arg2[%c0_0] : memref<10xf32, #tpu.memory_space<smem>>
    %5 = vector.broadcast %4 : f32 to vector<8x128xf32>
    %6 = arith.mulf %5, %3 : vector<8x128xf32>
    %c0_1 = arith.constant 0 : index
    %7 = memref.load %arg3[%c0_1] : memref<10xf32, #tpu.memory_space<smem>>
    %8 = vector.broadcast %7 : f32 to vector<8x128xf32>
    %9 = arith.addf %6, %8 : vector<8x128xf32>
    %10 = math.tanh %9 : vector<8x128xf32>
    %c1 = arith.constant 1 : index
    %11 = memref.load %arg2[%c1] : memref<10xf32, #tpu.memory_space<smem>>
    %12 = vector.broadcast %11 : f32 to vector<8x128xf32>
    %13 = arith.mulf %12, %3 : vector<8x128xf32>
    %c1_2 = arith.constant 1 : index
    %14 = memref.load %arg3[%c1_2] : memref<10xf32, #tpu.memory_space<smem>>
    %15 = vector.broadcast %14 : f32 to vector<8x128xf32>
    %16 = arith.addf %13, %15 : vector<8x128xf32>
    %17 = math.tanh %16 : vector<8x128xf32>
    %c2 = arith.constant 2 : index
    %18 = memref.load %arg2[%c2] : memref<10xf32, #tpu.memory_space<smem>>
    %19 = vector.broadcast %18 : f32 to vector<8x128xf32>
    %20 = arith.mulf %19, %3 : vector<8x128xf32>
    %c2_3 = arith.constant 2 : index
    %21 = memref.load %arg3[%c2_3] : memref<10xf32, #tpu.memory_space<smem>>
    %22 = vector.broadcast %21 : f32 to vector<8x128xf32>
    %23 = arith.addf %20, %22 : vector<8x128xf32>
    %24 = math.tanh %23 : vector<8x128xf32>
    %c3 = arith.constant 3 : index
    %25 = memref.load %arg2[%c3] : memref<10xf32, #tpu.memory_space<smem>>
    %26 = vector.broadcast %25 : f32 to vector<8x128xf32>
    %27 = arith.mulf %26, %3 : vector<8x128xf32>
    %c3_4 = arith.constant 3 : index
    %28 = memref.load %arg3[%c3_4] : memref<10xf32, #tpu.memory_space<smem>>
    %29 = vector.broadcast %28 : f32 to vector<8x128xf32>
    %30 = arith.addf %27, %29 : vector<8x128xf32>
    %31 = math.tanh %30 : vector<8x128xf32>
    %c4 = arith.constant 4 : index
    %32 = memref.load %arg2[%c4] : memref<10xf32, #tpu.memory_space<smem>>
    %33 = vector.broadcast %32 : f32 to vector<8x128xf32>
    %34 = arith.mulf %33, %3 : vector<8x128xf32>
    %c4_5 = arith.constant 4 : index
    %35 = memref.load %arg3[%c4_5] : memref<10xf32, #tpu.memory_space<smem>>
    %36 = vector.broadcast %35 : f32 to vector<8x128xf32>
    %37 = arith.addf %34, %36 : vector<8x128xf32>
    %38 = math.tanh %37 : vector<8x128xf32>
    %c5 = arith.constant 5 : index
    %39 = memref.load %arg2[%c5] : memref<10xf32, #tpu.memory_space<smem>>
    %40 = vector.broadcast %39 : f32 to vector<8x128xf32>
    %41 = arith.mulf %40, %3 : vector<8x128xf32>
    %c5_6 = arith.constant 5 : index
    %42 = memref.load %arg3[%c5_6] : memref<10xf32, #tpu.memory_space<smem>>
    %43 = vector.broadcast %42 : f32 to vector<8x128xf32>
    %44 = arith.addf %41, %43 : vector<8x128xf32>
    %45 = math.tanh %44 : vector<8x128xf32>
    %c6 = arith.constant 6 : index
    %46 = memref.load %arg2[%c6] : memref<10xf32, #tpu.memory_space<smem>>
    %47 = vector.broadcast %46 : f32 to vector<8x128xf32>
    %48 = arith.mulf %47, %3 : vector<8x128xf32>
    %c6_7 = arith.constant 6 : index
    %49 = memref.load %arg3[%c6_7] : memref<10xf32, #tpu.memory_space<smem>>
    %50 = vector.broadcast %49 : f32 to vector<8x128xf32>
    %51 = arith.addf %48, %50 : vector<8x128xf32>
    %52 = math.tanh %51 : vector<8x128xf32>
    %c7 = arith.constant 7 : index
    %53 = memref.load %arg2[%c7] : memref<10xf32, #tpu.memory_space<smem>>
    %54 = vector.broadcast %53 : f32 to vector<8x128xf32>
    %55 = arith.mulf %54, %3 : vector<8x128xf32>
    %c7_8 = arith.constant 7 : index
    %56 = memref.load %arg3[%c7_8] : memref<10xf32, #tpu.memory_space<smem>>
    %57 = vector.broadcast %56 : f32 to vector<8x128xf32>
    %58 = arith.addf %55, %57 : vector<8x128xf32>
    %59 = math.tanh %58 : vector<8x128xf32>
    %c8 = arith.constant 8 : index
    %60 = memref.load %arg2[%c8] : memref<10xf32, #tpu.memory_space<smem>>
    %61 = vector.broadcast %60 : f32 to vector<8x128xf32>
    %62 = arith.mulf %61, %3 : vector<8x128xf32>
    %c8_9 = arith.constant 8 : index
    %63 = memref.load %arg3[%c8_9] : memref<10xf32, #tpu.memory_space<smem>>
    %64 = vector.broadcast %63 : f32 to vector<8x128xf32>
    %65 = arith.addf %62, %64 : vector<8x128xf32>
    %66 = math.tanh %65 : vector<8x128xf32>
    %c9 = arith.constant 9 : index
    %67 = memref.load %arg2[%c9] : memref<10xf32, #tpu.memory_space<smem>>
    %68 = vector.broadcast %67 : f32 to vector<8x128xf32>
    %69 = arith.mulf %68, %3 : vector<8x128xf32>
    %c9_10 = arith.constant 9 : index
    %70 = memref.load %arg3[%c9_10] : memref<10xf32, #tpu.memory_space<smem>>
    %71 = vector.broadcast %70 : f32 to vector<8x128xf32>
    %72 = arith.addf %69, %71 : vector<8x128xf32>
    %73 = math.tanh %72 : vector<8x128xf32>
    %c0_11 = arith.constant 0 : index
    %74 = memref.load %arg4[%c0_11] : memref<200xf32, #tpu.memory_space<smem>>
    %75 = vector.broadcast %74 : f32 to vector<8x128xf32>
    %76 = arith.mulf %75, %10 : vector<8x128xf32>
    %c0_12 = arith.constant 0 : index
    %77 = memref.load %arg5[%c0_12] : memref<20xf32, #tpu.memory_space<smem>>
    %78 = vector.broadcast %77 : f32 to vector<8x128xf32>
    %79 = arith.addf %76, %78 : vector<8x128xf32>
    %c1_13 = arith.constant 1 : index
    %80 = memref.load %arg4[%c1_13] : memref<200xf32, #tpu.memory_space<smem>>
    %81 = vector.broadcast %80 : f32 to vector<8x128xf32>
    %82 = arith.mulf %81, %17 : vector<8x128xf32>
    %83 = arith.addf %79, %82 : vector<8x128xf32>
    %c2_14 = arith.constant 2 : index
    %84 = memref.load %arg4[%c2_14] : memref<200xf32, #tpu.memory_space<smem>>
    %85 = vector.broadcast %84 : f32 to vector<8x128xf32>
    %86 = arith.mulf %85, %24 : vector<8x128xf32>
    %87 = arith.addf %83, %86 : vector<8x128xf32>
    %c3_15 = arith.constant 3 : index
    %88 = memref.load %arg4[%c3_15] : memref<200xf32, #tpu.memory_space<smem>>
    %89 = vector.broadcast %88 : f32 to vector<8x128xf32>
    %90 = arith.mulf %89, %31 : vector<8x128xf32>
    %91 = arith.addf %87, %90 : vector<8x128xf32>
    %c4_16 = arith.constant 4 : index
    %92 = memref.load %arg4[%c4_16] : memref<200xf32, #tpu.memory_space<smem>>
    %93 = vector.broadcast %92 : f32 to vector<8x128xf32>
    %94 = arith.mulf %93, %38 : vector<8x128xf32>
    %95 = arith.addf %91, %94 : vector<8x128xf32>
    %c5_17 = arith.constant 5 : index
    %96 = memref.load %arg4[%c5_17] : memref<200xf32, #tpu.memory_space<smem>>
    %97 = vector.broadcast %96 : f32 to vector<8x128xf32>
    %98 = arith.mulf %97, %45 : vector<8x128xf32>
    %99 = arith.addf %95, %98 : vector<8x128xf32>
    %c6_18 = arith.constant 6 : index
    %100 = memref.load %arg4[%c6_18] : memref<200xf32, #tpu.memory_space<smem>>
    %101 = vector.broadcast %100 : f32 to vector<8x128xf32>
    %102 = arith.mulf %101, %52 : vector<8x128xf32>
    %103 = arith.addf %99, %102 : vector<8x128xf32>
    %c7_19 = arith.constant 7 : index
    %104 = memref.load %arg4[%c7_19] : memref<200xf32, #tpu.memory_space<smem>>
    %105 = vector.broadcast %104 : f32 to vector<8x128xf32>
    %106 = arith.mulf %105, %59 : vector<8x128xf32>
    %107 = arith.addf %103, %106 : vector<8x128xf32>
    %c8_20 = arith.constant 8 : index
    %108 = memref.load %arg4[%c8_20] : memref<200xf32, #tpu.memory_space<smem>>
    %109 = vector.broadcast %108 : f32 to vector<8x128xf32>
    %110 = arith.mulf %109, %66 : vector<8x128xf32>
    %111 = arith.addf %107, %110 : vector<8x128xf32>
    %c9_21 = arith.constant 9 : index
    %112 = memref.load %arg4[%c9_21] : memref<200xf32, #tpu.memory_space<smem>>
    %113 = vector.broadcast %112 : f32 to vector<8x128xf32>
    %114 = arith.mulf %113, %73 : vector<8x128xf32>
    %115 = arith.addf %111, %114 : vector<8x128xf32>
    %116 = math.tanh %115 : vector<8x128xf32>
    %c10 = arith.constant 10 : index
    %117 = memref.load %arg4[%c10] : memref<200xf32, #tpu.memory_space<smem>>
    %118 = vector.broadcast %117 : f32 to vector<8x128xf32>
    %119 = arith.mulf %118, %10 : vector<8x128xf32>
    %c1_22 = arith.constant 1 : index
    %120 = memref.load %arg5[%c1_22] : memref<20xf32, #tpu.memory_space<smem>>
    %121 = vector.broadcast %120 : f32 to vector<8x128xf32>
    %122 = arith.addf %119, %121 : vector<8x128xf32>
    %c11 = arith.constant 11 : index
    %123 = memref.load %arg4[%c11] : memref<200xf32, #tpu.memory_space<smem>>
    %124 = vector.broadcast %123 : f32 to vector<8x128xf32>
    %125 = arith.mulf %124, %17 : vector<8x128xf32>
    %126 = arith.addf %122, %125 : vector<8x128xf32>
    %c12 = arith.constant 12 : index
    %127 = memref.load %arg4[%c12] : memref<200xf32, #tpu.memory_space<smem>>
    %128 = vector.broadcast %127 : f32 to vector<8x128xf32>
    %129 = arith.mulf %128, %24 : vector<8x128xf32>
    %130 = arith.addf %126, %129 : vector<8x128xf32>
    %c13 = arith.constant 13 : index
    %131 = memref.load %arg4[%c13] : memref<200xf32, #tpu.memory_space<smem>>
    %132 = vector.broadcast %131 : f32 to vector<8x128xf32>
    %133 = arith.mulf %132, %31 : vector<8x128xf32>
    %134 = arith.addf %130, %133 : vector<8x128xf32>
    %c14 = arith.constant 14 : index
    %135 = memref.load %arg4[%c14] : memref<200xf32, #tpu.memory_space<smem>>
    %136 = vector.broadcast %135 : f32 to vector<8x128xf32>
    %137 = arith.mulf %136, %38 : vector<8x128xf32>
    %138 = arith.addf %134, %137 : vector<8x128xf32>
    %c15 = arith.constant 15 : index
    %139 = memref.load %arg4[%c15] : memref<200xf32, #tpu.memory_space<smem>>
    %140 = vector.broadcast %139 : f32 to vector<8x128xf32>
    %141 = arith.mulf %140, %45 : vector<8x128xf32>
    %142 = arith.addf %138, %141 : vector<8x128xf32>
    %c16 = arith.constant 16 : index
    %143 = memref.load %arg4[%c16] : memref<200xf32, #tpu.memory_space<smem>>
    %144 = vector.broadcast %143 : f32 to vector<8x128xf32>
    %145 = arith.mulf %144, %52 : vector<8x128xf32>
    %146 = arith.addf %142, %145 : vector<8x128xf32>
    %c17 = arith.constant 17 : index
    %147 = memref.load %arg4[%c17] : memref<200xf32, #tpu.memory_space<smem>>
    %148 = vector.broadcast %147 : f32 to vector<8x128xf32>
    %149 = arith.mulf %148, %59 : vector<8x128xf32>
    %150 = arith.addf %146, %149 : vector<8x128xf32>
    %c18 = arith.constant 18 : index
    %151 = memref.load %arg4[%c18] : memref<200xf32, #tpu.memory_space<smem>>
    %152 = vector.broadcast %151 : f32 to vector<8x128xf32>
    %153 = arith.mulf %152, %66 : vector<8x128xf32>
    %154 = arith.addf %150, %153 : vector<8x128xf32>
    %c19 = arith.constant 19 : index
    %155 = memref.load %arg4[%c19] : memref<200xf32, #tpu.memory_space<smem>>
    %156 = vector.broadcast %155 : f32 to vector<8x128xf32>
    %157 = arith.mulf %156, %73 : vector<8x128xf32>
    %158 = arith.addf %154, %157 : vector<8x128xf32>
    %159 = math.tanh %158 : vector<8x128xf32>
    %c20 = arith.constant 20 : index
    %160 = memref.load %arg4[%c20] : memref<200xf32, #tpu.memory_space<smem>>
    %161 = vector.broadcast %160 : f32 to vector<8x128xf32>
    %162 = arith.mulf %161, %10 : vector<8x128xf32>
    %c2_23 = arith.constant 2 : index
    %163 = memref.load %arg5[%c2_23] : memref<20xf32, #tpu.memory_space<smem>>
    %164 = vector.broadcast %163 : f32 to vector<8x128xf32>
    %165 = arith.addf %162, %164 : vector<8x128xf32>
    %c21 = arith.constant 21 : index
    %166 = memref.load %arg4[%c21] : memref<200xf32, #tpu.memory_space<smem>>
    %167 = vector.broadcast %166 : f32 to vector<8x128xf32>
    %168 = arith.mulf %167, %17 : vector<8x128xf32>
    %169 = arith.addf %165, %168 : vector<8x128xf32>
    %c22 = arith.constant 22 : index
    %170 = memref.load %arg4[%c22] : memref<200xf32, #tpu.memory_space<smem>>
    %171 = vector.broadcast %170 : f32 to vector<8x128xf32>
    %172 = arith.mulf %171, %24 : vector<8x128xf32>
    %173 = arith.addf %169, %172 : vector<8x128xf32>
    %c23 = arith.constant 23 : index
    %174 = memref.load %arg4[%c23] : memref<200xf32, #tpu.memory_space<smem>>
    %175 = vector.broadcast %174 : f32 to vector<8x128xf32>
    %176 = arith.mulf %175, %31 : vector<8x128xf32>
    %177 = arith.addf %173, %176 : vector<8x128xf32>
    %c24 = arith.constant 24 : index
    %178 = memref.load %arg4[%c24] : memref<200xf32, #tpu.memory_space<smem>>
    %179 = vector.broadcast %178 : f32 to vector<8x128xf32>
    %180 = arith.mulf %179, %38 : vector<8x128xf32>
    %181 = arith.addf %177, %180 : vector<8x128xf32>
    %c25 = arith.constant 25 : index
    %182 = memref.load %arg4[%c25] : memref<200xf32, #tpu.memory_space<smem>>
    %183 = vector.broadcast %182 : f32 to vector<8x128xf32>
    %184 = arith.mulf %183, %45 : vector<8x128xf32>
    %185 = arith.addf %181, %184 : vector<8x128xf32>
    %c26 = arith.constant 26 : index
    %186 = memref.load %arg4[%c26] : memref<200xf32, #tpu.memory_space<smem>>
    %187 = vector.broadcast %186 : f32 to vector<8x128xf32>
    %188 = arith.mulf %187, %52 : vector<8x128xf32>
    %189 = arith.addf %185, %188 : vector<8x128xf32>
    %c27 = arith.constant 27 : index
    %190 = memref.load %arg4[%c27] : memref<200xf32, #tpu.memory_space<smem>>
    %191 = vector.broadcast %190 : f32 to vector<8x128xf32>
    %192 = arith.mulf %191, %59 : vector<8x128xf32>
    %193 = arith.addf %189, %192 : vector<8x128xf32>
    %c28 = arith.constant 28 : index
    %194 = memref.load %arg4[%c28] : memref<200xf32, #tpu.memory_space<smem>>
    %195 = vector.broadcast %194 : f32 to vector<8x128xf32>
    %196 = arith.mulf %195, %66 : vector<8x128xf32>
    %197 = arith.addf %193, %196 : vector<8x128xf32>
    %c29 = arith.constant 29 : index
    %198 = memref.load %arg4[%c29] : memref<200xf32, #tpu.memory_space<smem>>
    %199 = vector.broadcast %198 : f32 to vector<8x128xf32>
    %200 = arith.mulf %199, %73 : vector<8x128xf32>
    %201 = arith.addf %197, %200 : vector<8x128xf32>
    %202 = math.tanh %201 : vector<8x128xf32>
    %c30 = arith.constant 30 : index
    %203 = memref.load %arg4[%c30] : memref<200xf32, #tpu.memory_space<smem>>
    %204 = vector.broadcast %203 : f32 to vector<8x128xf32>
    %205 = arith.mulf %204, %10 : vector<8x128xf32>
    %c3_24 = arith.constant 3 : index
    %206 = memref.load %arg5[%c3_24] : memref<20xf32, #tpu.memory_space<smem>>
    %207 = vector.broadcast %206 : f32 to vector<8x128xf32>
    %208 = arith.addf %205, %207 : vector<8x128xf32>
    %c31 = arith.constant 31 : index
    %209 = memref.load %arg4[%c31] : memref<200xf32, #tpu.memory_space<smem>>
    %210 = vector.broadcast %209 : f32 to vector<8x128xf32>
    %211 = arith.mulf %210, %17 : vector<8x128xf32>
    %212 = arith.addf %208, %211 : vector<8x128xf32>
    %c32 = arith.constant 32 : index
    %213 = memref.load %arg4[%c32] : memref<200xf32, #tpu.memory_space<smem>>
    %214 = vector.broadcast %213 : f32 to vector<8x128xf32>
    %215 = arith.mulf %214, %24 : vector<8x128xf32>
    %216 = arith.addf %212, %215 : vector<8x128xf32>
    %c33 = arith.constant 33 : index
    %217 = memref.load %arg4[%c33] : memref<200xf32, #tpu.memory_space<smem>>
    %218 = vector.broadcast %217 : f32 to vector<8x128xf32>
    %219 = arith.mulf %218, %31 : vector<8x128xf32>
    %220 = arith.addf %216, %219 : vector<8x128xf32>
    %c34 = arith.constant 34 : index
    %221 = memref.load %arg4[%c34] : memref<200xf32, #tpu.memory_space<smem>>
    %222 = vector.broadcast %221 : f32 to vector<8x128xf32>
    %223 = arith.mulf %222, %38 : vector<8x128xf32>
    %224 = arith.addf %220, %223 : vector<8x128xf32>
    %c35 = arith.constant 35 : index
    %225 = memref.load %arg4[%c35] : memref<200xf32, #tpu.memory_space<smem>>
    %226 = vector.broadcast %225 : f32 to vector<8x128xf32>
    %227 = arith.mulf %226, %45 : vector<8x128xf32>
    %228 = arith.addf %224, %227 : vector<8x128xf32>
    %c36 = arith.constant 36 : index
    %229 = memref.load %arg4[%c36] : memref<200xf32, #tpu.memory_space<smem>>
    %230 = vector.broadcast %229 : f32 to vector<8x128xf32>
    %231 = arith.mulf %230, %52 : vector<8x128xf32>
    %232 = arith.addf %228, %231 : vector<8x128xf32>
    %c37 = arith.constant 37 : index
    %233 = memref.load %arg4[%c37] : memref<200xf32, #tpu.memory_space<smem>>
    %234 = vector.broadcast %233 : f32 to vector<8x128xf32>
    %235 = arith.mulf %234, %59 : vector<8x128xf32>
    %236 = arith.addf %232, %235 : vector<8x128xf32>
    %c38 = arith.constant 38 : index
    %237 = memref.load %arg4[%c38] : memref<200xf32, #tpu.memory_space<smem>>
    %238 = vector.broadcast %237 : f32 to vector<8x128xf32>
    %239 = arith.mulf %238, %66 : vector<8x128xf32>
    %240 = arith.addf %236, %239 : vector<8x128xf32>
    %c39 = arith.constant 39 : index
    %241 = memref.load %arg4[%c39] : memref<200xf32, #tpu.memory_space<smem>>
    %242 = vector.broadcast %241 : f32 to vector<8x128xf32>
    %243 = arith.mulf %242, %73 : vector<8x128xf32>
    %244 = arith.addf %240, %243 : vector<8x128xf32>
    %245 = math.tanh %244 : vector<8x128xf32>
    %c40 = arith.constant 40 : index
    %246 = memref.load %arg4[%c40] : memref<200xf32, #tpu.memory_space<smem>>
    %247 = vector.broadcast %246 : f32 to vector<8x128xf32>
    %248 = arith.mulf %247, %10 : vector<8x128xf32>
    %c4_25 = arith.constant 4 : index
    %249 = memref.load %arg5[%c4_25] : memref<20xf32, #tpu.memory_space<smem>>
    %250 = vector.broadcast %249 : f32 to vector<8x128xf32>
    %251 = arith.addf %248, %250 : vector<8x128xf32>
    %c41 = arith.constant 41 : index
    %252 = memref.load %arg4[%c41] : memref<200xf32, #tpu.memory_space<smem>>
    %253 = vector.broadcast %252 : f32 to vector<8x128xf32>
    %254 = arith.mulf %253, %17 : vector<8x128xf32>
    %255 = arith.addf %251, %254 : vector<8x128xf32>
    %c42 = arith.constant 42 : index
    %256 = memref.load %arg4[%c42] : memref<200xf32, #tpu.memory_space<smem>>
    %257 = vector.broadcast %256 : f32 to vector<8x128xf32>
    %258 = arith.mulf %257, %24 : vector<8x128xf32>
    %259 = arith.addf %255, %258 : vector<8x128xf32>
    %c43 = arith.constant 43 : index
    %260 = memref.load %arg4[%c43] : memref<200xf32, #tpu.memory_space<smem>>
    %261 = vector.broadcast %260 : f32 to vector<8x128xf32>
    %262 = arith.mulf %261, %31 : vector<8x128xf32>
    %263 = arith.addf %259, %262 : vector<8x128xf32>
    %c44 = arith.constant 44 : index
    %264 = memref.load %arg4[%c44] : memref<200xf32, #tpu.memory_space<smem>>
    %265 = vector.broadcast %264 : f32 to vector<8x128xf32>
    %266 = arith.mulf %265, %38 : vector<8x128xf32>
    %267 = arith.addf %263, %266 : vector<8x128xf32>
    %c45 = arith.constant 45 : index
    %268 = memref.load %arg4[%c45] : memref<200xf32, #tpu.memory_space<smem>>
    %269 = vector.broadcast %268 : f32 to vector<8x128xf32>
    %270 = arith.mulf %269, %45 : vector<8x128xf32>
    %271 = arith.addf %267, %270 : vector<8x128xf32>
    %c46 = arith.constant 46 : index
    %272 = memref.load %arg4[%c46] : memref<200xf32, #tpu.memory_space<smem>>
    %273 = vector.broadcast %272 : f32 to vector<8x128xf32>
    %274 = arith.mulf %273, %52 : vector<8x128xf32>
    %275 = arith.addf %271, %274 : vector<8x128xf32>
    %c47 = arith.constant 47 : index
    %276 = memref.load %arg4[%c47] : memref<200xf32, #tpu.memory_space<smem>>
    %277 = vector.broadcast %276 : f32 to vector<8x128xf32>
    %278 = arith.mulf %277, %59 : vector<8x128xf32>
    %279 = arith.addf %275, %278 : vector<8x128xf32>
    %c48 = arith.constant 48 : index
    %280 = memref.load %arg4[%c48] : memref<200xf32, #tpu.memory_space<smem>>
    %281 = vector.broadcast %280 : f32 to vector<8x128xf32>
    %282 = arith.mulf %281, %66 : vector<8x128xf32>
    %283 = arith.addf %279, %282 : vector<8x128xf32>
    %c49 = arith.constant 49 : index
    %284 = memref.load %arg4[%c49] : memref<200xf32, #tpu.memory_space<smem>>
    %285 = vector.broadcast %284 : f32 to vector<8x128xf32>
    %286 = arith.mulf %285, %73 : vector<8x128xf32>
    %287 = arith.addf %283, %286 : vector<8x128xf32>
    %288 = math.tanh %287 : vector<8x128xf32>
    %c50 = arith.constant 50 : index
    %289 = memref.load %arg4[%c50] : memref<200xf32, #tpu.memory_space<smem>>
    %290 = vector.broadcast %289 : f32 to vector<8x128xf32>
    %291 = arith.mulf %290, %10 : vector<8x128xf32>
    %c5_26 = arith.constant 5 : index
    %292 = memref.load %arg5[%c5_26] : memref<20xf32, #tpu.memory_space<smem>>
    %293 = vector.broadcast %292 : f32 to vector<8x128xf32>
    %294 = arith.addf %291, %293 : vector<8x128xf32>
    %c51 = arith.constant 51 : index
    %295 = memref.load %arg4[%c51] : memref<200xf32, #tpu.memory_space<smem>>
    %296 = vector.broadcast %295 : f32 to vector<8x128xf32>
    %297 = arith.mulf %296, %17 : vector<8x128xf32>
    %298 = arith.addf %294, %297 : vector<8x128xf32>
    %c52 = arith.constant 52 : index
    %299 = memref.load %arg4[%c52] : memref<200xf32, #tpu.memory_space<smem>>
    %300 = vector.broadcast %299 : f32 to vector<8x128xf32>
    %301 = arith.mulf %300, %24 : vector<8x128xf32>
    %302 = arith.addf %298, %301 : vector<8x128xf32>
    %c53 = arith.constant 53 : index
    %303 = memref.load %arg4[%c53] : memref<200xf32, #tpu.memory_space<smem>>
    %304 = vector.broadcast %303 : f32 to vector<8x128xf32>
    %305 = arith.mulf %304, %31 : vector<8x128xf32>
    %306 = arith.addf %302, %305 : vector<8x128xf32>
    %c54 = arith.constant 54 : index
    %307 = memref.load %arg4[%c54] : memref<200xf32, #tpu.memory_space<smem>>
    %308 = vector.broadcast %307 : f32 to vector<8x128xf32>
    %309 = arith.mulf %308, %38 : vector<8x128xf32>
    %310 = arith.addf %306, %309 : vector<8x128xf32>
    %c55 = arith.constant 55 : index
    %311 = memref.load %arg4[%c55] : memref<200xf32, #tpu.memory_space<smem>>
    %312 = vector.broadcast %311 : f32 to vector<8x128xf32>
    %313 = arith.mulf %312, %45 : vector<8x128xf32>
    %314 = arith.addf %310, %313 : vector<8x128xf32>
    %c56 = arith.constant 56 : index
    %315 = memref.load %arg4[%c56] : memref<200xf32, #tpu.memory_space<smem>>
    %316 = vector.broadcast %315 : f32 to vector<8x128xf32>
    %317 = arith.mulf %316, %52 : vector<8x128xf32>
    %318 = arith.addf %314, %317 : vector<8x128xf32>
    %c57 = arith.constant 57 : index
    %319 = memref.load %arg4[%c57] : memref<200xf32, #tpu.memory_space<smem>>
    %320 = vector.broadcast %319 : f32 to vector<8x128xf32>
    %321 = arith.mulf %320, %59 : vector<8x128xf32>
    %322 = arith.addf %318, %321 : vector<8x128xf32>
    %c58 = arith.constant 58 : index
    %323 = memref.load %arg4[%c58] : memref<200xf32, #tpu.memory_space<smem>>
    %324 = vector.broadcast %323 : f32 to vector<8x128xf32>
    %325 = arith.mulf %324, %66 : vector<8x128xf32>
    %326 = arith.addf %322, %325 : vector<8x128xf32>
    %c59 = arith.constant 59 : index
    %327 = memref.load %arg4[%c59] : memref<200xf32, #tpu.memory_space<smem>>
    %328 = vector.broadcast %327 : f32 to vector<8x128xf32>
    %329 = arith.mulf %328, %73 : vector<8x128xf32>
    %330 = arith.addf %326, %329 : vector<8x128xf32>
    %331 = math.tanh %330 : vector<8x128xf32>
    %c60 = arith.constant 60 : index
    %332 = memref.load %arg4[%c60] : memref<200xf32, #tpu.memory_space<smem>>
    %333 = vector.broadcast %332 : f32 to vector<8x128xf32>
    %334 = arith.mulf %333, %10 : vector<8x128xf32>
    %c6_27 = arith.constant 6 : index
    %335 = memref.load %arg5[%c6_27] : memref<20xf32, #tpu.memory_space<smem>>
    %336 = vector.broadcast %335 : f32 to vector<8x128xf32>
    %337 = arith.addf %334, %336 : vector<8x128xf32>
    %c61 = arith.constant 61 : index
    %338 = memref.load %arg4[%c61] : memref<200xf32, #tpu.memory_space<smem>>
    %339 = vector.broadcast %338 : f32 to vector<8x128xf32>
    %340 = arith.mulf %339, %17 : vector<8x128xf32>
    %341 = arith.addf %337, %340 : vector<8x128xf32>
    %c62 = arith.constant 62 : index
    %342 = memref.load %arg4[%c62] : memref<200xf32, #tpu.memory_space<smem>>
    %343 = vector.broadcast %342 : f32 to vector<8x128xf32>
    %344 = arith.mulf %343, %24 : vector<8x128xf32>
    %345 = arith.addf %341, %344 : vector<8x128xf32>
    %c63 = arith.constant 63 : index
    %346 = memref.load %arg4[%c63] : memref<200xf32, #tpu.memory_space<smem>>
    %347 = vector.broadcast %346 : f32 to vector<8x128xf32>
    %348 = arith.mulf %347, %31 : vector<8x128xf32>
    %349 = arith.addf %345, %348 : vector<8x128xf32>
    %c64 = arith.constant 64 : index
    %350 = memref.load %arg4[%c64] : memref<200xf32, #tpu.memory_space<smem>>
    %351 = vector.broadcast %350 : f32 to vector<8x128xf32>
    %352 = arith.mulf %351, %38 : vector<8x128xf32>
    %353 = arith.addf %349, %352 : vector<8x128xf32>
    %c65 = arith.constant 65 : index
    %354 = memref.load %arg4[%c65] : memref<200xf32, #tpu.memory_space<smem>>
    %355 = vector.broadcast %354 : f32 to vector<8x128xf32>
    %356 = arith.mulf %355, %45 : vector<8x128xf32>
    %357 = arith.addf %353, %356 : vector<8x128xf32>
    %c66 = arith.constant 66 : index
    %358 = memref.load %arg4[%c66] : memref<200xf32, #tpu.memory_space<smem>>
    %359 = vector.broadcast %358 : f32 to vector<8x128xf32>
    %360 = arith.mulf %359, %52 : vector<8x128xf32>
    %361 = arith.addf %357, %360 : vector<8x128xf32>
    %c67 = arith.constant 67 : index
    %362 = memref.load %arg4[%c67] : memref<200xf32, #tpu.memory_space<smem>>
    %363 = vector.broadcast %362 : f32 to vector<8x128xf32>
    %364 = arith.mulf %363, %59 : vector<8x128xf32>
    %365 = arith.addf %361, %364 : vector<8x128xf32>
    %c68 = arith.constant 68 : index
    %366 = memref.load %arg4[%c68] : memref<200xf32, #tpu.memory_space<smem>>
    %367 = vector.broadcast %366 : f32 to vector<8x128xf32>
    %368 = arith.mulf %367, %66 : vector<8x128xf32>
    %369 = arith.addf %365, %368 : vector<8x128xf32>
    %c69 = arith.constant 69 : index
    %370 = memref.load %arg4[%c69] : memref<200xf32, #tpu.memory_space<smem>>
    %371 = vector.broadcast %370 : f32 to vector<8x128xf32>
    %372 = arith.mulf %371, %73 : vector<8x128xf32>
    %373 = arith.addf %369, %372 : vector<8x128xf32>
    %374 = math.tanh %373 : vector<8x128xf32>
    %c70 = arith.constant 70 : index
    %375 = memref.load %arg4[%c70] : memref<200xf32, #tpu.memory_space<smem>>
    %376 = vector.broadcast %375 : f32 to vector<8x128xf32>
    %377 = arith.mulf %376, %10 : vector<8x128xf32>
    %c7_28 = arith.constant 7 : index
    %378 = memref.load %arg5[%c7_28] : memref<20xf32, #tpu.memory_space<smem>>
    %379 = vector.broadcast %378 : f32 to vector<8x128xf32>
    %380 = arith.addf %377, %379 : vector<8x128xf32>
    %c71 = arith.constant 71 : index
    %381 = memref.load %arg4[%c71] : memref<200xf32, #tpu.memory_space<smem>>
    %382 = vector.broadcast %381 : f32 to vector<8x128xf32>
    %383 = arith.mulf %382, %17 : vector<8x128xf32>
    %384 = arith.addf %380, %383 : vector<8x128xf32>
    %c72 = arith.constant 72 : index
    %385 = memref.load %arg4[%c72] : memref<200xf32, #tpu.memory_space<smem>>
    %386 = vector.broadcast %385 : f32 to vector<8x128xf32>
    %387 = arith.mulf %386, %24 : vector<8x128xf32>
    %388 = arith.addf %384, %387 : vector<8x128xf32>
    %c73 = arith.constant 73 : index
    %389 = memref.load %arg4[%c73] : memref<200xf32, #tpu.memory_space<smem>>
    %390 = vector.broadcast %389 : f32 to vector<8x128xf32>
    %391 = arith.mulf %390, %31 : vector<8x128xf32>
    %392 = arith.addf %388, %391 : vector<8x128xf32>
    %c74 = arith.constant 74 : index
    %393 = memref.load %arg4[%c74] : memref<200xf32, #tpu.memory_space<smem>>
    %394 = vector.broadcast %393 : f32 to vector<8x128xf32>
    %395 = arith.mulf %394, %38 : vector<8x128xf32>
    %396 = arith.addf %392, %395 : vector<8x128xf32>
    %c75 = arith.constant 75 : index
    %397 = memref.load %arg4[%c75] : memref<200xf32, #tpu.memory_space<smem>>
    %398 = vector.broadcast %397 : f32 to vector<8x128xf32>
    %399 = arith.mulf %398, %45 : vector<8x128xf32>
    %400 = arith.addf %396, %399 : vector<8x128xf32>
    %c76 = arith.constant 76 : index
    %401 = memref.load %arg4[%c76] : memref<200xf32, #tpu.memory_space<smem>>
    %402 = vector.broadcast %401 : f32 to vector<8x128xf32>
    %403 = arith.mulf %402, %52 : vector<8x128xf32>
    %404 = arith.addf %400, %403 : vector<8x128xf32>
    %c77 = arith.constant 77 : index
    %405 = memref.load %arg4[%c77] : memref<200xf32, #tpu.memory_space<smem>>
    %406 = vector.broadcast %405 : f32 to vector<8x128xf32>
    %407 = arith.mulf %406, %59 : vector<8x128xf32>
    %408 = arith.addf %404, %407 : vector<8x128xf32>
    %c78 = arith.constant 78 : index
    %409 = memref.load %arg4[%c78] : memref<200xf32, #tpu.memory_space<smem>>
    %410 = vector.broadcast %409 : f32 to vector<8x128xf32>
    %411 = arith.mulf %410, %66 : vector<8x128xf32>
    %412 = arith.addf %408, %411 : vector<8x128xf32>
    %c79 = arith.constant 79 : index
    %413 = memref.load %arg4[%c79] : memref<200xf32, #tpu.memory_space<smem>>
    %414 = vector.broadcast %413 : f32 to vector<8x128xf32>
    %415 = arith.mulf %414, %73 : vector<8x128xf32>
    %416 = arith.addf %412, %415 : vector<8x128xf32>
    %417 = math.tanh %416 : vector<8x128xf32>
    %c80 = arith.constant 80 : index
    %418 = memref.load %arg4[%c80] : memref<200xf32, #tpu.memory_space<smem>>
    %419 = vector.broadcast %418 : f32 to vector<8x128xf32>
    %420 = arith.mulf %419, %10 : vector<8x128xf32>
    %c8_29 = arith.constant 8 : index
    %421 = memref.load %arg5[%c8_29] : memref<20xf32, #tpu.memory_space<smem>>
    %422 = vector.broadcast %421 : f32 to vector<8x128xf32>
    %423 = arith.addf %420, %422 : vector<8x128xf32>
    %c81 = arith.constant 81 : index
    %424 = memref.load %arg4[%c81] : memref<200xf32, #tpu.memory_space<smem>>
    %425 = vector.broadcast %424 : f32 to vector<8x128xf32>
    %426 = arith.mulf %425, %17 : vector<8x128xf32>
    %427 = arith.addf %423, %426 : vector<8x128xf32>
    %c82 = arith.constant 82 : index
    %428 = memref.load %arg4[%c82] : memref<200xf32, #tpu.memory_space<smem>>
    %429 = vector.broadcast %428 : f32 to vector<8x128xf32>
    %430 = arith.mulf %429, %24 : vector<8x128xf32>
    %431 = arith.addf %427, %430 : vector<8x128xf32>
    %c83 = arith.constant 83 : index
    %432 = memref.load %arg4[%c83] : memref<200xf32, #tpu.memory_space<smem>>
    %433 = vector.broadcast %432 : f32 to vector<8x128xf32>
    %434 = arith.mulf %433, %31 : vector<8x128xf32>
    %435 = arith.addf %431, %434 : vector<8x128xf32>
    %c84 = arith.constant 84 : index
    %436 = memref.load %arg4[%c84] : memref<200xf32, #tpu.memory_space<smem>>
    %437 = vector.broadcast %436 : f32 to vector<8x128xf32>
    %438 = arith.mulf %437, %38 : vector<8x128xf32>
    %439 = arith.addf %435, %438 : vector<8x128xf32>
    %c85 = arith.constant 85 : index
    %440 = memref.load %arg4[%c85] : memref<200xf32, #tpu.memory_space<smem>>
    %441 = vector.broadcast %440 : f32 to vector<8x128xf32>
    %442 = arith.mulf %441, %45 : vector<8x128xf32>
    %443 = arith.addf %439, %442 : vector<8x128xf32>
    %c86 = arith.constant 86 : index
    %444 = memref.load %arg4[%c86] : memref<200xf32, #tpu.memory_space<smem>>
    %445 = vector.broadcast %444 : f32 to vector<8x128xf32>
    %446 = arith.mulf %445, %52 : vector<8x128xf32>
    %447 = arith.addf %443, %446 : vector<8x128xf32>
    %c87 = arith.constant 87 : index
    %448 = memref.load %arg4[%c87] : memref<200xf32, #tpu.memory_space<smem>>
    %449 = vector.broadcast %448 : f32 to vector<8x128xf32>
    %450 = arith.mulf %449, %59 : vector<8x128xf32>
    %451 = arith.addf %447, %450 : vector<8x128xf32>
    %c88 = arith.constant 88 : index
    %452 = memref.load %arg4[%c88] : memref<200xf32, #tpu.memory_space<smem>>
    %453 = vector.broadcast %452 : f32 to vector<8x128xf32>
    %454 = arith.mulf %453, %66 : vector<8x128xf32>
    %455 = arith.addf %451, %454 : vector<8x128xf32>
    %c89 = arith.constant 89 : index
    %456 = memref.load %arg4[%c89] : memref<200xf32, #tpu.memory_space<smem>>
    %457 = vector.broadcast %456 : f32 to vector<8x128xf32>
    %458 = arith.mulf %457, %73 : vector<8x128xf32>
    %459 = arith.addf %455, %458 : vector<8x128xf32>
    %460 = math.tanh %459 : vector<8x128xf32>
    %c90 = arith.constant 90 : index
    %461 = memref.load %arg4[%c90] : memref<200xf32, #tpu.memory_space<smem>>
    %462 = vector.broadcast %461 : f32 to vector<8x128xf32>
    %463 = arith.mulf %462, %10 : vector<8x128xf32>
    %c9_30 = arith.constant 9 : index
    %464 = memref.load %arg5[%c9_30] : memref<20xf32, #tpu.memory_space<smem>>
    %465 = vector.broadcast %464 : f32 to vector<8x128xf32>
    %466 = arith.addf %463, %465 : vector<8x128xf32>
    %c91 = arith.constant 91 : index
    %467 = memref.load %arg4[%c91] : memref<200xf32, #tpu.memory_space<smem>>
    %468 = vector.broadcast %467 : f32 to vector<8x128xf32>
    %469 = arith.mulf %468, %17 : vector<8x128xf32>
    %470 = arith.addf %466, %469 : vector<8x128xf32>
    %c92 = arith.constant 92 : index
    %471 = memref.load %arg4[%c92] : memref<200xf32, #tpu.memory_space<smem>>
    %472 = vector.broadcast %471 : f32 to vector<8x128xf32>
    %473 = arith.mulf %472, %24 : vector<8x128xf32>
    %474 = arith.addf %470, %473 : vector<8x128xf32>
    %c93 = arith.constant 93 : index
    %475 = memref.load %arg4[%c93] : memref<200xf32, #tpu.memory_space<smem>>
    %476 = vector.broadcast %475 : f32 to vector<8x128xf32>
    %477 = arith.mulf %476, %31 : vector<8x128xf32>
    %478 = arith.addf %474, %477 : vector<8x128xf32>
    %c94 = arith.constant 94 : index
    %479 = memref.load %arg4[%c94] : memref<200xf32, #tpu.memory_space<smem>>
    %480 = vector.broadcast %479 : f32 to vector<8x128xf32>
    %481 = arith.mulf %480, %38 : vector<8x128xf32>
    %482 = arith.addf %478, %481 : vector<8x128xf32>
    %c95 = arith.constant 95 : index
    %483 = memref.load %arg4[%c95] : memref<200xf32, #tpu.memory_space<smem>>
    %484 = vector.broadcast %483 : f32 to vector<8x128xf32>
    %485 = arith.mulf %484, %45 : vector<8x128xf32>
    %486 = arith.addf %482, %485 : vector<8x128xf32>
    %c96 = arith.constant 96 : index
    %487 = memref.load %arg4[%c96] : memref<200xf32, #tpu.memory_space<smem>>
    %488 = vector.broadcast %487 : f32 to vector<8x128xf32>
    %489 = arith.mulf %488, %52 : vector<8x128xf32>
    %490 = arith.addf %486, %489 : vector<8x128xf32>
    %c97 = arith.constant 97 : index
    %491 = memref.load %arg4[%c97] : memref<200xf32, #tpu.memory_space<smem>>
    %492 = vector.broadcast %491 : f32 to vector<8x128xf32>
    %493 = arith.mulf %492, %59 : vector<8x128xf32>
    %494 = arith.addf %490, %493 : vector<8x128xf32>
    %c98 = arith.constant 98 : index
    %495 = memref.load %arg4[%c98] : memref<200xf32, #tpu.memory_space<smem>>
    %496 = vector.broadcast %495 : f32 to vector<8x128xf32>
    %497 = arith.mulf %496, %66 : vector<8x128xf32>
    %498 = arith.addf %494, %497 : vector<8x128xf32>
    %c99 = arith.constant 99 : index
    %499 = memref.load %arg4[%c99] : memref<200xf32, #tpu.memory_space<smem>>
    %500 = vector.broadcast %499 : f32 to vector<8x128xf32>
    %501 = arith.mulf %500, %73 : vector<8x128xf32>
    %502 = arith.addf %498, %501 : vector<8x128xf32>
    %503 = math.tanh %502 : vector<8x128xf32>
    %c100 = arith.constant 100 : index
    %504 = memref.load %arg4[%c100] : memref<200xf32, #tpu.memory_space<smem>>
    %505 = vector.broadcast %504 : f32 to vector<8x128xf32>
    %506 = arith.mulf %505, %116 : vector<8x128xf32>
    %c10_31 = arith.constant 10 : index
    %507 = memref.load %arg5[%c10_31] : memref<20xf32, #tpu.memory_space<smem>>
    %508 = vector.broadcast %507 : f32 to vector<8x128xf32>
    %509 = arith.addf %506, %508 : vector<8x128xf32>
    %c101 = arith.constant 101 : index
    %510 = memref.load %arg4[%c101] : memref<200xf32, #tpu.memory_space<smem>>
    %511 = vector.broadcast %510 : f32 to vector<8x128xf32>
    %512 = arith.mulf %511, %159 : vector<8x128xf32>
    %513 = arith.addf %509, %512 : vector<8x128xf32>
    %c102 = arith.constant 102 : index
    %514 = memref.load %arg4[%c102] : memref<200xf32, #tpu.memory_space<smem>>
    %515 = vector.broadcast %514 : f32 to vector<8x128xf32>
    %516 = arith.mulf %515, %202 : vector<8x128xf32>
    %517 = arith.addf %513, %516 : vector<8x128xf32>
    %c103 = arith.constant 103 : index
    %518 = memref.load %arg4[%c103] : memref<200xf32, #tpu.memory_space<smem>>
    %519 = vector.broadcast %518 : f32 to vector<8x128xf32>
    %520 = arith.mulf %519, %245 : vector<8x128xf32>
    %521 = arith.addf %517, %520 : vector<8x128xf32>
    %c104 = arith.constant 104 : index
    %522 = memref.load %arg4[%c104] : memref<200xf32, #tpu.memory_space<smem>>
    %523 = vector.broadcast %522 : f32 to vector<8x128xf32>
    %524 = arith.mulf %523, %288 : vector<8x128xf32>
    %525 = arith.addf %521, %524 : vector<8x128xf32>
    %c105 = arith.constant 105 : index
    %526 = memref.load %arg4[%c105] : memref<200xf32, #tpu.memory_space<smem>>
    %527 = vector.broadcast %526 : f32 to vector<8x128xf32>
    %528 = arith.mulf %527, %331 : vector<8x128xf32>
    %529 = arith.addf %525, %528 : vector<8x128xf32>
    %c106 = arith.constant 106 : index
    %530 = memref.load %arg4[%c106] : memref<200xf32, #tpu.memory_space<smem>>
    %531 = vector.broadcast %530 : f32 to vector<8x128xf32>
    %532 = arith.mulf %531, %374 : vector<8x128xf32>
    %533 = arith.addf %529, %532 : vector<8x128xf32>
    %c107 = arith.constant 107 : index
    %534 = memref.load %arg4[%c107] : memref<200xf32, #tpu.memory_space<smem>>
    %535 = vector.broadcast %534 : f32 to vector<8x128xf32>
    %536 = arith.mulf %535, %417 : vector<8x128xf32>
    %537 = arith.addf %533, %536 : vector<8x128xf32>
    %c108 = arith.constant 108 : index
    %538 = memref.load %arg4[%c108] : memref<200xf32, #tpu.memory_space<smem>>
    %539 = vector.broadcast %538 : f32 to vector<8x128xf32>
    %540 = arith.mulf %539, %460 : vector<8x128xf32>
    %541 = arith.addf %537, %540 : vector<8x128xf32>
    %c109 = arith.constant 109 : index
    %542 = memref.load %arg4[%c109] : memref<200xf32, #tpu.memory_space<smem>>
    %543 = vector.broadcast %542 : f32 to vector<8x128xf32>
    %544 = arith.mulf %543, %503 : vector<8x128xf32>
    %545 = arith.addf %541, %544 : vector<8x128xf32>
    %546 = math.tanh %545 : vector<8x128xf32>
    %c110 = arith.constant 110 : index
    %547 = memref.load %arg4[%c110] : memref<200xf32, #tpu.memory_space<smem>>
    %548 = vector.broadcast %547 : f32 to vector<8x128xf32>
    %549 = arith.mulf %548, %116 : vector<8x128xf32>
    %c11_32 = arith.constant 11 : index
    %550 = memref.load %arg5[%c11_32] : memref<20xf32, #tpu.memory_space<smem>>
    %551 = vector.broadcast %550 : f32 to vector<8x128xf32>
    %552 = arith.addf %549, %551 : vector<8x128xf32>
    %c111 = arith.constant 111 : index
    %553 = memref.load %arg4[%c111] : memref<200xf32, #tpu.memory_space<smem>>
    %554 = vector.broadcast %553 : f32 to vector<8x128xf32>
    %555 = arith.mulf %554, %159 : vector<8x128xf32>
    %556 = arith.addf %552, %555 : vector<8x128xf32>
    %c112 = arith.constant 112 : index
    %557 = memref.load %arg4[%c112] : memref<200xf32, #tpu.memory_space<smem>>
    %558 = vector.broadcast %557 : f32 to vector<8x128xf32>
    %559 = arith.mulf %558, %202 : vector<8x128xf32>
    %560 = arith.addf %556, %559 : vector<8x128xf32>
    %c113 = arith.constant 113 : index
    %561 = memref.load %arg4[%c113] : memref<200xf32, #tpu.memory_space<smem>>
    %562 = vector.broadcast %561 : f32 to vector<8x128xf32>
    %563 = arith.mulf %562, %245 : vector<8x128xf32>
    %564 = arith.addf %560, %563 : vector<8x128xf32>
    %c114 = arith.constant 114 : index
    %565 = memref.load %arg4[%c114] : memref<200xf32, #tpu.memory_space<smem>>
    %566 = vector.broadcast %565 : f32 to vector<8x128xf32>
    %567 = arith.mulf %566, %288 : vector<8x128xf32>
    %568 = arith.addf %564, %567 : vector<8x128xf32>
    %c115 = arith.constant 115 : index
    %569 = memref.load %arg4[%c115] : memref<200xf32, #tpu.memory_space<smem>>
    %570 = vector.broadcast %569 : f32 to vector<8x128xf32>
    %571 = arith.mulf %570, %331 : vector<8x128xf32>
    %572 = arith.addf %568, %571 : vector<8x128xf32>
    %c116 = arith.constant 116 : index
    %573 = memref.load %arg4[%c116] : memref<200xf32, #tpu.memory_space<smem>>
    %574 = vector.broadcast %573 : f32 to vector<8x128xf32>
    %575 = arith.mulf %574, %374 : vector<8x128xf32>
    %576 = arith.addf %572, %575 : vector<8x128xf32>
    %c117 = arith.constant 117 : index
    %577 = memref.load %arg4[%c117] : memref<200xf32, #tpu.memory_space<smem>>
    %578 = vector.broadcast %577 : f32 to vector<8x128xf32>
    %579 = arith.mulf %578, %417 : vector<8x128xf32>
    %580 = arith.addf %576, %579 : vector<8x128xf32>
    %c118 = arith.constant 118 : index
    %581 = memref.load %arg4[%c118] : memref<200xf32, #tpu.memory_space<smem>>
    %582 = vector.broadcast %581 : f32 to vector<8x128xf32>
    %583 = arith.mulf %582, %460 : vector<8x128xf32>
    %584 = arith.addf %580, %583 : vector<8x128xf32>
    %c119 = arith.constant 119 : index
    %585 = memref.load %arg4[%c119] : memref<200xf32, #tpu.memory_space<smem>>
    %586 = vector.broadcast %585 : f32 to vector<8x128xf32>
    %587 = arith.mulf %586, %503 : vector<8x128xf32>
    %588 = arith.addf %584, %587 : vector<8x128xf32>
    %589 = math.tanh %588 : vector<8x128xf32>
    %c120 = arith.constant 120 : index
    %590 = memref.load %arg4[%c120] : memref<200xf32, #tpu.memory_space<smem>>
    %591 = vector.broadcast %590 : f32 to vector<8x128xf32>
    %592 = arith.mulf %591, %116 : vector<8x128xf32>
    %c12_33 = arith.constant 12 : index
    %593 = memref.load %arg5[%c12_33] : memref<20xf32, #tpu.memory_space<smem>>
    %594 = vector.broadcast %593 : f32 to vector<8x128xf32>
    %595 = arith.addf %592, %594 : vector<8x128xf32>
    %c121 = arith.constant 121 : index
    %596 = memref.load %arg4[%c121] : memref<200xf32, #tpu.memory_space<smem>>
    %597 = vector.broadcast %596 : f32 to vector<8x128xf32>
    %598 = arith.mulf %597, %159 : vector<8x128xf32>
    %599 = arith.addf %595, %598 : vector<8x128xf32>
    %c122 = arith.constant 122 : index
    %600 = memref.load %arg4[%c122] : memref<200xf32, #tpu.memory_space<smem>>
    %601 = vector.broadcast %600 : f32 to vector<8x128xf32>
    %602 = arith.mulf %601, %202 : vector<8x128xf32>
    %603 = arith.addf %599, %602 : vector<8x128xf32>
    %c123 = arith.constant 123 : index
    %604 = memref.load %arg4[%c123] : memref<200xf32, #tpu.memory_space<smem>>
    %605 = vector.broadcast %604 : f32 to vector<8x128xf32>
    %606 = arith.mulf %605, %245 : vector<8x128xf32>
    %607 = arith.addf %603, %606 : vector<8x128xf32>
    %c124 = arith.constant 124 : index
    %608 = memref.load %arg4[%c124] : memref<200xf32, #tpu.memory_space<smem>>
    %609 = vector.broadcast %608 : f32 to vector<8x128xf32>
    %610 = arith.mulf %609, %288 : vector<8x128xf32>
    %611 = arith.addf %607, %610 : vector<8x128xf32>
    %c125 = arith.constant 125 : index
    %612 = memref.load %arg4[%c125] : memref<200xf32, #tpu.memory_space<smem>>
    %613 = vector.broadcast %612 : f32 to vector<8x128xf32>
    %614 = arith.mulf %613, %331 : vector<8x128xf32>
    %615 = arith.addf %611, %614 : vector<8x128xf32>
    %c126 = arith.constant 126 : index
    %616 = memref.load %arg4[%c126] : memref<200xf32, #tpu.memory_space<smem>>
    %617 = vector.broadcast %616 : f32 to vector<8x128xf32>
    %618 = arith.mulf %617, %374 : vector<8x128xf32>
    %619 = arith.addf %615, %618 : vector<8x128xf32>
    %c127 = arith.constant 127 : index
    %620 = memref.load %arg4[%c127] : memref<200xf32, #tpu.memory_space<smem>>
    %621 = vector.broadcast %620 : f32 to vector<8x128xf32>
    %622 = arith.mulf %621, %417 : vector<8x128xf32>
    %623 = arith.addf %619, %622 : vector<8x128xf32>
    %c128 = arith.constant 128 : index
    %624 = memref.load %arg4[%c128] : memref<200xf32, #tpu.memory_space<smem>>
    %625 = vector.broadcast %624 : f32 to vector<8x128xf32>
    %626 = arith.mulf %625, %460 : vector<8x128xf32>
    %627 = arith.addf %623, %626 : vector<8x128xf32>
    %c129 = arith.constant 129 : index
    %628 = memref.load %arg4[%c129] : memref<200xf32, #tpu.memory_space<smem>>
    %629 = vector.broadcast %628 : f32 to vector<8x128xf32>
    %630 = arith.mulf %629, %503 : vector<8x128xf32>
    %631 = arith.addf %627, %630 : vector<8x128xf32>
    %632 = math.tanh %631 : vector<8x128xf32>
    %c130 = arith.constant 130 : index
    %633 = memref.load %arg4[%c130] : memref<200xf32, #tpu.memory_space<smem>>
    %634 = vector.broadcast %633 : f32 to vector<8x128xf32>
    %635 = arith.mulf %634, %116 : vector<8x128xf32>
    %c13_34 = arith.constant 13 : index
    %636 = memref.load %arg5[%c13_34] : memref<20xf32, #tpu.memory_space<smem>>
    %637 = vector.broadcast %636 : f32 to vector<8x128xf32>
    %638 = arith.addf %635, %637 : vector<8x128xf32>
    %c131 = arith.constant 131 : index
    %639 = memref.load %arg4[%c131] : memref<200xf32, #tpu.memory_space<smem>>
    %640 = vector.broadcast %639 : f32 to vector<8x128xf32>
    %641 = arith.mulf %640, %159 : vector<8x128xf32>
    %642 = arith.addf %638, %641 : vector<8x128xf32>
    %c132 = arith.constant 132 : index
    %643 = memref.load %arg4[%c132] : memref<200xf32, #tpu.memory_space<smem>>
    %644 = vector.broadcast %643 : f32 to vector<8x128xf32>
    %645 = arith.mulf %644, %202 : vector<8x128xf32>
    %646 = arith.addf %642, %645 : vector<8x128xf32>
    %c133 = arith.constant 133 : index
    %647 = memref.load %arg4[%c133] : memref<200xf32, #tpu.memory_space<smem>>
    %648 = vector.broadcast %647 : f32 to vector<8x128xf32>
    %649 = arith.mulf %648, %245 : vector<8x128xf32>
    %650 = arith.addf %646, %649 : vector<8x128xf32>
    %c134 = arith.constant 134 : index
    %651 = memref.load %arg4[%c134] : memref<200xf32, #tpu.memory_space<smem>>
    %652 = vector.broadcast %651 : f32 to vector<8x128xf32>
    %653 = arith.mulf %652, %288 : vector<8x128xf32>
    %654 = arith.addf %650, %653 : vector<8x128xf32>
    %c135 = arith.constant 135 : index
    %655 = memref.load %arg4[%c135] : memref<200xf32, #tpu.memory_space<smem>>
    %656 = vector.broadcast %655 : f32 to vector<8x128xf32>
    %657 = arith.mulf %656, %331 : vector<8x128xf32>
    %658 = arith.addf %654, %657 : vector<8x128xf32>
    %c136 = arith.constant 136 : index
    %659 = memref.load %arg4[%c136] : memref<200xf32, #tpu.memory_space<smem>>
    %660 = vector.broadcast %659 : f32 to vector<8x128xf32>
    %661 = arith.mulf %660, %374 : vector<8x128xf32>
    %662 = arith.addf %658, %661 : vector<8x128xf32>
    %c137 = arith.constant 137 : index
    %663 = memref.load %arg4[%c137] : memref<200xf32, #tpu.memory_space<smem>>
    %664 = vector.broadcast %663 : f32 to vector<8x128xf32>
    %665 = arith.mulf %664, %417 : vector<8x128xf32>
    %666 = arith.addf %662, %665 : vector<8x128xf32>
    %c138 = arith.constant 138 : index
    %667 = memref.load %arg4[%c138] : memref<200xf32, #tpu.memory_space<smem>>
    %668 = vector.broadcast %667 : f32 to vector<8x128xf32>
    %669 = arith.mulf %668, %460 : vector<8x128xf32>
    %670 = arith.addf %666, %669 : vector<8x128xf32>
    %c139 = arith.constant 139 : index
    %671 = memref.load %arg4[%c139] : memref<200xf32, #tpu.memory_space<smem>>
    %672 = vector.broadcast %671 : f32 to vector<8x128xf32>
    %673 = arith.mulf %672, %503 : vector<8x128xf32>
    %674 = arith.addf %670, %673 : vector<8x128xf32>
    %675 = math.tanh %674 : vector<8x128xf32>
    %c140 = arith.constant 140 : index
    %676 = memref.load %arg4[%c140] : memref<200xf32, #tpu.memory_space<smem>>
    %677 = vector.broadcast %676 : f32 to vector<8x128xf32>
    %678 = arith.mulf %677, %116 : vector<8x128xf32>
    %c14_35 = arith.constant 14 : index
    %679 = memref.load %arg5[%c14_35] : memref<20xf32, #tpu.memory_space<smem>>
    %680 = vector.broadcast %679 : f32 to vector<8x128xf32>
    %681 = arith.addf %678, %680 : vector<8x128xf32>
    %c141 = arith.constant 141 : index
    %682 = memref.load %arg4[%c141] : memref<200xf32, #tpu.memory_space<smem>>
    %683 = vector.broadcast %682 : f32 to vector<8x128xf32>
    %684 = arith.mulf %683, %159 : vector<8x128xf32>
    %685 = arith.addf %681, %684 : vector<8x128xf32>
    %c142 = arith.constant 142 : index
    %686 = memref.load %arg4[%c142] : memref<200xf32, #tpu.memory_space<smem>>
    %687 = vector.broadcast %686 : f32 to vector<8x128xf32>
    %688 = arith.mulf %687, %202 : vector<8x128xf32>
    %689 = arith.addf %685, %688 : vector<8x128xf32>
    %c143 = arith.constant 143 : index
    %690 = memref.load %arg4[%c143] : memref<200xf32, #tpu.memory_space<smem>>
    %691 = vector.broadcast %690 : f32 to vector<8x128xf32>
    %692 = arith.mulf %691, %245 : vector<8x128xf32>
    %693 = arith.addf %689, %692 : vector<8x128xf32>
    %c144 = arith.constant 144 : index
    %694 = memref.load %arg4[%c144] : memref<200xf32, #tpu.memory_space<smem>>
    %695 = vector.broadcast %694 : f32 to vector<8x128xf32>
    %696 = arith.mulf %695, %288 : vector<8x128xf32>
    %697 = arith.addf %693, %696 : vector<8x128xf32>
    %c145 = arith.constant 145 : index
    %698 = memref.load %arg4[%c145] : memref<200xf32, #tpu.memory_space<smem>>
    %699 = vector.broadcast %698 : f32 to vector<8x128xf32>
    %700 = arith.mulf %699, %331 : vector<8x128xf32>
    %701 = arith.addf %697, %700 : vector<8x128xf32>
    %c146 = arith.constant 146 : index
    %702 = memref.load %arg4[%c146] : memref<200xf32, #tpu.memory_space<smem>>
    %703 = vector.broadcast %702 : f32 to vector<8x128xf32>
    %704 = arith.mulf %703, %374 : vector<8x128xf32>
    %705 = arith.addf %701, %704 : vector<8x128xf32>
    %c147 = arith.constant 147 : index
    %706 = memref.load %arg4[%c147] : memref<200xf32, #tpu.memory_space<smem>>
    %707 = vector.broadcast %706 : f32 to vector<8x128xf32>
    %708 = arith.mulf %707, %417 : vector<8x128xf32>
    %709 = arith.addf %705, %708 : vector<8x128xf32>
    %c148 = arith.constant 148 : index
    %710 = memref.load %arg4[%c148] : memref<200xf32, #tpu.memory_space<smem>>
    %711 = vector.broadcast %710 : f32 to vector<8x128xf32>
    %712 = arith.mulf %711, %460 : vector<8x128xf32>
    %713 = arith.addf %709, %712 : vector<8x128xf32>
    %c149 = arith.constant 149 : index
    %714 = memref.load %arg4[%c149] : memref<200xf32, #tpu.memory_space<smem>>
    %715 = vector.broadcast %714 : f32 to vector<8x128xf32>
    %716 = arith.mulf %715, %503 : vector<8x128xf32>
    %717 = arith.addf %713, %716 : vector<8x128xf32>
    %718 = math.tanh %717 : vector<8x128xf32>
    %c150 = arith.constant 150 : index
    %719 = memref.load %arg4[%c150] : memref<200xf32, #tpu.memory_space<smem>>
    %720 = vector.broadcast %719 : f32 to vector<8x128xf32>
    %721 = arith.mulf %720, %116 : vector<8x128xf32>
    %c15_36 = arith.constant 15 : index
    %722 = memref.load %arg5[%c15_36] : memref<20xf32, #tpu.memory_space<smem>>
    %723 = vector.broadcast %722 : f32 to vector<8x128xf32>
    %724 = arith.addf %721, %723 : vector<8x128xf32>
    %c151 = arith.constant 151 : index
    %725 = memref.load %arg4[%c151] : memref<200xf32, #tpu.memory_space<smem>>
    %726 = vector.broadcast %725 : f32 to vector<8x128xf32>
    %727 = arith.mulf %726, %159 : vector<8x128xf32>
    %728 = arith.addf %724, %727 : vector<8x128xf32>
    %c152 = arith.constant 152 : index
    %729 = memref.load %arg4[%c152] : memref<200xf32, #tpu.memory_space<smem>>
    %730 = vector.broadcast %729 : f32 to vector<8x128xf32>
    %731 = arith.mulf %730, %202 : vector<8x128xf32>
    %732 = arith.addf %728, %731 : vector<8x128xf32>
    %c153 = arith.constant 153 : index
    %733 = memref.load %arg4[%c153] : memref<200xf32, #tpu.memory_space<smem>>
    %734 = vector.broadcast %733 : f32 to vector<8x128xf32>
    %735 = arith.mulf %734, %245 : vector<8x128xf32>
    %736 = arith.addf %732, %735 : vector<8x128xf32>
    %c154 = arith.constant 154 : index
    %737 = memref.load %arg4[%c154] : memref<200xf32, #tpu.memory_space<smem>>
    %738 = vector.broadcast %737 : f32 to vector<8x128xf32>
    %739 = arith.mulf %738, %288 : vector<8x128xf32>
    %740 = arith.addf %736, %739 : vector<8x128xf32>
    %c155 = arith.constant 155 : index
    %741 = memref.load %arg4[%c155] : memref<200xf32, #tpu.memory_space<smem>>
    %742 = vector.broadcast %741 : f32 to vector<8x128xf32>
    %743 = arith.mulf %742, %331 : vector<8x128xf32>
    %744 = arith.addf %740, %743 : vector<8x128xf32>
    %c156 = arith.constant 156 : index
    %745 = memref.load %arg4[%c156] : memref<200xf32, #tpu.memory_space<smem>>
    %746 = vector.broadcast %745 : f32 to vector<8x128xf32>
    %747 = arith.mulf %746, %374 : vector<8x128xf32>
    %748 = arith.addf %744, %747 : vector<8x128xf32>
    %c157 = arith.constant 157 : index
    %749 = memref.load %arg4[%c157] : memref<200xf32, #tpu.memory_space<smem>>
    %750 = vector.broadcast %749 : f32 to vector<8x128xf32>
    %751 = arith.mulf %750, %417 : vector<8x128xf32>
    %752 = arith.addf %748, %751 : vector<8x128xf32>
    %c158 = arith.constant 158 : index
    %753 = memref.load %arg4[%c158] : memref<200xf32, #tpu.memory_space<smem>>
    %754 = vector.broadcast %753 : f32 to vector<8x128xf32>
    %755 = arith.mulf %754, %460 : vector<8x128xf32>
    %756 = arith.addf %752, %755 : vector<8x128xf32>
    %c159 = arith.constant 159 : index
    %757 = memref.load %arg4[%c159] : memref<200xf32, #tpu.memory_space<smem>>
    %758 = vector.broadcast %757 : f32 to vector<8x128xf32>
    %759 = arith.mulf %758, %503 : vector<8x128xf32>
    %760 = arith.addf %756, %759 : vector<8x128xf32>
    %761 = math.tanh %760 : vector<8x128xf32>
    %c160 = arith.constant 160 : index
    %762 = memref.load %arg4[%c160] : memref<200xf32, #tpu.memory_space<smem>>
    %763 = vector.broadcast %762 : f32 to vector<8x128xf32>
    %764 = arith.mulf %763, %116 : vector<8x128xf32>
    %c16_37 = arith.constant 16 : index
    %765 = memref.load %arg5[%c16_37] : memref<20xf32, #tpu.memory_space<smem>>
    %766 = vector.broadcast %765 : f32 to vector<8x128xf32>
    %767 = arith.addf %764, %766 : vector<8x128xf32>
    %c161 = arith.constant 161 : index
    %768 = memref.load %arg4[%c161] : memref<200xf32, #tpu.memory_space<smem>>
    %769 = vector.broadcast %768 : f32 to vector<8x128xf32>
    %770 = arith.mulf %769, %159 : vector<8x128xf32>
    %771 = arith.addf %767, %770 : vector<8x128xf32>
    %c162 = arith.constant 162 : index
    %772 = memref.load %arg4[%c162] : memref<200xf32, #tpu.memory_space<smem>>
    %773 = vector.broadcast %772 : f32 to vector<8x128xf32>
    %774 = arith.mulf %773, %202 : vector<8x128xf32>
    %775 = arith.addf %771, %774 : vector<8x128xf32>
    %c163 = arith.constant 163 : index
    %776 = memref.load %arg4[%c163] : memref<200xf32, #tpu.memory_space<smem>>
    %777 = vector.broadcast %776 : f32 to vector<8x128xf32>
    %778 = arith.mulf %777, %245 : vector<8x128xf32>
    %779 = arith.addf %775, %778 : vector<8x128xf32>
    %c164 = arith.constant 164 : index
    %780 = memref.load %arg4[%c164] : memref<200xf32, #tpu.memory_space<smem>>
    %781 = vector.broadcast %780 : f32 to vector<8x128xf32>
    %782 = arith.mulf %781, %288 : vector<8x128xf32>
    %783 = arith.addf %779, %782 : vector<8x128xf32>
    %c165 = arith.constant 165 : index
    %784 = memref.load %arg4[%c165] : memref<200xf32, #tpu.memory_space<smem>>
    %785 = vector.broadcast %784 : f32 to vector<8x128xf32>
    %786 = arith.mulf %785, %331 : vector<8x128xf32>
    %787 = arith.addf %783, %786 : vector<8x128xf32>
    %c166 = arith.constant 166 : index
    %788 = memref.load %arg4[%c166] : memref<200xf32, #tpu.memory_space<smem>>
    %789 = vector.broadcast %788 : f32 to vector<8x128xf32>
    %790 = arith.mulf %789, %374 : vector<8x128xf32>
    %791 = arith.addf %787, %790 : vector<8x128xf32>
    %c167 = arith.constant 167 : index
    %792 = memref.load %arg4[%c167] : memref<200xf32, #tpu.memory_space<smem>>
    %793 = vector.broadcast %792 : f32 to vector<8x128xf32>
    %794 = arith.mulf %793, %417 : vector<8x128xf32>
    %795 = arith.addf %791, %794 : vector<8x128xf32>
    %c168 = arith.constant 168 : index
    %796 = memref.load %arg4[%c168] : memref<200xf32, #tpu.memory_space<smem>>
    %797 = vector.broadcast %796 : f32 to vector<8x128xf32>
    %798 = arith.mulf %797, %460 : vector<8x128xf32>
    %799 = arith.addf %795, %798 : vector<8x128xf32>
    %c169 = arith.constant 169 : index
    %800 = memref.load %arg4[%c169] : memref<200xf32, #tpu.memory_space<smem>>
    %801 = vector.broadcast %800 : f32 to vector<8x128xf32>
    %802 = arith.mulf %801, %503 : vector<8x128xf32>
    %803 = arith.addf %799, %802 : vector<8x128xf32>
    %804 = math.tanh %803 : vector<8x128xf32>
    %c170 = arith.constant 170 : index
    %805 = memref.load %arg4[%c170] : memref<200xf32, #tpu.memory_space<smem>>
    %806 = vector.broadcast %805 : f32 to vector<8x128xf32>
    %807 = arith.mulf %806, %116 : vector<8x128xf32>
    %c17_38 = arith.constant 17 : index
    %808 = memref.load %arg5[%c17_38] : memref<20xf32, #tpu.memory_space<smem>>
    %809 = vector.broadcast %808 : f32 to vector<8x128xf32>
    %810 = arith.addf %807, %809 : vector<8x128xf32>
    %c171 = arith.constant 171 : index
    %811 = memref.load %arg4[%c171] : memref<200xf32, #tpu.memory_space<smem>>
    %812 = vector.broadcast %811 : f32 to vector<8x128xf32>
    %813 = arith.mulf %812, %159 : vector<8x128xf32>
    %814 = arith.addf %810, %813 : vector<8x128xf32>
    %c172 = arith.constant 172 : index
    %815 = memref.load %arg4[%c172] : memref<200xf32, #tpu.memory_space<smem>>
    %816 = vector.broadcast %815 : f32 to vector<8x128xf32>
    %817 = arith.mulf %816, %202 : vector<8x128xf32>
    %818 = arith.addf %814, %817 : vector<8x128xf32>
    %c173 = arith.constant 173 : index
    %819 = memref.load %arg4[%c173] : memref<200xf32, #tpu.memory_space<smem>>
    %820 = vector.broadcast %819 : f32 to vector<8x128xf32>
    %821 = arith.mulf %820, %245 : vector<8x128xf32>
    %822 = arith.addf %818, %821 : vector<8x128xf32>
    %c174 = arith.constant 174 : index
    %823 = memref.load %arg4[%c174] : memref<200xf32, #tpu.memory_space<smem>>
    %824 = vector.broadcast %823 : f32 to vector<8x128xf32>
    %825 = arith.mulf %824, %288 : vector<8x128xf32>
    %826 = arith.addf %822, %825 : vector<8x128xf32>
    %c175 = arith.constant 175 : index
    %827 = memref.load %arg4[%c175] : memref<200xf32, #tpu.memory_space<smem>>
    %828 = vector.broadcast %827 : f32 to vector<8x128xf32>
    %829 = arith.mulf %828, %331 : vector<8x128xf32>
    %830 = arith.addf %826, %829 : vector<8x128xf32>
    %c176 = arith.constant 176 : index
    %831 = memref.load %arg4[%c176] : memref<200xf32, #tpu.memory_space<smem>>
    %832 = vector.broadcast %831 : f32 to vector<8x128xf32>
    %833 = arith.mulf %832, %374 : vector<8x128xf32>
    %834 = arith.addf %830, %833 : vector<8x128xf32>
    %c177 = arith.constant 177 : index
    %835 = memref.load %arg4[%c177] : memref<200xf32, #tpu.memory_space<smem>>
    %836 = vector.broadcast %835 : f32 to vector<8x128xf32>
    %837 = arith.mulf %836, %417 : vector<8x128xf32>
    %838 = arith.addf %834, %837 : vector<8x128xf32>
    %c178 = arith.constant 178 : index
    %839 = memref.load %arg4[%c178] : memref<200xf32, #tpu.memory_space<smem>>
    %840 = vector.broadcast %839 : f32 to vector<8x128xf32>
    %841 = arith.mulf %840, %460 : vector<8x128xf32>
    %842 = arith.addf %838, %841 : vector<8x128xf32>
    %c179 = arith.constant 179 : index
    %843 = memref.load %arg4[%c179] : memref<200xf32, #tpu.memory_space<smem>>
    %844 = vector.broadcast %843 : f32 to vector<8x128xf32>
    %845 = arith.mulf %844, %503 : vector<8x128xf32>
    %846 = arith.addf %842, %845 : vector<8x128xf32>
    %847 = math.tanh %846 : vector<8x128xf32>
    %c180 = arith.constant 180 : index
    %848 = memref.load %arg4[%c180] : memref<200xf32, #tpu.memory_space<smem>>
    %849 = vector.broadcast %848 : f32 to vector<8x128xf32>
    %850 = arith.mulf %849, %116 : vector<8x128xf32>
    %c18_39 = arith.constant 18 : index
    %851 = memref.load %arg5[%c18_39] : memref<20xf32, #tpu.memory_space<smem>>
    %852 = vector.broadcast %851 : f32 to vector<8x128xf32>
    %853 = arith.addf %850, %852 : vector<8x128xf32>
    %c181 = arith.constant 181 : index
    %854 = memref.load %arg4[%c181] : memref<200xf32, #tpu.memory_space<smem>>
    %855 = vector.broadcast %854 : f32 to vector<8x128xf32>
    %856 = arith.mulf %855, %159 : vector<8x128xf32>
    %857 = arith.addf %853, %856 : vector<8x128xf32>
    %c182 = arith.constant 182 : index
    %858 = memref.load %arg4[%c182] : memref<200xf32, #tpu.memory_space<smem>>
    %859 = vector.broadcast %858 : f32 to vector<8x128xf32>
    %860 = arith.mulf %859, %202 : vector<8x128xf32>
    %861 = arith.addf %857, %860 : vector<8x128xf32>
    %c183 = arith.constant 183 : index
    %862 = memref.load %arg4[%c183] : memref<200xf32, #tpu.memory_space<smem>>
    %863 = vector.broadcast %862 : f32 to vector<8x128xf32>
    %864 = arith.mulf %863, %245 : vector<8x128xf32>
    %865 = arith.addf %861, %864 : vector<8x128xf32>
    %c184 = arith.constant 184 : index
    %866 = memref.load %arg4[%c184] : memref<200xf32, #tpu.memory_space<smem>>
    %867 = vector.broadcast %866 : f32 to vector<8x128xf32>
    %868 = arith.mulf %867, %288 : vector<8x128xf32>
    %869 = arith.addf %865, %868 : vector<8x128xf32>
    %c185 = arith.constant 185 : index
    %870 = memref.load %arg4[%c185] : memref<200xf32, #tpu.memory_space<smem>>
    %871 = vector.broadcast %870 : f32 to vector<8x128xf32>
    %872 = arith.mulf %871, %331 : vector<8x128xf32>
    %873 = arith.addf %869, %872 : vector<8x128xf32>
    %c186 = arith.constant 186 : index
    %874 = memref.load %arg4[%c186] : memref<200xf32, #tpu.memory_space<smem>>
    %875 = vector.broadcast %874 : f32 to vector<8x128xf32>
    %876 = arith.mulf %875, %374 : vector<8x128xf32>
    %877 = arith.addf %873, %876 : vector<8x128xf32>
    %c187 = arith.constant 187 : index
    %878 = memref.load %arg4[%c187] : memref<200xf32, #tpu.memory_space<smem>>
    %879 = vector.broadcast %878 : f32 to vector<8x128xf32>
    %880 = arith.mulf %879, %417 : vector<8x128xf32>
    %881 = arith.addf %877, %880 : vector<8x128xf32>
    %c188 = arith.constant 188 : index
    %882 = memref.load %arg4[%c188] : memref<200xf32, #tpu.memory_space<smem>>
    %883 = vector.broadcast %882 : f32 to vector<8x128xf32>
    %884 = arith.mulf %883, %460 : vector<8x128xf32>
    %885 = arith.addf %881, %884 : vector<8x128xf32>
    %c189 = arith.constant 189 : index
    %886 = memref.load %arg4[%c189] : memref<200xf32, #tpu.memory_space<smem>>
    %887 = vector.broadcast %886 : f32 to vector<8x128xf32>
    %888 = arith.mulf %887, %503 : vector<8x128xf32>
    %889 = arith.addf %885, %888 : vector<8x128xf32>
    %890 = math.tanh %889 : vector<8x128xf32>
    %c190 = arith.constant 190 : index
    %891 = memref.load %arg4[%c190] : memref<200xf32, #tpu.memory_space<smem>>
    %892 = vector.broadcast %891 : f32 to vector<8x128xf32>
    %893 = arith.mulf %892, %116 : vector<8x128xf32>
    %c19_40 = arith.constant 19 : index
    %894 = memref.load %arg5[%c19_40] : memref<20xf32, #tpu.memory_space<smem>>
    %895 = vector.broadcast %894 : f32 to vector<8x128xf32>
    %896 = arith.addf %893, %895 : vector<8x128xf32>
    %c191 = arith.constant 191 : index
    %897 = memref.load %arg4[%c191] : memref<200xf32, #tpu.memory_space<smem>>
    %898 = vector.broadcast %897 : f32 to vector<8x128xf32>
    %899 = arith.mulf %898, %159 : vector<8x128xf32>
    %900 = arith.addf %896, %899 : vector<8x128xf32>
    %c192 = arith.constant 192 : index
    %901 = memref.load %arg4[%c192] : memref<200xf32, #tpu.memory_space<smem>>
    %902 = vector.broadcast %901 : f32 to vector<8x128xf32>
    %903 = arith.mulf %902, %202 : vector<8x128xf32>
    %904 = arith.addf %900, %903 : vector<8x128xf32>
    %c193 = arith.constant 193 : index
    %905 = memref.load %arg4[%c193] : memref<200xf32, #tpu.memory_space<smem>>
    %906 = vector.broadcast %905 : f32 to vector<8x128xf32>
    %907 = arith.mulf %906, %245 : vector<8x128xf32>
    %908 = arith.addf %904, %907 : vector<8x128xf32>
    %c194 = arith.constant 194 : index
    %909 = memref.load %arg4[%c194] : memref<200xf32, #tpu.memory_space<smem>>
    %910 = vector.broadcast %909 : f32 to vector<8x128xf32>
    %911 = arith.mulf %910, %288 : vector<8x128xf32>
    %912 = arith.addf %908, %911 : vector<8x128xf32>
    %c195 = arith.constant 195 : index
    %913 = memref.load %arg4[%c195] : memref<200xf32, #tpu.memory_space<smem>>
    %914 = vector.broadcast %913 : f32 to vector<8x128xf32>
    %915 = arith.mulf %914, %331 : vector<8x128xf32>
    %916 = arith.addf %912, %915 : vector<8x128xf32>
    %c196 = arith.constant 196 : index
    %917 = memref.load %arg4[%c196] : memref<200xf32, #tpu.memory_space<smem>>
    %918 = vector.broadcast %917 : f32 to vector<8x128xf32>
    %919 = arith.mulf %918, %374 : vector<8x128xf32>
    %920 = arith.addf %916, %919 : vector<8x128xf32>
    %c197 = arith.constant 197 : index
    %921 = memref.load %arg4[%c197] : memref<200xf32, #tpu.memory_space<smem>>
    %922 = vector.broadcast %921 : f32 to vector<8x128xf32>
    %923 = arith.mulf %922, %417 : vector<8x128xf32>
    %924 = arith.addf %920, %923 : vector<8x128xf32>
    %c198 = arith.constant 198 : index
    %925 = memref.load %arg4[%c198] : memref<200xf32, #tpu.memory_space<smem>>
    %926 = vector.broadcast %925 : f32 to vector<8x128xf32>
    %927 = arith.mulf %926, %460 : vector<8x128xf32>
    %928 = arith.addf %924, %927 : vector<8x128xf32>
    %c199 = arith.constant 199 : index
    %929 = memref.load %arg4[%c199] : memref<200xf32, #tpu.memory_space<smem>>
    %930 = vector.broadcast %929 : f32 to vector<8x128xf32>
    %931 = arith.mulf %930, %503 : vector<8x128xf32>
    %932 = arith.addf %928, %931 : vector<8x128xf32>
    %933 = math.tanh %932 : vector<8x128xf32>
    %c0_41 = arith.constant 0 : index
    %934 = memref.load %arg6[%c0_41] : memref<10xf32, #tpu.memory_space<smem>>
    %935 = vector.broadcast %934 : f32 to vector<8x128xf32>
    %936 = arith.mulf %935, %546 : vector<8x128xf32>
    %c0_42 = arith.constant 0 : index
    %937 = memref.load %arg7[%c0_42] : memref<1xf32, #tpu.memory_space<smem>>
    %938 = vector.broadcast %937 : f32 to vector<8x128xf32>
    %939 = arith.addf %936, %938 : vector<8x128xf32>
    %c1_43 = arith.constant 1 : index
    %940 = memref.load %arg6[%c1_43] : memref<10xf32, #tpu.memory_space<smem>>
    %941 = vector.broadcast %940 : f32 to vector<8x128xf32>
    %942 = arith.mulf %941, %589 : vector<8x128xf32>
    %943 = arith.addf %939, %942 : vector<8x128xf32>
    %c2_44 = arith.constant 2 : index
    %944 = memref.load %arg6[%c2_44] : memref<10xf32, #tpu.memory_space<smem>>
    %945 = vector.broadcast %944 : f32 to vector<8x128xf32>
    %946 = arith.mulf %945, %632 : vector<8x128xf32>
    %947 = arith.addf %943, %946 : vector<8x128xf32>
    %c3_45 = arith.constant 3 : index
    %948 = memref.load %arg6[%c3_45] : memref<10xf32, #tpu.memory_space<smem>>
    %949 = vector.broadcast %948 : f32 to vector<8x128xf32>
    %950 = arith.mulf %949, %675 : vector<8x128xf32>
    %951 = arith.addf %947, %950 : vector<8x128xf32>
    %c4_46 = arith.constant 4 : index
    %952 = memref.load %arg6[%c4_46] : memref<10xf32, #tpu.memory_space<smem>>
    %953 = vector.broadcast %952 : f32 to vector<8x128xf32>
    %954 = arith.mulf %953, %718 : vector<8x128xf32>
    %955 = arith.addf %951, %954 : vector<8x128xf32>
    %c5_47 = arith.constant 5 : index
    %956 = memref.load %arg6[%c5_47] : memref<10xf32, #tpu.memory_space<smem>>
    %957 = vector.broadcast %956 : f32 to vector<8x128xf32>
    %958 = arith.mulf %957, %761 : vector<8x128xf32>
    %959 = arith.addf %955, %958 : vector<8x128xf32>
    %c6_48 = arith.constant 6 : index
    %960 = memref.load %arg6[%c6_48] : memref<10xf32, #tpu.memory_space<smem>>
    %961 = vector.broadcast %960 : f32 to vector<8x128xf32>
    %962 = arith.mulf %961, %804 : vector<8x128xf32>
    %963 = arith.addf %959, %962 : vector<8x128xf32>
    %c7_49 = arith.constant 7 : index
    %964 = memref.load %arg6[%c7_49] : memref<10xf32, #tpu.memory_space<smem>>
    %965 = vector.broadcast %964 : f32 to vector<8x128xf32>
    %966 = arith.mulf %965, %847 : vector<8x128xf32>
    %967 = arith.addf %963, %966 : vector<8x128xf32>
    %c8_50 = arith.constant 8 : index
    %968 = memref.load %arg6[%c8_50] : memref<10xf32, #tpu.memory_space<smem>>
    %969 = vector.broadcast %968 : f32 to vector<8x128xf32>
    %970 = arith.mulf %969, %890 : vector<8x128xf32>
    %971 = arith.addf %967, %970 : vector<8x128xf32>
    %c9_51 = arith.constant 9 : index
    %972 = memref.load %arg6[%c9_51] : memref<10xf32, #tpu.memory_space<smem>>
    %973 = vector.broadcast %972 : f32 to vector<8x128xf32>
    %974 = arith.mulf %973, %933 : vector<8x128xf32>
    %975 = arith.addf %971, %974 : vector<8x128xf32>
    %976 = arith.index_cast %1 : i32 to index
    %c0_52 = arith.constant 0 : index
    %977 = vector.load %arg8[%976, %c0_52] : memref<16x128xf32, #tpu.memory_space<vmem>>, vector<8x128xf32>
    tpu.vector_store %arg8[%976, %c0_52], %975 {strides = array<i32>} : memref<16x128xf32, #tpu.memory_space<vmem>>, vector<8x128xf32>,
    %c1_i32 = arith.constant 1 : i32
    %c8_i32_53 = arith.constant 8 : i32
    %978 = arith.muli %c1_i32, %c8_i32_53 : i32
    %979 = tpu.assume_multiple %978, 8 : i32
    %980 = arith.index_cast %979 : i32 to index
    %c0_54 = arith.constant 0 : index
    %981 = vector.load %arg1[%980, %c0_54] : memref<16x128xf32, #tpu.memory_space<vmem>>, vector<8x128xf32>
    %c0_55 = arith.constant 0 : index
    %982 = memref.load %arg2[%c0_55] : memref<10xf32, #tpu.memory_space<smem>>
    %983 = vector.broadcast %982 : f32 to vector<8x128xf32>
    %984 = arith.mulf %983, %981 : vector<8x128xf32>
    %c0_56 = arith.constant 0 : index
    %985 = memref.load %arg3[%c0_56] : memref<10xf32, #tpu.memory_space<smem>>
    %986 = vector.broadcast %985 : f32 to vector<8x128xf32>
    %987 = arith.addf %984, %986 : vector<8x128xf32>
    %988 = math.tanh %987 : vector<8x128xf32>
    %c1_57 = arith.constant 1 : index
    %989 = memref.load %arg2[%c1_57] : memref<10xf32, #tpu.memory_space<smem>>
    %990 = vector.broadcast %989 : f32 to vector<8x128xf32>
    %991 = arith.mulf %990, %981 : vector<8x128xf32>
    %c1_58 = arith.constant 1 : index
    %992 = memref.load %arg3[%c1_58] : memref<10xf32, #tpu.memory_space<smem>>
    %993 = vector.broadcast %992 : f32 to vector<8x128xf32>
    %994 = arith.addf %991, %993 : vector<8x128xf32>
    %995 = math.tanh %994 : vector<8x128xf32>
    %c2_59 = arith.constant 2 : index
    %996 = memref.load %arg2[%c2_59] : memref<10xf32, #tpu.memory_space<smem>>
    %997 = vector.broadcast %996 : f32 to vector<8x128xf32>
    %998 = arith.mulf %997, %981 : vector<8x128xf32>
    %c2_60 = arith.constant 2 : index
    %999 = memref.load %arg3[%c2_60] : memref<10xf32, #tpu.memory_space<smem>>
    %1000 = vector.broadcast %999 : f32 to vector<8x128xf32>
    %1001 = arith.addf %998, %1000 : vector<8x128xf32>
    %1002 = math.tanh %1001 : vector<8x128xf32>
    %c3_61 = arith.constant 3 : index
    %1003 = memref.load %arg2[%c3_61] : memref<10xf32, #tpu.memory_space<smem>>
    %1004 = vector.broadcast %1003 : f32 to vector<8x128xf32>
    %1005 = arith.mulf %1004, %981 : vector<8x128xf32>
    %c3_62 = arith.constant 3 : index
    %1006 = memref.load %arg3[%c3_62] : memref<10xf32, #tpu.memory_space<smem>>
    %1007 = vector.broadcast %1006 : f32 to vector<8x128xf32>
    %1008 = arith.addf %1005, %1007 : vector<8x128xf32>
    %1009 = math.tanh %1008 : vector<8x128xf32>
    %c4_63 = arith.constant 4 : index
    %1010 = memref.load %arg2[%c4_63] : memref<10xf32, #tpu.memory_space<smem>>
    %1011 = vector.broadcast %1010 : f32 to vector<8x128xf32>
    %1012 = arith.mulf %1011, %981 : vector<8x128xf32>
    %c4_64 = arith.constant 4 : index
    %1013 = memref.load %arg3[%c4_64] : memref<10xf32, #tpu.memory_space<smem>>
    %1014 = vector.broadcast %1013 : f32 to vector<8x128xf32>
    %1015 = arith.addf %1012, %1014 : vector<8x128xf32>
    %1016 = math.tanh %1015 : vector<8x128xf32>
    %c5_65 = arith.constant 5 : index
    %1017 = memref.load %arg2[%c5_65] : memref<10xf32, #tpu.memory_space<smem>>
    %1018 = vector.broadcast %1017 : f32 to vector<8x128xf32>
    %1019 = arith.mulf %1018, %981 : vector<8x128xf32>
    %c5_66 = arith.constant 5 : index
    %1020 = memref.load %arg3[%c5_66] : memref<10xf32, #tpu.memory_space<smem>>
    %1021 = vector.broadcast %1020 : f32 to vector<8x128xf32>
    %1022 = arith.addf %1019, %1021 : vector<8x128xf32>
    %1023 = math.tanh %1022 : vector<8x128xf32>
    %c6_67 = arith.constant 6 : index
    %1024 = memref.load %arg2[%c6_67] : memref<10xf32, #tpu.memory_space<smem>>
    %1025 = vector.broadcast %1024 : f32 to vector<8x128xf32>
    %1026 = arith.mulf %1025, %981 : vector<8x128xf32>
    %c6_68 = arith.constant 6 : index
    %1027 = memref.load %arg3[%c6_68] : memref<10xf32, #tpu.memory_space<smem>>
    %1028 = vector.broadcast %1027 : f32 to vector<8x128xf32>
    %1029 = arith.addf %1026, %1028 : vector<8x128xf32>
    %1030 = math.tanh %1029 : vector<8x128xf32>
    %c7_69 = arith.constant 7 : index
    %1031 = memref.load %arg2[%c7_69] : memref<10xf32, #tpu.memory_space<smem>>
    %1032 = vector.broadcast %1031 : f32 to vector<8x128xf32>
    %1033 = arith.mulf %1032, %981 : vector<8x128xf32>
    %c7_70 = arith.constant 7 : index
    %1034 = memref.load %arg3[%c7_70] : memref<10xf32, #tpu.memory_space<smem>>
    %1035 = vector.broadcast %1034 : f32 to vector<8x128xf32>
    %1036 = arith.addf %1033, %1035 : vector<8x128xf32>
    %1037 = math.tanh %1036 : vector<8x128xf32>
    %c8_71 = arith.constant 8 : index
    %1038 = memref.load %arg2[%c8_71] : memref<10xf32, #tpu.memory_space<smem>>
    %1039 = vector.broadcast %1038 : f32 to vector<8x128xf32>
    %1040 = arith.mulf %1039, %981 : vector<8x128xf32>
    %c8_72 = arith.constant 8 : index
    %1041 = memref.load %arg3[%c8_72] : memref<10xf32, #tpu.memory_space<smem>>
    %1042 = vector.broadcast %1041 : f32 to vector<8x128xf32>
    %1043 = arith.addf %1040, %1042 : vector<8x128xf32>
    %1044 = math.tanh %1043 : vector<8x128xf32>
    %c9_73 = arith.constant 9 : index
    %1045 = memref.load %arg2[%c9_73] : memref<10xf32, #tpu.memory_space<smem>>
    %1046 = vector.broadcast %1045 : f32 to vector<8x128xf32>
    %1047 = arith.mulf %1046, %981 : vector<8x128xf32>
    %c9_74 = arith.constant 9 : index
    %1048 = memref.load %arg3[%c9_74] : memref<10xf32, #tpu.memory_space<smem>>
    %1049 = vector.broadcast %1048 : f32 to vector<8x128xf32>
    %1050 = arith.addf %1047, %1049 : vector<8x128xf32>
    %1051 = math.tanh %1050 : vector<8x128xf32>
    %c0_75 = arith.constant 0 : index
    %1052 = memref.load %arg4[%c0_75] : memref<200xf32, #tpu.memory_space<smem>>
    %1053 = vector.broadcast %1052 : f32 to vector<8x128xf32>
    %1054 = arith.mulf %1053, %988 : vector<8x128xf32>
    %c0_76 = arith.constant 0 : index
    %1055 = memref.load %arg5[%c0_76] : memref<20xf32, #tpu.memory_space<smem>>
    %1056 = vector.broadcast %1055 : f32 to vector<8x128xf32>
    %1057 = arith.addf %1054, %1056 : vector<8x128xf32>
    %c1_77 = arith.constant 1 : index
    %1058 = memref.load %arg4[%c1_77] : memref<200xf32, #tpu.memory_space<smem>>
    %1059 = vector.broadcast %1058 : f32 to vector<8x128xf32>
    %1060 = arith.mulf %1059, %995 : vector<8x128xf32>
    %1061 = arith.addf %1057, %1060 : vector<8x128xf32>
    %c2_78 = arith.constant 2 : index
    %1062 = memref.load %arg4[%c2_78] : memref<200xf32, #tpu.memory_space<smem>>
    %1063 = vector.broadcast %1062 : f32 to vector<8x128xf32>
    %1064 = arith.mulf %1063, %1002 : vector<8x128xf32>
    %1065 = arith.addf %1061, %1064 : vector<8x128xf32>
    %c3_79 = arith.constant 3 : index
    %1066 = memref.load %arg4[%c3_79] : memref<200xf32, #tpu.memory_space<smem>>
    %1067 = vector.broadcast %1066 : f32 to vector<8x128xf32>
    %1068 = arith.mulf %1067, %1009 : vector<8x128xf32>
    %1069 = arith.addf %1065, %1068 : vector<8x128xf32>
    %c4_80 = arith.constant 4 : index
    %1070 = memref.load %arg4[%c4_80] : memref<200xf32, #tpu.memory_space<smem>>
    %1071 = vector.broadcast %1070 : f32 to vector<8x128xf32>
    %1072 = arith.mulf %1071, %1016 : vector<8x128xf32>
    %1073 = arith.addf %1069, %1072 : vector<8x128xf32>
    %c5_81 = arith.constant 5 : index
    %1074 = memref.load %arg4[%c5_81] : memref<200xf32, #tpu.memory_space<smem>>
    %1075 = vector.broadcast %1074 : f32 to vector<8x128xf32>
    %1076 = arith.mulf %1075, %1023 : vector<8x128xf32>
    %1077 = arith.addf %1073, %1076 : vector<8x128xf32>
    %c6_82 = arith.constant 6 : index
    %1078 = memref.load %arg4[%c6_82] : memref<200xf32, #tpu.memory_space<smem>>
    %1079 = vector.broadcast %1078 : f32 to vector<8x128xf32>
    %1080 = arith.mulf %1079, %1030 : vector<8x128xf32>
    %1081 = arith.addf %1077, %1080 : vector<8x128xf32>
    %c7_83 = arith.constant 7 : index
    %1082 = memref.load %arg4[%c7_83] : memref<200xf32, #tpu.memory_space<smem>>
    %1083 = vector.broadcast %1082 : f32 to vector<8x128xf32>
    %1084 = arith.mulf %1083, %1037 : vector<8x128xf32>
    %1085 = arith.addf %1081, %1084 : vector<8x128xf32>
    %c8_84 = arith.constant 8 : index
    %1086 = memref.load %arg4[%c8_84] : memref<200xf32, #tpu.memory_space<smem>>
    %1087 = vector.broadcast %1086 : f32 to vector<8x128xf32>
    %1088 = arith.mulf %1087, %1044 : vector<8x128xf32>
    %1089 = arith.addf %1085, %1088 : vector<8x128xf32>
    %c9_85 = arith.constant 9 : index
    %1090 = memref.load %arg4[%c9_85] : memref<200xf32, #tpu.memory_space<smem>>
    %1091 = vector.broadcast %1090 : f32 to vector<8x128xf32>
    %1092 = arith.mulf %1091, %1051 : vector<8x128xf32>
    %1093 = arith.addf %1089, %1092 : vector<8x128xf32>
    %1094 = math.tanh %1093 : vector<8x128xf32>
    %c10_86 = arith.constant 10 : index
    %1095 = memref.load %arg4[%c10_86] : memref<200xf32, #tpu.memory_space<smem>>
    %1096 = vector.broadcast %1095 : f32 to vector<8x128xf32>
    %1097 = arith.mulf %1096, %988 : vector<8x128xf32>
    %c1_87 = arith.constant 1 : index
    %1098 = memref.load %arg5[%c1_87] : memref<20xf32, #tpu.memory_space<smem>>
    %1099 = vector.broadcast %1098 : f32 to vector<8x128xf32>
    %1100 = arith.addf %1097, %1099 : vector<8x128xf32>
    %c11_88 = arith.constant 11 : index
    %1101 = memref.load %arg4[%c11_88] : memref<200xf32, #tpu.memory_space<smem>>
    %1102 = vector.broadcast %1101 : f32 to vector<8x128xf32>
    %1103 = arith.mulf %1102, %995 : vector<8x128xf32>
    %1104 = arith.addf %1100, %1103 : vector<8x128xf32>
    %c12_89 = arith.constant 12 : index
    %1105 = memref.load %arg4[%c12_89] : memref<200xf32, #tpu.memory_space<smem>>
    %1106 = vector.broadcast %1105 : f32 to vector<8x128xf32>
    %1107 = arith.mulf %1106, %1002 : vector<8x128xf32>
    %1108 = arith.addf %1104, %1107 : vector<8x128xf32>
    %c13_90 = arith.constant 13 : index
    %1109 = memref.load %arg4[%c13_90] : memref<200xf32, #tpu.memory_space<smem>>
    %1110 = vector.broadcast %1109 : f32 to vector<8x128xf32>
    %1111 = arith.mulf %1110, %1009 : vector<8x128xf32>
    %1112 = arith.addf %1108, %1111 : vector<8x128xf32>
    %c14_91 = arith.constant 14 : index
    %1113 = memref.load %arg4[%c14_91] : memref<200xf32, #tpu.memory_space<smem>>
    %1114 = vector.broadcast %1113 : f32 to vector<8x128xf32>
    %1115 = arith.mulf %1114, %1016 : vector<8x128xf32>
    %1116 = arith.addf %1112, %1115 : vector<8x128xf32>
    %c15_92 = arith.constant 15 : index
    %1117 = memref.load %arg4[%c15_92] : memref<200xf32, #tpu.memory_space<smem>>
    %1118 = vector.broadcast %1117 : f32 to vector<8x128xf32>
    %1119 = arith.mulf %1118, %1023 : vector<8x128xf32>
    %1120 = arith.addf %1116, %1119 : vector<8x128xf32>
    %c16_93 = arith.constant 16 : index
    %1121 = memref.load %arg4[%c16_93] : memref<200xf32, #tpu.memory_space<smem>>
    %1122 = vector.broadcast %1121 : f32 to vector<8x128xf32>
    %1123 = arith.mulf %1122, %1030 : vector<8x128xf32>
    %1124 = arith.addf %1120, %1123 : vector<8x128xf32>
    %c17_94 = arith.constant 17 : index
    %1125 = memref.load %arg4[%c17_94] : memref<200xf32, #tpu.memory_space<smem>>
    %1126 = vector.broadcast %1125 : f32 to vector<8x128xf32>
    %1127 = arith.mulf %1126, %1037 : vector<8x128xf32>
    %1128 = arith.addf %1124, %1127 : vector<8x128xf32>
    %c18_95 = arith.constant 18 : index
    %1129 = memref.load %arg4[%c18_95] : memref<200xf32, #tpu.memory_space<smem>>
    %1130 = vector.broadcast %1129 : f32 to vector<8x128xf32>
    %1131 = arith.mulf %1130, %1044 : vector<8x128xf32>
    %1132 = arith.addf %1128, %1131 : vector<8x128xf32>
    %c19_96 = arith.constant 19 : index
    %1133 = memref.load %arg4[%c19_96] : memref<200xf32, #tpu.memory_space<smem>>
    %1134 = vector.broadcast %1133 : f32 to vector<8x128xf32>
    %1135 = arith.mulf %1134, %1051 : vector<8x128xf32>
    %1136 = arith.addf %1132, %1135 : vector<8x128xf32>
    %1137 = math.tanh %1136 : vector<8x128xf32>
    %c20_97 = arith.constant 20 : index
    %1138 = memref.load %arg4[%c20_97] : memref<200xf32, #tpu.memory_space<smem>>
    %1139 = vector.broadcast %1138 : f32 to vector<8x128xf32>
    %1140 = arith.mulf %1139, %988 : vector<8x128xf32>
    %c2_98 = arith.constant 2 : index
    %1141 = memref.load %arg5[%c2_98] : memref<20xf32, #tpu.memory_space<smem>>
    %1142 = vector.broadcast %1141 : f32 to vector<8x128xf32>
    %1143 = arith.addf %1140, %1142 : vector<8x128xf32>
    %c21_99 = arith.constant 21 : index
    %1144 = memref.load %arg4[%c21_99] : memref<200xf32, #tpu.memory_space<smem>>
    %1145 = vector.broadcast %1144 : f32 to vector<8x128xf32>
    %1146 = arith.mulf %1145, %995 : vector<8x128xf32>
    %1147 = arith.addf %1143, %1146 : vector<8x128xf32>
    %c22_100 = arith.constant 22 : index
    %1148 = memref.load %arg4[%c22_100] : memref<200xf32, #tpu.memory_space<smem>>
    %1149 = vector.broadcast %1148 : f32 to vector<8x128xf32>
    %1150 = arith.mulf %1149, %1002 : vector<8x128xf32>
    %1151 = arith.addf %1147, %1150 : vector<8x128xf32>
    %c23_101 = arith.constant 23 : index
    %1152 = memref.load %arg4[%c23_101] : memref<200xf32, #tpu.memory_space<smem>>
    %1153 = vector.broadcast %1152 : f32 to vector<8x128xf32>
    %1154 = arith.mulf %1153, %1009 : vector<8x128xf32>
    %1155 = arith.addf %1151, %1154 : vector<8x128xf32>
    %c24_102 = arith.constant 24 : index
    %1156 = memref.load %arg4[%c24_102] : memref<200xf32, #tpu.memory_space<smem>>
    %1157 = vector.broadcast %1156 : f32 to vector<8x128xf32>
    %1158 = arith.mulf %1157, %1016 : vector<8x128xf32>
    %1159 = arith.addf %1155, %1158 : vector<8x128xf32>
    %c25_103 = arith.constant 25 : index
    %1160 = memref.load %arg4[%c25_103] : memref<200xf32, #tpu.memory_space<smem>>
    %1161 = vector.broadcast %1160 : f32 to vector<8x128xf32>
    %1162 = arith.mulf %1161, %1023 : vector<8x128xf32>
    %1163 = arith.addf %1159, %1162 : vector<8x128xf32>
    %c26_104 = arith.constant 26 : index
    %1164 = memref.load %arg4[%c26_104] : memref<200xf32, #tpu.memory_space<smem>>
    %1165 = vector.broadcast %1164 : f32 to vector<8x128xf32>
    %1166 = arith.mulf %1165, %1030 : vector<8x128xf32>
    %1167 = arith.addf %1163, %1166 : vector<8x128xf32>
    %c27_105 = arith.constant 27 : index
    %1168 = memref.load %arg4[%c27_105] : memref<200xf32, #tpu.memory_space<smem>>
    %1169 = vector.broadcast %1168 : f32 to vector<8x128xf32>
    %1170 = arith.mulf %1169, %1037 : vector<8x128xf32>
    %1171 = arith.addf %1167, %1170 : vector<8x128xf32>
    %c28_106 = arith.constant 28 : index
    %1172 = memref.load %arg4[%c28_106] : memref<200xf32, #tpu.memory_space<smem>>
    %1173 = vector.broadcast %1172 : f32 to vector<8x128xf32>
    %1174 = arith.mulf %1173, %1044 : vector<8x128xf32>
    %1175 = arith.addf %1171, %1174 : vector<8x128xf32>
    %c29_107 = arith.constant 29 : index
    %1176 = memref.load %arg4[%c29_107] : memref<200xf32, #tpu.memory_space<smem>>
    %1177 = vector.broadcast %1176 : f32 to vector<8x128xf32>
    %1178 = arith.mulf %1177, %1051 : vector<8x128xf32>
    %1179 = arith.addf %1175, %1178 : vector<8x128xf32>
    %1180 = math.tanh %1179 : vector<8x128xf32>
    %c30_108 = arith.constant 30 : index
    %1181 = memref.load %arg4[%c30_108] : memref<200xf32, #tpu.memory_space<smem>>
    %1182 = vector.broadcast %1181 : f32 to vector<8x128xf32>
    %1183 = arith.mulf %1182, %988 : vector<8x128xf32>
    %c3_109 = arith.constant 3 : index
    %1184 = memref.load %arg5[%c3_109] : memref<20xf32, #tpu.memory_space<smem>>
    %1185 = vector.broadcast %1184 : f32 to vector<8x128xf32>
    %1186 = arith.addf %1183, %1185 : vector<8x128xf32>
    %c31_110 = arith.constant 31 : index
    %1187 = memref.load %arg4[%c31_110] : memref<200xf32, #tpu.memory_space<smem>>
    %1188 = vector.broadcast %1187 : f32 to vector<8x128xf32>
    %1189 = arith.mulf %1188, %995 : vector<8x128xf32>
    %1190 = arith.addf %1186, %1189 : vector<8x128xf32>
    %c32_111 = arith.constant 32 : index
    %1191 = memref.load %arg4[%c32_111] : memref<200xf32, #tpu.memory_space<smem>>
    %1192 = vector.broadcast %1191 : f32 to vector<8x128xf32>
    %1193 = arith.mulf %1192, %1002 : vector<8x128xf32>
    %1194 = arith.addf %1190, %1193 : vector<8x128xf32>
    %c33_112 = arith.constant 33 : index
    %1195 = memref.load %arg4[%c33_112] : memref<200xf32, #tpu.memory_space<smem>>
    %1196 = vector.broadcast %1195 : f32 to vector<8x128xf32>
    %1197 = arith.mulf %1196, %1009 : vector<8x128xf32>
    %1198 = arith.addf %1194, %1197 : vector<8x128xf32>
    %c34_113 = arith.constant 34 : index
    %1199 = memref.load %arg4[%c34_113] : memref<200xf32, #tpu.memory_space<smem>>
    %1200 = vector.broadcast %1199 : f32 to vector<8x128xf32>
    %1201 = arith.mulf %1200, %1016 : vector<8x128xf32>
    %1202 = arith.addf %1198, %1201 : vector<8x128xf32>
    %c35_114 = arith.constant 35 : index
    %1203 = memref.load %arg4[%c35_114] : memref<200xf32, #tpu.memory_space<smem>>
    %1204 = vector.broadcast %1203 : f32 to vector<8x128xf32>
    %1205 = arith.mulf %1204, %1023 : vector<8x128xf32>
    %1206 = arith.addf %1202, %1205 : vector<8x128xf32>
    %c36_115 = arith.constant 36 : index
    %1207 = memref.load %arg4[%c36_115] : memref<200xf32, #tpu.memory_space<smem>>
    %1208 = vector.broadcast %1207 : f32 to vector<8x128xf32>
    %1209 = arith.mulf %1208, %1030 : vector<8x128xf32>
    %1210 = arith.addf %1206, %1209 : vector<8x128xf32>
    %c37_116 = arith.constant 37 : index
    %1211 = memref.load %arg4[%c37_116] : memref<200xf32, #tpu.memory_space<smem>>
    %1212 = vector.broadcast %1211 : f32 to vector<8x128xf32>
    %1213 = arith.mulf %1212, %1037 : vector<8x128xf32>
    %1214 = arith.addf %1210, %1213 : vector<8x128xf32>
    %c38_117 = arith.constant 38 : index
    %1215 = memref.load %arg4[%c38_117] : memref<200xf32, #tpu.memory_space<smem>>
    %1216 = vector.broadcast %1215 : f32 to vector<8x128xf32>
    %1217 = arith.mulf %1216, %1044 : vector<8x128xf32>
    %1218 = arith.addf %1214, %1217 : vector<8x128xf32>
    %c39_118 = arith.constant 39 : index
    %1219 = memref.load %arg4[%c39_118] : memref<200xf32, #tpu.memory_space<smem>>
    %1220 = vector.broadcast %1219 : f32 to vector<8x128xf32>
    %1221 = arith.mulf %1220, %1051 : vector<8x128xf32>
    %1222 = arith.addf %1218, %1221 : vector<8x128xf32>
    %1223 = math.tanh %1222 : vector<8x128xf32>
    %c40_119 = arith.constant 40 : index
    %1224 = memref.load %arg4[%c40_119] : memref<200xf32, #tpu.memory_space<smem>>
    %1225 = vector.broadcast %1224 : f32 to vector<8x128xf32>
    %1226 = arith.mulf %1225, %988 : vector<8x128xf32>
    %c4_120 = arith.constant 4 : index
    %1227 = memref.load %arg5[%c4_120] : memref<20xf32, #tpu.memory_space<smem>>
    %1228 = vector.broadcast %1227 : f32 to vector<8x128xf32>
    %1229 = arith.addf %1226, %1228 : vector<8x128xf32>
    %c41_121 = arith.constant 41 : index
    %1230 = memref.load %arg4[%c41_121] : memref<200xf32, #tpu.memory_space<smem>>
    %1231 = vector.broadcast %1230 : f32 to vector<8x128xf32>
    %1232 = arith.mulf %1231, %995 : vector<8x128xf32>
    %1233 = arith.addf %1229, %1232 : vector<8x128xf32>
    %c42_122 = arith.constant 42 : index
    %1234 = memref.load %arg4[%c42_122] : memref<200xf32, #tpu.memory_space<smem>>
    %1235 = vector.broadcast %1234 : f32 to vector<8x128xf32>
    %1236 = arith.mulf %1235, %1002 : vector<8x128xf32>
    %1237 = arith.addf %1233, %1236 : vector<8x128xf32>
    %c43_123 = arith.constant 43 : index
    %1238 = memref.load %arg4[%c43_123] : memref<200xf32, #tpu.memory_space<smem>>
    %1239 = vector.broadcast %1238 : f32 to vector<8x128xf32>
    %1240 = arith.mulf %1239, %1009 : vector<8x128xf32>
    %1241 = arith.addf %1237, %1240 : vector<8x128xf32>
    %c44_124 = arith.constant 44 : index
    %1242 = memref.load %arg4[%c44_124] : memref<200xf32, #tpu.memory_space<smem>>
    %1243 = vector.broadcast %1242 : f32 to vector<8x128xf32>
    %1244 = arith.mulf %1243, %1016 : vector<8x128xf32>
    %1245 = arith.addf %1241, %1244 : vector<8x128xf32>
    %c45_125 = arith.constant 45 : index
    %1246 = memref.load %arg4[%c45_125] : memref<200xf32, #tpu.memory_space<smem>>
    %1247 = vector.broadcast %1246 : f32 to vector<8x128xf32>
    %1248 = arith.mulf %1247, %1023 : vector<8x128xf32>
    %1249 = arith.addf %1245, %1248 : vector<8x128xf32>
    %c46_126 = arith.constant 46 : index
    %1250 = memref.load %arg4[%c46_126] : memref<200xf32, #tpu.memory_space<smem>>
    %1251 = vector.broadcast %1250 : f32 to vector<8x128xf32>
    %1252 = arith.mulf %1251, %1030 : vector<8x128xf32>
    %1253 = arith.addf %1249, %1252 : vector<8x128xf32>
    %c47_127 = arith.constant 47 : index
    %1254 = memref.load %arg4[%c47_127] : memref<200xf32, #tpu.memory_space<smem>>
    %1255 = vector.broadcast %1254 : f32 to vector<8x128xf32>
    %1256 = arith.mulf %1255, %1037 : vector<8x128xf32>
    %1257 = arith.addf %1253, %1256 : vector<8x128xf32>
    %c48_128 = arith.constant 48 : index
    %1258 = memref.load %arg4[%c48_128] : memref<200xf32, #tpu.memory_space<smem>>
    %1259 = vector.broadcast %1258 : f32 to vector<8x128xf32>
    %1260 = arith.mulf %1259, %1044 : vector<8x128xf32>
    %1261 = arith.addf %1257, %1260 : vector<8x128xf32>
    %c49_129 = arith.constant 49 : index
    %1262 = memref.load %arg4[%c49_129] : memref<200xf32, #tpu.memory_space<smem>>
    %1263 = vector.broadcast %1262 : f32 to vector<8x128xf32>
    %1264 = arith.mulf %1263, %1051 : vector<8x128xf32>
    %1265 = arith.addf %1261, %1264 : vector<8x128xf32>
    %1266 = math.tanh %1265 : vector<8x128xf32>
    %c50_130 = arith.constant 50 : index
    %1267 = memref.load %arg4[%c50_130] : memref<200xf32, #tpu.memory_space<smem>>
    %1268 = vector.broadcast %1267 : f32 to vector<8x128xf32>
    %1269 = arith.mulf %1268, %988 : vector<8x128xf32>
    %c5_131 = arith.constant 5 : index
    %1270 = memref.load %arg5[%c5_131] : memref<20xf32, #tpu.memory_space<smem>>
    %1271 = vector.broadcast %1270 : f32 to vector<8x128xf32>
    %1272 = arith.addf %1269, %1271 : vector<8x128xf32>
    %c51_132 = arith.constant 51 : index
    %1273 = memref.load %arg4[%c51_132] : memref<200xf32, #tpu.memory_space<smem>>
    %1274 = vector.broadcast %1273 : f32 to vector<8x128xf32>
    %1275 = arith.mulf %1274, %995 : vector<8x128xf32>
    %1276 = arith.addf %1272, %1275 : vector<8x128xf32>
    %c52_133 = arith.constant 52 : index
    %1277 = memref.load %arg4[%c52_133] : memref<200xf32, #tpu.memory_space<smem>>
    %1278 = vector.broadcast %1277 : f32 to vector<8x128xf32>
    %1279 = arith.mulf %1278, %1002 : vector<8x128xf32>
    %1280 = arith.addf %1276, %1279 : vector<8x128xf32>
    %c53_134 = arith.constant 53 : index
    %1281 = memref.load %arg4[%c53_134] : memref<200xf32, #tpu.memory_space<smem>>
    %1282 = vector.broadcast %1281 : f32 to vector<8x128xf32>
    %1283 = arith.mulf %1282, %1009 : vector<8x128xf32>
    %1284 = arith.addf %1280, %1283 : vector<8x128xf32>
    %c54_135 = arith.constant 54 : index
    %1285 = memref.load %arg4[%c54_135] : memref<200xf32, #tpu.memory_space<smem>>
    %1286 = vector.broadcast %1285 : f32 to vector<8x128xf32>
    %1287 = arith.mulf %1286, %1016 : vector<8x128xf32>
    %1288 = arith.addf %1284, %1287 : vector<8x128xf32>
    %c55_136 = arith.constant 55 : index
    %1289 = memref.load %arg4[%c55_136] : memref<200xf32, #tpu.memory_space<smem>>
    %1290 = vector.broadcast %1289 : f32 to vector<8x128xf32>
    %1291 = arith.mulf %1290, %1023 : vector<8x128xf32>
    %1292 = arith.addf %1288, %1291 : vector<8x128xf32>
    %c56_137 = arith.constant 56 : index
    %1293 = memref.load %arg4[%c56_137] : memref<200xf32, #tpu.memory_space<smem>>
    %1294 = vector.broadcast %1293 : f32 to vector<8x128xf32>
    %1295 = arith.mulf %1294, %1030 : vector<8x128xf32>
    %1296 = arith.addf %1292, %1295 : vector<8x128xf32>
    %c57_138 = arith.constant 57 : index
    %1297 = memref.load %arg4[%c57_138] : memref<200xf32, #tpu.memory_space<smem>>
    %1298 = vector.broadcast %1297 : f32 to vector<8x128xf32>
    %1299 = arith.mulf %1298, %1037 : vector<8x128xf32>
    %1300 = arith.addf %1296, %1299 : vector<8x128xf32>
    %c58_139 = arith.constant 58 : index
    %1301 = memref.load %arg4[%c58_139] : memref<200xf32, #tpu.memory_space<smem>>
    %1302 = vector.broadcast %1301 : f32 to vector<8x128xf32>
    %1303 = arith.mulf %1302, %1044 : vector<8x128xf32>
    %1304 = arith.addf %1300, %1303 : vector<8x128xf32>
    %c59_140 = arith.constant 59 : index
    %1305 = memref.load %arg4[%c59_140] : memref<200xf32, #tpu.memory_space<smem>>
    %1306 = vector.broadcast %1305 : f32 to vector<8x128xf32>
    %1307 = arith.mulf %1306, %1051 : vector<8x128xf32>
    %1308 = arith.addf %1304, %1307 : vector<8x128xf32>
    %1309 = math.tanh %1308 : vector<8x128xf32>
    %c60_141 = arith.constant 60 : index
    %1310 = memref.load %arg4[%c60_141] : memref<200xf32, #tpu.memory_space<smem>>
    %1311 = vector.broadcast %1310 : f32 to vector<8x128xf32>
    %1312 = arith.mulf %1311, %988 : vector<8x128xf32>
    %c6_142 = arith.constant 6 : index
    %1313 = memref.load %arg5[%c6_142] : memref<20xf32, #tpu.memory_space<smem>>
    %1314 = vector.broadcast %1313 : f32 to vector<8x128xf32>
    %1315 = arith.addf %1312, %1314 : vector<8x128xf32>
    %c61_143 = arith.constant 61 : index
    %1316 = memref.load %arg4[%c61_143] : memref<200xf32, #tpu.memory_space<smem>>
    %1317 = vector.broadcast %1316 : f32 to vector<8x128xf32>
    %1318 = arith.mulf %1317, %995 : vector<8x128xf32>
    %1319 = arith.addf %1315, %1318 : vector<8x128xf32>
    %c62_144 = arith.constant 62 : index
    %1320 = memref.load %arg4[%c62_144] : memref<200xf32, #tpu.memory_space<smem>>
    %1321 = vector.broadcast %1320 : f32 to vector<8x128xf32>
    %1322 = arith.mulf %1321, %1002 : vector<8x128xf32>
    %1323 = arith.addf %1319, %1322 : vector<8x128xf32>
    %c63_145 = arith.constant 63 : index
    %1324 = memref.load %arg4[%c63_145] : memref<200xf32, #tpu.memory_space<smem>>
    %1325 = vector.broadcast %1324 : f32 to vector<8x128xf32>
    %1326 = arith.mulf %1325, %1009 : vector<8x128xf32>
    %1327 = arith.addf %1323, %1326 : vector<8x128xf32>
    %c64_146 = arith.constant 64 : index
    %1328 = memref.load %arg4[%c64_146] : memref<200xf32, #tpu.memory_space<smem>>
    %1329 = vector.broadcast %1328 : f32 to vector<8x128xf32>
    %1330 = arith.mulf %1329, %1016 : vector<8x128xf32>
    %1331 = arith.addf %1327, %1330 : vector<8x128xf32>
    %c65_147 = arith.constant 65 : index
    %1332 = memref.load %arg4[%c65_147] : memref<200xf32, #tpu.memory_space<smem>>
    %1333 = vector.broadcast %1332 : f32 to vector<8x128xf32>
    %1334 = arith.mulf %1333, %1023 : vector<8x128xf32>
    %1335 = arith.addf %1331, %1334 : vector<8x128xf32>
    %c66_148 = arith.constant 66 : index
    %1336 = memref.load %arg4[%c66_148] : memref<200xf32, #tpu.memory_space<smem>>
    %1337 = vector.broadcast %1336 : f32 to vector<8x128xf32>
    %1338 = arith.mulf %1337, %1030 : vector<8x128xf32>
    %1339 = arith.addf %1335, %1338 : vector<8x128xf32>
    %c67_149 = arith.constant 67 : index
    %1340 = memref.load %arg4[%c67_149] : memref<200xf32, #tpu.memory_space<smem>>
    %1341 = vector.broadcast %1340 : f32 to vector<8x128xf32>
    %1342 = arith.mulf %1341, %1037 : vector<8x128xf32>
    %1343 = arith.addf %1339, %1342 : vector<8x128xf32>
    %c68_150 = arith.constant 68 : index
    %1344 = memref.load %arg4[%c68_150] : memref<200xf32, #tpu.memory_space<smem>>
    %1345 = vector.broadcast %1344 : f32 to vector<8x128xf32>
    %1346 = arith.mulf %1345, %1044 : vector<8x128xf32>
    %1347 = arith.addf %1343, %1346 : vector<8x128xf32>
    %c69_151 = arith.constant 69 : index
    %1348 = memref.load %arg4[%c69_151] : memref<200xf32, #tpu.memory_space<smem>>
    %1349 = vector.broadcast %1348 : f32 to vector<8x128xf32>
    %1350 = arith.mulf %1349, %1051 : vector<8x128xf32>
    %1351 = arith.addf %1347, %1350 : vector<8x128xf32>
    %1352 = math.tanh %1351 : vector<8x128xf32>
    %c70_152 = arith.constant 70 : index
    %1353 = memref.load %arg4[%c70_152] : memref<200xf32, #tpu.memory_space<smem>>
    %1354 = vector.broadcast %1353 : f32 to vector<8x128xf32>
    %1355 = arith.mulf %1354, %988 : vector<8x128xf32>
    %c7_153 = arith.constant 7 : index
    %1356 = memref.load %arg5[%c7_153] : memref<20xf32, #tpu.memory_space<smem>>
    %1357 = vector.broadcast %1356 : f32 to vector<8x128xf32>
    %1358 = arith.addf %1355, %1357 : vector<8x128xf32>
    %c71_154 = arith.constant 71 : index
    %1359 = memref.load %arg4[%c71_154] : memref<200xf32, #tpu.memory_space<smem>>
    %1360 = vector.broadcast %1359 : f32 to vector<8x128xf32>
    %1361 = arith.mulf %1360, %995 : vector<8x128xf32>
    %1362 = arith.addf %1358, %1361 : vector<8x128xf32>
    %c72_155 = arith.constant 72 : index
    %1363 = memref.load %arg4[%c72_155] : memref<200xf32, #tpu.memory_space<smem>>
    %1364 = vector.broadcast %1363 : f32 to vector<8x128xf32>
    %1365 = arith.mulf %1364, %1002 : vector<8x128xf32>
    %1366 = arith.addf %1362, %1365 : vector<8x128xf32>
    %c73_156 = arith.constant 73 : index
    %1367 = memref.load %arg4[%c73_156] : memref<200xf32, #tpu.memory_space<smem>>
    %1368 = vector.broadcast %1367 : f32 to vector<8x128xf32>
    %1369 = arith.mulf %1368, %1009 : vector<8x128xf32>
    %1370 = arith.addf %1366, %1369 : vector<8x128xf32>
    %c74_157 = arith.constant 74 : index
    %1371 = memref.load %arg4[%c74_157] : memref<200xf32, #tpu.memory_space<smem>>
    %1372 = vector.broadcast %1371 : f32 to vector<8x128xf32>
    %1373 = arith.mulf %1372, %1016 : vector<8x128xf32>
    %1374 = arith.addf %1370, %1373 : vector<8x128xf32>
    %c75_158 = arith.constant 75 : index
    %1375 = memref.load %arg4[%c75_158] : memref<200xf32, #tpu.memory_space<smem>>
    %1376 = vector.broadcast %1375 : f32 to vector<8x128xf32>
    %1377 = arith.mulf %1376, %1023 : vector<8x128xf32>
    %1378 = arith.addf %1374, %1377 : vector<8x128xf32>
    %c76_159 = arith.constant 76 : index
    %1379 = memref.load %arg4[%c76_159] : memref<200xf32, #tpu.memory_space<smem>>
    %1380 = vector.broadcast %1379 : f32 to vector<8x128xf32>
    %1381 = arith.mulf %1380, %1030 : vector<8x128xf32>
    %1382 = arith.addf %1378, %1381 : vector<8x128xf32>
    %c77_160 = arith.constant 77 : index
    %1383 = memref.load %arg4[%c77_160] : memref<200xf32, #tpu.memory_space<smem>>
    %1384 = vector.broadcast %1383 : f32 to vector<8x128xf32>
    %1385 = arith.mulf %1384, %1037 : vector<8x128xf32>
    %1386 = arith.addf %1382, %1385 : vector<8x128xf32>
    %c78_161 = arith.constant 78 : index
    %1387 = memref.load %arg4[%c78_161] : memref<200xf32, #tpu.memory_space<smem>>
    %1388 = vector.broadcast %1387 : f32 to vector<8x128xf32>
    %1389 = arith.mulf %1388, %1044 : vector<8x128xf32>
    %1390 = arith.addf %1386, %1389 : vector<8x128xf32>
    %c79_162 = arith.constant 79 : index
    %1391 = memref.load %arg4[%c79_162] : memref<200xf32, #tpu.memory_space<smem>>
    %1392 = vector.broadcast %1391 : f32 to vector<8x128xf32>
    %1393 = arith.mulf %1392, %1051 : vector<8x128xf32>
    %1394 = arith.addf %1390, %1393 : vector<8x128xf32>
    %1395 = math.tanh %1394 : vector<8x128xf32>
    %c80_163 = arith.constant 80 : index
    %1396 = memref.load %arg4[%c80_163] : memref<200xf32, #tpu.memory_space<smem>>
    %1397 = vector.broadcast %1396 : f32 to vector<8x128xf32>
    %1398 = arith.mulf %1397, %988 : vector<8x128xf32>
    %c8_164 = arith.constant 8 : index
    %1399 = memref.load %arg5[%c8_164] : memref<20xf32, #tpu.memory_space<smem>>
    %1400 = vector.broadcast %1399 : f32 to vector<8x128xf32>
    %1401 = arith.addf %1398, %1400 : vector<8x128xf32>
    %c81_165 = arith.constant 81 : index
    %1402 = memref.load %arg4[%c81_165] : memref<200xf32, #tpu.memory_space<smem>>
    %1403 = vector.broadcast %1402 : f32 to vector<8x128xf32>
    %1404 = arith.mulf %1403, %995 : vector<8x128xf32>
    %1405 = arith.addf %1401, %1404 : vector<8x128xf32>
    %c82_166 = arith.constant 82 : index
    %1406 = memref.load %arg4[%c82_166] : memref<200xf32, #tpu.memory_space<smem>>
    %1407 = vector.broadcast %1406 : f32 to vector<8x128xf32>
    %1408 = arith.mulf %1407, %1002 : vector<8x128xf32>
    %1409 = arith.addf %1405, %1408 : vector<8x128xf32>
    %c83_167 = arith.constant 83 : index
    %1410 = memref.load %arg4[%c83_167] : memref<200xf32, #tpu.memory_space<smem>>
    %1411 = vector.broadcast %1410 : f32 to vector<8x128xf32>
    %1412 = arith.mulf %1411, %1009 : vector<8x128xf32>
    %1413 = arith.addf %1409, %1412 : vector<8x128xf32>
    %c84_168 = arith.constant 84 : index
    %1414 = memref.load %arg4[%c84_168] : memref<200xf32, #tpu.memory_space<smem>>
    %1415 = vector.broadcast %1414 : f32 to vector<8x128xf32>
    %1416 = arith.mulf %1415, %1016 : vector<8x128xf32>
    %1417 = arith.addf %1413, %1416 : vector<8x128xf32>
    %c85_169 = arith.constant 85 : index
    %1418 = memref.load %arg4[%c85_169] : memref<200xf32, #tpu.memory_space<smem>>
    %1419 = vector.broadcast %1418 : f32 to vector<8x128xf32>
    %1420 = arith.mulf %1419, %1023 : vector<8x128xf32>
    %1421 = arith.addf %1417, %1420 : vector<8x128xf32>
    %c86_170 = arith.constant 86 : index
    %1422 = memref.load %arg4[%c86_170] : memref<200xf32, #tpu.memory_space<smem>>
    %1423 = vector.broadcast %1422 : f32 to vector<8x128xf32>
    %1424 = arith.mulf %1423, %1030 : vector<8x128xf32>
    %1425 = arith.addf %1421, %1424 : vector<8x128xf32>
    %c87_171 = arith.constant 87 : index
    %1426 = memref.load %arg4[%c87_171] : memref<200xf32, #tpu.memory_space<smem>>
    %1427 = vector.broadcast %1426 : f32 to vector<8x128xf32>
    %1428 = arith.mulf %1427, %1037 : vector<8x128xf32>
    %1429 = arith.addf %1425, %1428 : vector<8x128xf32>
    %c88_172 = arith.constant 88 : index
    %1430 = memref.load %arg4[%c88_172] : memref<200xf32, #tpu.memory_space<smem>>
    %1431 = vector.broadcast %1430 : f32 to vector<8x128xf32>
    %1432 = arith.mulf %1431, %1044 : vector<8x128xf32>
    %1433 = arith.addf %1429, %1432 : vector<8x128xf32>
    %c89_173 = arith.constant 89 : index
    %1434 = memref.load %arg4[%c89_173] : memref<200xf32, #tpu.memory_space<smem>>
    %1435 = vector.broadcast %1434 : f32 to vector<8x128xf32>
    %1436 = arith.mulf %1435, %1051 : vector<8x128xf32>
    %1437 = arith.addf %1433, %1436 : vector<8x128xf32>
    %1438 = math.tanh %1437 : vector<8x128xf32>
    %c90_174 = arith.constant 90 : index
    %1439 = memref.load %arg4[%c90_174] : memref<200xf32, #tpu.memory_space<smem>>
    %1440 = vector.broadcast %1439 : f32 to vector<8x128xf32>
    %1441 = arith.mulf %1440, %988 : vector<8x128xf32>
    %c9_175 = arith.constant 9 : index
    %1442 = memref.load %arg5[%c9_175] : memref<20xf32, #tpu.memory_space<smem>>
    %1443 = vector.broadcast %1442 : f32 to vector<8x128xf32>
    %1444 = arith.addf %1441, %1443 : vector<8x128xf32>
    %c91_176 = arith.constant 91 : index
    %1445 = memref.load %arg4[%c91_176] : memref<200xf32, #tpu.memory_space<smem>>
    %1446 = vector.broadcast %1445 : f32 to vector<8x128xf32>
    %1447 = arith.mulf %1446, %995 : vector<8x128xf32>
    %1448 = arith.addf %1444, %1447 : vector<8x128xf32>
    %c92_177 = arith.constant 92 : index
    %1449 = memref.load %arg4[%c92_177] : memref<200xf32, #tpu.memory_space<smem>>
    %1450 = vector.broadcast %1449 : f32 to vector<8x128xf32>
    %1451 = arith.mulf %1450, %1002 : vector<8x128xf32>
    %1452 = arith.addf %1448, %1451 : vector<8x128xf32>
    %c93_178 = arith.constant 93 : index
    %1453 = memref.load %arg4[%c93_178] : memref<200xf32, #tpu.memory_space<smem>>
    %1454 = vector.broadcast %1453 : f32 to vector<8x128xf32>
    %1455 = arith.mulf %1454, %1009 : vector<8x128xf32>
    %1456 = arith.addf %1452, %1455 : vector<8x128xf32>
    %c94_179 = arith.constant 94 : index
    %1457 = memref.load %arg4[%c94_179] : memref<200xf32, #tpu.memory_space<smem>>
    %1458 = vector.broadcast %1457 : f32 to vector<8x128xf32>
    %1459 = arith.mulf %1458, %1016 : vector<8x128xf32>
    %1460 = arith.addf %1456, %1459 : vector<8x128xf32>
    %c95_180 = arith.constant 95 : index
    %1461 = memref.load %arg4[%c95_180] : memref<200xf32, #tpu.memory_space<smem>>
    %1462 = vector.broadcast %1461 : f32 to vector<8x128xf32>
    %1463 = arith.mulf %1462, %1023 : vector<8x128xf32>
    %1464 = arith.addf %1460, %1463 : vector<8x128xf32>
    %c96_181 = arith.constant 96 : index
    %1465 = memref.load %arg4[%c96_181] : memref<200xf32, #tpu.memory_space<smem>>
    %1466 = vector.broadcast %1465 : f32 to vector<8x128xf32>
    %1467 = arith.mulf %1466, %1030 : vector<8x128xf32>
    %1468 = arith.addf %1464, %1467 : vector<8x128xf32>
    %c97_182 = arith.constant 97 : index
    %1469 = memref.load %arg4[%c97_182] : memref<200xf32, #tpu.memory_space<smem>>
    %1470 = vector.broadcast %1469 : f32 to vector<8x128xf32>
    %1471 = arith.mulf %1470, %1037 : vector<8x128xf32>
    %1472 = arith.addf %1468, %1471 : vector<8x128xf32>
    %c98_183 = arith.constant 98 : index
    %1473 = memref.load %arg4[%c98_183] : memref<200xf32, #tpu.memory_space<smem>>
    %1474 = vector.broadcast %1473 : f32 to vector<8x128xf32>
    %1475 = arith.mulf %1474, %1044 : vector<8x128xf32>
    %1476 = arith.addf %1472, %1475 : vector<8x128xf32>
    %c99_184 = arith.constant 99 : index
    %1477 = memref.load %arg4[%c99_184] : memref<200xf32, #tpu.memory_space<smem>>
    %1478 = vector.broadcast %1477 : f32 to vector<8x128xf32>
    %1479 = arith.mulf %1478, %1051 : vector<8x128xf32>
    %1480 = arith.addf %1476, %1479 : vector<8x128xf32>
    %1481 = math.tanh %1480 : vector<8x128xf32>
    %c100_185 = arith.constant 100 : index
    %1482 = memref.load %arg4[%c100_185] : memref<200xf32, #tpu.memory_space<smem>>
    %1483 = vector.broadcast %1482 : f32 to vector<8x128xf32>
    %1484 = arith.mulf %1483, %1094 : vector<8x128xf32>
    %c10_186 = arith.constant 10 : index
    %1485 = memref.load %arg5[%c10_186] : memref<20xf32, #tpu.memory_space<smem>>
    %1486 = vector.broadcast %1485 : f32 to vector<8x128xf32>
    %1487 = arith.addf %1484, %1486 : vector<8x128xf32>
    %c101_187 = arith.constant 101 : index
    %1488 = memref.load %arg4[%c101_187] : memref<200xf32, #tpu.memory_space<smem>>
    %1489 = vector.broadcast %1488 : f32 to vector<8x128xf32>
    %1490 = arith.mulf %1489, %1137 : vector<8x128xf32>
    %1491 = arith.addf %1487, %1490 : vector<8x128xf32>
    %c102_188 = arith.constant 102 : index
    %1492 = memref.load %arg4[%c102_188] : memref<200xf32, #tpu.memory_space<smem>>
    %1493 = vector.broadcast %1492 : f32 to vector<8x128xf32>
    %1494 = arith.mulf %1493, %1180 : vector<8x128xf32>
    %1495 = arith.addf %1491, %1494 : vector<8x128xf32>
    %c103_189 = arith.constant 103 : index
    %1496 = memref.load %arg4[%c103_189] : memref<200xf32, #tpu.memory_space<smem>>
    %1497 = vector.broadcast %1496 : f32 to vector<8x128xf32>
    %1498 = arith.mulf %1497, %1223 : vector<8x128xf32>
    %1499 = arith.addf %1495, %1498 : vector<8x128xf32>
    %c104_190 = arith.constant 104 : index
    %1500 = memref.load %arg4[%c104_190] : memref<200xf32, #tpu.memory_space<smem>>
    %1501 = vector.broadcast %1500 : f32 to vector<8x128xf32>
    %1502 = arith.mulf %1501, %1266 : vector<8x128xf32>
    %1503 = arith.addf %1499, %1502 : vector<8x128xf32>
    %c105_191 = arith.constant 105 : index
    %1504 = memref.load %arg4[%c105_191] : memref<200xf32, #tpu.memory_space<smem>>
    %1505 = vector.broadcast %1504 : f32 to vector<8x128xf32>
    %1506 = arith.mulf %1505, %1309 : vector<8x128xf32>
    %1507 = arith.addf %1503, %1506 : vector<8x128xf32>
    %c106_192 = arith.constant 106 : index
    %1508 = memref.load %arg4[%c106_192] : memref<200xf32, #tpu.memory_space<smem>>
    %1509 = vector.broadcast %1508 : f32 to vector<8x128xf32>
    %1510 = arith.mulf %1509, %1352 : vector<8x128xf32>
    %1511 = arith.addf %1507, %1510 : vector<8x128xf32>
    %c107_193 = arith.constant 107 : index
    %1512 = memref.load %arg4[%c107_193] : memref<200xf32, #tpu.memory_space<smem>>
    %1513 = vector.broadcast %1512 : f32 to vector<8x128xf32>
    %1514 = arith.mulf %1513, %1395 : vector<8x128xf32>
    %1515 = arith.addf %1511, %1514 : vector<8x128xf32>
    %c108_194 = arith.constant 108 : index
    %1516 = memref.load %arg4[%c108_194] : memref<200xf32, #tpu.memory_space<smem>>
    %1517 = vector.broadcast %1516 : f32 to vector<8x128xf32>
    %1518 = arith.mulf %1517, %1438 : vector<8x128xf32>
    %1519 = arith.addf %1515, %1518 : vector<8x128xf32>
    %c109_195 = arith.constant 109 : index
    %1520 = memref.load %arg4[%c109_195] : memref<200xf32, #tpu.memory_space<smem>>
    %1521 = vector.broadcast %1520 : f32 to vector<8x128xf32>
    %1522 = arith.mulf %1521, %1481 : vector<8x128xf32>
    %1523 = arith.addf %1519, %1522 : vector<8x128xf32>
    %1524 = math.tanh %1523 : vector<8x128xf32>
    %c110_196 = arith.constant 110 : index
    %1525 = memref.load %arg4[%c110_196] : memref<200xf32, #tpu.memory_space<smem>>
    %1526 = vector.broadcast %1525 : f32 to vector<8x128xf32>
    %1527 = arith.mulf %1526, %1094 : vector<8x128xf32>
    %c11_197 = arith.constant 11 : index
    %1528 = memref.load %arg5[%c11_197] : memref<20xf32, #tpu.memory_space<smem>>
    %1529 = vector.broadcast %1528 : f32 to vector<8x128xf32>
    %1530 = arith.addf %1527, %1529 : vector<8x128xf32>
    %c111_198 = arith.constant 111 : index
    %1531 = memref.load %arg4[%c111_198] : memref<200xf32, #tpu.memory_space<smem>>
    %1532 = vector.broadcast %1531 : f32 to vector<8x128xf32>
    %1533 = arith.mulf %1532, %1137 : vector<8x128xf32>
    %1534 = arith.addf %1530, %1533 : vector<8x128xf32>
    %c112_199 = arith.constant 112 : index
    %1535 = memref.load %arg4[%c112_199] : memref<200xf32, #tpu.memory_space<smem>>
    %1536 = vector.broadcast %1535 : f32 to vector<8x128xf32>
    %1537 = arith.mulf %1536, %1180 : vector<8x128xf32>
    %1538 = arith.addf %1534, %1537 : vector<8x128xf32>
    %c113_200 = arith.constant 113 : index
    %1539 = memref.load %arg4[%c113_200] : memref<200xf32, #tpu.memory_space<smem>>
    %1540 = vector.broadcast %1539 : f32 to vector<8x128xf32>
    %1541 = arith.mulf %1540, %1223 : vector<8x128xf32>
    %1542 = arith.addf %1538, %1541 : vector<8x128xf32>
    %c114_201 = arith.constant 114 : index
    %1543 = memref.load %arg4[%c114_201] : memref<200xf32, #tpu.memory_space<smem>>
    %1544 = vector.broadcast %1543 : f32 to vector<8x128xf32>
    %1545 = arith.mulf %1544, %1266 : vector<8x128xf32>
    %1546 = arith.addf %1542, %1545 : vector<8x128xf32>
    %c115_202 = arith.constant 115 : index
    %1547 = memref.load %arg4[%c115_202] : memref<200xf32, #tpu.memory_space<smem>>
    %1548 = vector.broadcast %1547 : f32 to vector<8x128xf32>
    %1549 = arith.mulf %1548, %1309 : vector<8x128xf32>
    %1550 = arith.addf %1546, %1549 : vector<8x128xf32>
    %c116_203 = arith.constant 116 : index
    %1551 = memref.load %arg4[%c116_203] : memref<200xf32, #tpu.memory_space<smem>>
    %1552 = vector.broadcast %1551 : f32 to vector<8x128xf32>
    %1553 = arith.mulf %1552, %1352 : vector<8x128xf32>
    %1554 = arith.addf %1550, %1553 : vector<8x128xf32>
    %c117_204 = arith.constant 117 : index
    %1555 = memref.load %arg4[%c117_204] : memref<200xf32, #tpu.memory_space<smem>>
    %1556 = vector.broadcast %1555 : f32 to vector<8x128xf32>
    %1557 = arith.mulf %1556, %1395 : vector<8x128xf32>
    %1558 = arith.addf %1554, %1557 : vector<8x128xf32>
    %c118_205 = arith.constant 118 : index
    %1559 = memref.load %arg4[%c118_205] : memref<200xf32, #tpu.memory_space<smem>>
    %1560 = vector.broadcast %1559 : f32 to vector<8x128xf32>
    %1561 = arith.mulf %1560, %1438 : vector<8x128xf32>
    %1562 = arith.addf %1558, %1561 : vector<8x128xf32>
    %c119_206 = arith.constant 119 : index
    %1563 = memref.load %arg4[%c119_206] : memref<200xf32, #tpu.memory_space<smem>>
    %1564 = vector.broadcast %1563 : f32 to vector<8x128xf32>
    %1565 = arith.mulf %1564, %1481 : vector<8x128xf32>
    %1566 = arith.addf %1562, %1565 : vector<8x128xf32>
    %1567 = math.tanh %1566 : vector<8x128xf32>
    %c120_207 = arith.constant 120 : index
    %1568 = memref.load %arg4[%c120_207] : memref<200xf32, #tpu.memory_space<smem>>
    %1569 = vector.broadcast %1568 : f32 to vector<8x128xf32>
    %1570 = arith.mulf %1569, %1094 : vector<8x128xf32>
    %c12_208 = arith.constant 12 : index
    %1571 = memref.load %arg5[%c12_208] : memref<20xf32, #tpu.memory_space<smem>>
    %1572 = vector.broadcast %1571 : f32 to vector<8x128xf32>
    %1573 = arith.addf %1570, %1572 : vector<8x128xf32>
    %c121_209 = arith.constant 121 : index
    %1574 = memref.load %arg4[%c121_209] : memref<200xf32, #tpu.memory_space<smem>>
    %1575 = vector.broadcast %1574 : f32 to vector<8x128xf32>
    %1576 = arith.mulf %1575, %1137 : vector<8x128xf32>
    %1577 = arith.addf %1573, %1576 : vector<8x128xf32>
    %c122_210 = arith.constant 122 : index
    %1578 = memref.load %arg4[%c122_210] : memref<200xf32, #tpu.memory_space<smem>>
    %1579 = vector.broadcast %1578 : f32 to vector<8x128xf32>
    %1580 = arith.mulf %1579, %1180 : vector<8x128xf32>
    %1581 = arith.addf %1577, %1580 : vector<8x128xf32>
    %c123_211 = arith.constant 123 : index
    %1582 = memref.load %arg4[%c123_211] : memref<200xf32, #tpu.memory_space<smem>>
    %1583 = vector.broadcast %1582 : f32 to vector<8x128xf32>
    %1584 = arith.mulf %1583, %1223 : vector<8x128xf32>
    %1585 = arith.addf %1581, %1584 : vector<8x128xf32>
    %c124_212 = arith.constant 124 : index
    %1586 = memref.load %arg4[%c124_212] : memref<200xf32, #tpu.memory_space<smem>>
    %1587 = vector.broadcast %1586 : f32 to vector<8x128xf32>
    %1588 = arith.mulf %1587, %1266 : vector<8x128xf32>
    %1589 = arith.addf %1585, %1588 : vector<8x128xf32>
    %c125_213 = arith.constant 125 : index
    %1590 = memref.load %arg4[%c125_213] : memref<200xf32, #tpu.memory_space<smem>>
    %1591 = vector.broadcast %1590 : f32 to vector<8x128xf32>
    %1592 = arith.mulf %1591, %1309 : vector<8x128xf32>
    %1593 = arith.addf %1589, %1592 : vector<8x128xf32>
    %c126_214 = arith.constant 126 : index
    %1594 = memref.load %arg4[%c126_214] : memref<200xf32, #tpu.memory_space<smem>>
    %1595 = vector.broadcast %1594 : f32 to vector<8x128xf32>
    %1596 = arith.mulf %1595, %1352 : vector<8x128xf32>
    %1597 = arith.addf %1593, %1596 : vector<8x128xf32>
    %c127_215 = arith.constant 127 : index
    %1598 = memref.load %arg4[%c127_215] : memref<200xf32, #tpu.memory_space<smem>>
    %1599 = vector.broadcast %1598 : f32 to vector<8x128xf32>
    %1600 = arith.mulf %1599, %1395 : vector<8x128xf32>
    %1601 = arith.addf %1597, %1600 : vector<8x128xf32>
    %c128_216 = arith.constant 128 : index
    %1602 = memref.load %arg4[%c128_216] : memref<200xf32, #tpu.memory_space<smem>>
    %1603 = vector.broadcast %1602 : f32 to vector<8x128xf32>
    %1604 = arith.mulf %1603, %1438 : vector<8x128xf32>
    %1605 = arith.addf %1601, %1604 : vector<8x128xf32>
    %c129_217 = arith.constant 129 : index
    %1606 = memref.load %arg4[%c129_217] : memref<200xf32, #tpu.memory_space<smem>>
    %1607 = vector.broadcast %1606 : f32 to vector<8x128xf32>
    %1608 = arith.mulf %1607, %1481 : vector<8x128xf32>
    %1609 = arith.addf %1605, %1608 : vector<8x128xf32>
    %1610 = math.tanh %1609 : vector<8x128xf32>
    %c130_218 = arith.constant 130 : index
    %1611 = memref.load %arg4[%c130_218] : memref<200xf32, #tpu.memory_space<smem>>
    %1612 = vector.broadcast %1611 : f32 to vector<8x128xf32>
    %1613 = arith.mulf %1612, %1094 : vector<8x128xf32>
    %c13_219 = arith.constant 13 : index
    %1614 = memref.load %arg5[%c13_219] : memref<20xf32, #tpu.memory_space<smem>>
    %1615 = vector.broadcast %1614 : f32 to vector<8x128xf32>
    %1616 = arith.addf %1613, %1615 : vector<8x128xf32>
    %c131_220 = arith.constant 131 : index
    %1617 = memref.load %arg4[%c131_220] : memref<200xf32, #tpu.memory_space<smem>>
    %1618 = vector.broadcast %1617 : f32 to vector<8x128xf32>
    %1619 = arith.mulf %1618, %1137 : vector<8x128xf32>
    %1620 = arith.addf %1616, %1619 : vector<8x128xf32>
    %c132_221 = arith.constant 132 : index
    %1621 = memref.load %arg4[%c132_221] : memref<200xf32, #tpu.memory_space<smem>>
    %1622 = vector.broadcast %1621 : f32 to vector<8x128xf32>
    %1623 = arith.mulf %1622, %1180 : vector<8x128xf32>
    %1624 = arith.addf %1620, %1623 : vector<8x128xf32>
    %c133_222 = arith.constant 133 : index
    %1625 = memref.load %arg4[%c133_222] : memref<200xf32, #tpu.memory_space<smem>>
    %1626 = vector.broadcast %1625 : f32 to vector<8x128xf32>
    %1627 = arith.mulf %1626, %1223 : vector<8x128xf32>
    %1628 = arith.addf %1624, %1627 : vector<8x128xf32>
    %c134_223 = arith.constant 134 : index
    %1629 = memref.load %arg4[%c134_223] : memref<200xf32, #tpu.memory_space<smem>>
    %1630 = vector.broadcast %1629 : f32 to vector<8x128xf32>
    %1631 = arith.mulf %1630, %1266 : vector<8x128xf32>
    %1632 = arith.addf %1628, %1631 : vector<8x128xf32>
    %c135_224 = arith.constant 135 : index
    %1633 = memref.load %arg4[%c135_224] : memref<200xf32, #tpu.memory_space<smem>>
    %1634 = vector.broadcast %1633 : f32 to vector<8x128xf32>
    %1635 = arith.mulf %1634, %1309 : vector<8x128xf32>
    %1636 = arith.addf %1632, %1635 : vector<8x128xf32>
    %c136_225 = arith.constant 136 : index
    %1637 = memref.load %arg4[%c136_225] : memref<200xf32, #tpu.memory_space<smem>>
    %1638 = vector.broadcast %1637 : f32 to vector<8x128xf32>
    %1639 = arith.mulf %1638, %1352 : vector<8x128xf32>
    %1640 = arith.addf %1636, %1639 : vector<8x128xf32>
    %c137_226 = arith.constant 137 : index
    %1641 = memref.load %arg4[%c137_226] : memref<200xf32, #tpu.memory_space<smem>>
    %1642 = vector.broadcast %1641 : f32 to vector<8x128xf32>
    %1643 = arith.mulf %1642, %1395 : vector<8x128xf32>
    %1644 = arith.addf %1640, %1643 : vector<8x128xf32>
    %c138_227 = arith.constant 138 : index
    %1645 = memref.load %arg4[%c138_227] : memref<200xf32, #tpu.memory_space<smem>>
    %1646 = vector.broadcast %1645 : f32 to vector<8x128xf32>
    %1647 = arith.mulf %1646, %1438 : vector<8x128xf32>
    %1648 = arith.addf %1644, %1647 : vector<8x128xf32>
    %c139_228 = arith.constant 139 : index
    %1649 = memref.load %arg4[%c139_228] : memref<200xf32, #tpu.memory_space<smem>>
    %1650 = vector.broadcast %1649 : f32 to vector<8x128xf32>
    %1651 = arith.mulf %1650, %1481 : vector<8x128xf32>
    %1652 = arith.addf %1648, %1651 : vector<8x128xf32>
    %1653 = math.tanh %1652 : vector<8x128xf32>
    %c140_229 = arith.constant 140 : index
    %1654 = memref.load %arg4[%c140_229] : memref<200xf32, #tpu.memory_space<smem>>
    %1655 = vector.broadcast %1654 : f32 to vector<8x128xf32>
    %1656 = arith.mulf %1655, %1094 : vector<8x128xf32>
    %c14_230 = arith.constant 14 : index
    %1657 = memref.load %arg5[%c14_230] : memref<20xf32, #tpu.memory_space<smem>>
    %1658 = vector.broadcast %1657 : f32 to vector<8x128xf32>
    %1659 = arith.addf %1656, %1658 : vector<8x128xf32>
    %c141_231 = arith.constant 141 : index
    %1660 = memref.load %arg4[%c141_231] : memref<200xf32, #tpu.memory_space<smem>>
    %1661 = vector.broadcast %1660 : f32 to vector<8x128xf32>
    %1662 = arith.mulf %1661, %1137 : vector<8x128xf32>
    %1663 = arith.addf %1659, %1662 : vector<8x128xf32>
    %c142_232 = arith.constant 142 : index
    %1664 = memref.load %arg4[%c142_232] : memref<200xf32, #tpu.memory_space<smem>>
    %1665 = vector.broadcast %1664 : f32 to vector<8x128xf32>
    %1666 = arith.mulf %1665, %1180 : vector<8x128xf32>
    %1667 = arith.addf %1663, %1666 : vector<8x128xf32>
    %c143_233 = arith.constant 143 : index
    %1668 = memref.load %arg4[%c143_233] : memref<200xf32, #tpu.memory_space<smem>>
    %1669 = vector.broadcast %1668 : f32 to vector<8x128xf32>
    %1670 = arith.mulf %1669, %1223 : vector<8x128xf32>
    %1671 = arith.addf %1667, %1670 : vector<8x128xf32>
    %c144_234 = arith.constant 144 : index
    %1672 = memref.load %arg4[%c144_234] : memref<200xf32, #tpu.memory_space<smem>>
    %1673 = vector.broadcast %1672 : f32 to vector<8x128xf32>
    %1674 = arith.mulf %1673, %1266 : vector<8x128xf32>
    %1675 = arith.addf %1671, %1674 : vector<8x128xf32>
    %c145_235 = arith.constant 145 : index
    %1676 = memref.load %arg4[%c145_235] : memref<200xf32, #tpu.memory_space<smem>>
    %1677 = vector.broadcast %1676 : f32 to vector<8x128xf32>
    %1678 = arith.mulf %1677, %1309 : vector<8x128xf32>
    %1679 = arith.addf %1675, %1678 : vector<8x128xf32>
    %c146_236 = arith.constant 146 : index
    %1680 = memref.load %arg4[%c146_236] : memref<200xf32, #tpu.memory_space<smem>>
    %1681 = vector.broadcast %1680 : f32 to vector<8x128xf32>
    %1682 = arith.mulf %1681, %1352 : vector<8x128xf32>
    %1683 = arith.addf %1679, %1682 : vector<8x128xf32>
    %c147_237 = arith.constant 147 : index
    %1684 = memref.load %arg4[%c147_237] : memref<200xf32, #tpu.memory_space<smem>>
    %1685 = vector.broadcast %1684 : f32 to vector<8x128xf32>
    %1686 = arith.mulf %1685, %1395 : vector<8x128xf32>
    %1687 = arith.addf %1683, %1686 : vector<8x128xf32>
    %c148_238 = arith.constant 148 : index
    %1688 = memref.load %arg4[%c148_238] : memref<200xf32, #tpu.memory_space<smem>>
    %1689 = vector.broadcast %1688 : f32 to vector<8x128xf32>
    %1690 = arith.mulf %1689, %1438 : vector<8x128xf32>
    %1691 = arith.addf %1687, %1690 : vector<8x128xf32>
    %c149_239 = arith.constant 149 : index
    %1692 = memref.load %arg4[%c149_239] : memref<200xf32, #tpu.memory_space<smem>>
    %1693 = vector.broadcast %1692 : f32 to vector<8x128xf32>
    %1694 = arith.mulf %1693, %1481 : vector<8x128xf32>
    %1695 = arith.addf %1691, %1694 : vector<8x128xf32>
    %1696 = math.tanh %1695 : vector<8x128xf32>
    %c150_240 = arith.constant 150 : index
    %1697 = memref.load %arg4[%c150_240] : memref<200xf32, #tpu.memory_space<smem>>
    %1698 = vector.broadcast %1697 : f32 to vector<8x128xf32>
    %1699 = arith.mulf %1698, %1094 : vector<8x128xf32>
    %c15_241 = arith.constant 15 : index
    %1700 = memref.load %arg5[%c15_241] : memref<20xf32, #tpu.memory_space<smem>>
    %1701 = vector.broadcast %1700 : f32 to vector<8x128xf32>
    %1702 = arith.addf %1699, %1701 : vector<8x128xf32>
    %c151_242 = arith.constant 151 : index
    %1703 = memref.load %arg4[%c151_242] : memref<200xf32, #tpu.memory_space<smem>>
    %1704 = vector.broadcast %1703 : f32 to vector<8x128xf32>
    %1705 = arith.mulf %1704, %1137 : vector<8x128xf32>
    %1706 = arith.addf %1702, %1705 : vector<8x128xf32>
    %c152_243 = arith.constant 152 : index
    %1707 = memref.load %arg4[%c152_243] : memref<200xf32, #tpu.memory_space<smem>>
    %1708 = vector.broadcast %1707 : f32 to vector<8x128xf32>
    %1709 = arith.mulf %1708, %1180 : vector<8x128xf32>
    %1710 = arith.addf %1706, %1709 : vector<8x128xf32>
    %c153_244 = arith.constant 153 : index
    %1711 = memref.load %arg4[%c153_244] : memref<200xf32, #tpu.memory_space<smem>>
    %1712 = vector.broadcast %1711 : f32 to vector<8x128xf32>
    %1713 = arith.mulf %1712, %1223 : vector<8x128xf32>
    %1714 = arith.addf %1710, %1713 : vector<8x128xf32>
    %c154_245 = arith.constant 154 : index
    %1715 = memref.load %arg4[%c154_245] : memref<200xf32, #tpu.memory_space<smem>>
    %1716 = vector.broadcast %1715 : f32 to vector<8x128xf32>
    %1717 = arith.mulf %1716, %1266 : vector<8x128xf32>
    %1718 = arith.addf %1714, %1717 : vector<8x128xf32>
    %c155_246 = arith.constant 155 : index
    %1719 = memref.load %arg4[%c155_246] : memref<200xf32, #tpu.memory_space<smem>>
    %1720 = vector.broadcast %1719 : f32 to vector<8x128xf32>
    %1721 = arith.mulf %1720, %1309 : vector<8x128xf32>
    %1722 = arith.addf %1718, %1721 : vector<8x128xf32>
    %c156_247 = arith.constant 156 : index
    %1723 = memref.load %arg4[%c156_247] : memref<200xf32, #tpu.memory_space<smem>>
    %1724 = vector.broadcast %1723 : f32 to vector<8x128xf32>
    %1725 = arith.mulf %1724, %1352 : vector<8x128xf32>
    %1726 = arith.addf %1722, %1725 : vector<8x128xf32>
    %c157_248 = arith.constant 157 : index
    %1727 = memref.load %arg4[%c157_248] : memref<200xf32, #tpu.memory_space<smem>>
    %1728 = vector.broadcast %1727 : f32 to vector<8x128xf32>
    %1729 = arith.mulf %1728, %1395 : vector<8x128xf32>
    %1730 = arith.addf %1726, %1729 : vector<8x128xf32>
    %c158_249 = arith.constant 158 : index
    %1731 = memref.load %arg4[%c158_249] : memref<200xf32, #tpu.memory_space<smem>>
    %1732 = vector.broadcast %1731 : f32 to vector<8x128xf32>
    %1733 = arith.mulf %1732, %1438 : vector<8x128xf32>
    %1734 = arith.addf %1730, %1733 : vector<8x128xf32>
    %c159_250 = arith.constant 159 : index
    %1735 = memref.load %arg4[%c159_250] : memref<200xf32, #tpu.memory_space<smem>>
    %1736 = vector.broadcast %1735 : f32 to vector<8x128xf32>
    %1737 = arith.mulf %1736, %1481 : vector<8x128xf32>
    %1738 = arith.addf %1734, %1737 : vector<8x128xf32>
    %1739 = math.tanh %1738 : vector<8x128xf32>
    %c160_251 = arith.constant 160 : index
    %1740 = memref.load %arg4[%c160_251] : memref<200xf32, #tpu.memory_space<smem>>
    %1741 = vector.broadcast %1740 : f32 to vector<8x128xf32>
    %1742 = arith.mulf %1741, %1094 : vector<8x128xf32>
    %c16_252 = arith.constant 16 : index
    %1743 = memref.load %arg5[%c16_252] : memref<20xf32, #tpu.memory_space<smem>>
    %1744 = vector.broadcast %1743 : f32 to vector<8x128xf32>
    %1745 = arith.addf %1742, %1744 : vector<8x128xf32>
    %c161_253 = arith.constant 161 : index
    %1746 = memref.load %arg4[%c161_253] : memref<200xf32, #tpu.memory_space<smem>>
    %1747 = vector.broadcast %1746 : f32 to vector<8x128xf32>
    %1748 = arith.mulf %1747, %1137 : vector<8x128xf32>
    %1749 = arith.addf %1745, %1748 : vector<8x128xf32>
    %c162_254 = arith.constant 162 : index
    %1750 = memref.load %arg4[%c162_254] : memref<200xf32, #tpu.memory_space<smem>>
    %1751 = vector.broadcast %1750 : f32 to vector<8x128xf32>
    %1752 = arith.mulf %1751, %1180 : vector<8x128xf32>
    %1753 = arith.addf %1749, %1752 : vector<8x128xf32>
    %c163_255 = arith.constant 163 : index
    %1754 = memref.load %arg4[%c163_255] : memref<200xf32, #tpu.memory_space<smem>>
    %1755 = vector.broadcast %1754 : f32 to vector<8x128xf32>
    %1756 = arith.mulf %1755, %1223 : vector<8x128xf32>
    %1757 = arith.addf %1753, %1756 : vector<8x128xf32>
    %c164_256 = arith.constant 164 : index
    %1758 = memref.load %arg4[%c164_256] : memref<200xf32, #tpu.memory_space<smem>>
    %1759 = vector.broadcast %1758 : f32 to vector<8x128xf32>
    %1760 = arith.mulf %1759, %1266 : vector<8x128xf32>
    %1761 = arith.addf %1757, %1760 : vector<8x128xf32>
    %c165_257 = arith.constant 165 : index
    %1762 = memref.load %arg4[%c165_257] : memref<200xf32, #tpu.memory_space<smem>>
    %1763 = vector.broadcast %1762 : f32 to vector<8x128xf32>
    %1764 = arith.mulf %1763, %1309 : vector<8x128xf32>
    %1765 = arith.addf %1761, %1764 : vector<8x128xf32>
    %c166_258 = arith.constant 166 : index
    %1766 = memref.load %arg4[%c166_258] : memref<200xf32, #tpu.memory_space<smem>>
    %1767 = vector.broadcast %1766 : f32 to vector<8x128xf32>
    %1768 = arith.mulf %1767, %1352 : vector<8x128xf32>
    %1769 = arith.addf %1765, %1768 : vector<8x128xf32>
    %c167_259 = arith.constant 167 : index
    %1770 = memref.load %arg4[%c167_259] : memref<200xf32, #tpu.memory_space<smem>>
    %1771 = vector.broadcast %1770 : f32 to vector<8x128xf32>
    %1772 = arith.mulf %1771, %1395 : vector<8x128xf32>
    %1773 = arith.addf %1769, %1772 : vector<8x128xf32>
    %c168_260 = arith.constant 168 : index
    %1774 = memref.load %arg4[%c168_260] : memref<200xf32, #tpu.memory_space<smem>>
    %1775 = vector.broadcast %1774 : f32 to vector<8x128xf32>
    %1776 = arith.mulf %1775, %1438 : vector<8x128xf32>
    %1777 = arith.addf %1773, %1776 : vector<8x128xf32>
    %c169_261 = arith.constant 169 : index
    %1778 = memref.load %arg4[%c169_261] : memref<200xf32, #tpu.memory_space<smem>>
    %1779 = vector.broadcast %1778 : f32 to vector<8x128xf32>
    %1780 = arith.mulf %1779, %1481 : vector<8x128xf32>
    %1781 = arith.addf %1777, %1780 : vector<8x128xf32>
    %1782 = math.tanh %1781 : vector<8x128xf32>
    %c170_262 = arith.constant 170 : index
    %1783 = memref.load %arg4[%c170_262] : memref<200xf32, #tpu.memory_space<smem>>
    %1784 = vector.broadcast %1783 : f32 to vector<8x128xf32>
    %1785 = arith.mulf %1784, %1094 : vector<8x128xf32>
    %c17_263 = arith.constant 17 : index
    %1786 = memref.load %arg5[%c17_263] : memref<20xf32, #tpu.memory_space<smem>>
    %1787 = vector.broadcast %1786 : f32 to vector<8x128xf32>
    %1788 = arith.addf %1785, %1787 : vector<8x128xf32>
    %c171_264 = arith.constant 171 : index
    %1789 = memref.load %arg4[%c171_264] : memref<200xf32, #tpu.memory_space<smem>>
    %1790 = vector.broadcast %1789 : f32 to vector<8x128xf32>
    %1791 = arith.mulf %1790, %1137 : vector<8x128xf32>
    %1792 = arith.addf %1788, %1791 : vector<8x128xf32>
    %c172_265 = arith.constant 172 : index
    %1793 = memref.load %arg4[%c172_265] : memref<200xf32, #tpu.memory_space<smem>>
    %1794 = vector.broadcast %1793 : f32 to vector<8x128xf32>
    %1795 = arith.mulf %1794, %1180 : vector<8x128xf32>
    %1796 = arith.addf %1792, %1795 : vector<8x128xf32>
    %c173_266 = arith.constant 173 : index
    %1797 = memref.load %arg4[%c173_266] : memref<200xf32, #tpu.memory_space<smem>>
    %1798 = vector.broadcast %1797 : f32 to vector<8x128xf32>
    %1799 = arith.mulf %1798, %1223 : vector<8x128xf32>
    %1800 = arith.addf %1796, %1799 : vector<8x128xf32>
    %c174_267 = arith.constant 174 : index
    %1801 = memref.load %arg4[%c174_267] : memref<200xf32, #tpu.memory_space<smem>>
    %1802 = vector.broadcast %1801 : f32 to vector<8x128xf32>
    %1803 = arith.mulf %1802, %1266 : vector<8x128xf32>
    %1804 = arith.addf %1800, %1803 : vector<8x128xf32>
    %c175_268 = arith.constant 175 : index
    %1805 = memref.load %arg4[%c175_268] : memref<200xf32, #tpu.memory_space<smem>>
    %1806 = vector.broadcast %1805 : f32 to vector<8x128xf32>
    %1807 = arith.mulf %1806, %1309 : vector<8x128xf32>
    %1808 = arith.addf %1804, %1807 : vector<8x128xf32>
    %c176_269 = arith.constant 176 : index
    %1809 = memref.load %arg4[%c176_269] : memref<200xf32, #tpu.memory_space<smem>>
    %1810 = vector.broadcast %1809 : f32 to vector<8x128xf32>
    %1811 = arith.mulf %1810, %1352 : vector<8x128xf32>
    %1812 = arith.addf %1808, %1811 : vector<8x128xf32>
    %c177_270 = arith.constant 177 : index
    %1813 = memref.load %arg4[%c177_270] : memref<200xf32, #tpu.memory_space<smem>>
    %1814 = vector.broadcast %1813 : f32 to vector<8x128xf32>
    %1815 = arith.mulf %1814, %1395 : vector<8x128xf32>
    %1816 = arith.addf %1812, %1815 : vector<8x128xf32>
    %c178_271 = arith.constant 178 : index
    %1817 = memref.load %arg4[%c178_271] : memref<200xf32, #tpu.memory_space<smem>>
    %1818 = vector.broadcast %1817 : f32 to vector<8x128xf32>
    %1819 = arith.mulf %1818, %1438 : vector<8x128xf32>
    %1820 = arith.addf %1816, %1819 : vector<8x128xf32>
    %c179_272 = arith.constant 179 : index
    %1821 = memref.load %arg4[%c179_272] : memref<200xf32, #tpu.memory_space<smem>>
    %1822 = vector.broadcast %1821 : f32 to vector<8x128xf32>
    %1823 = arith.mulf %1822, %1481 : vector<8x128xf32>
    %1824 = arith.addf %1820, %1823 : vector<8x128xf32>
    %1825 = math.tanh %1824 : vector<8x128xf32>
    %c180_273 = arith.constant 180 : index
    %1826 = memref.load %arg4[%c180_273] : memref<200xf32, #tpu.memory_space<smem>>
    %1827 = vector.broadcast %1826 : f32 to vector<8x128xf32>
    %1828 = arith.mulf %1827, %1094 : vector<8x128xf32>
    %c18_274 = arith.constant 18 : index
    %1829 = memref.load %arg5[%c18_274] : memref<20xf32, #tpu.memory_space<smem>>
    %1830 = vector.broadcast %1829 : f32 to vector<8x128xf32>
    %1831 = arith.addf %1828, %1830 : vector<8x128xf32>
    %c181_275 = arith.constant 181 : index
    %1832 = memref.load %arg4[%c181_275] : memref<200xf32, #tpu.memory_space<smem>>
    %1833 = vector.broadcast %1832 : f32 to vector<8x128xf32>
    %1834 = arith.mulf %1833, %1137 : vector<8x128xf32>
    %1835 = arith.addf %1831, %1834 : vector<8x128xf32>
    %c182_276 = arith.constant 182 : index
    %1836 = memref.load %arg4[%c182_276] : memref<200xf32, #tpu.memory_space<smem>>
    %1837 = vector.broadcast %1836 : f32 to vector<8x128xf32>
    %1838 = arith.mulf %1837, %1180 : vector<8x128xf32>
    %1839 = arith.addf %1835, %1838 : vector<8x128xf32>
    %c183_277 = arith.constant 183 : index
    %1840 = memref.load %arg4[%c183_277] : memref<200xf32, #tpu.memory_space<smem>>
    %1841 = vector.broadcast %1840 : f32 to vector<8x128xf32>
    %1842 = arith.mulf %1841, %1223 : vector<8x128xf32>
    %1843 = arith.addf %1839, %1842 : vector<8x128xf32>
    %c184_278 = arith.constant 184 : index
    %1844 = memref.load %arg4[%c184_278] : memref<200xf32, #tpu.memory_space<smem>>
    %1845 = vector.broadcast %1844 : f32 to vector<8x128xf32>
    %1846 = arith.mulf %1845, %1266 : vector<8x128xf32>
    %1847 = arith.addf %1843, %1846 : vector<8x128xf32>
    %c185_279 = arith.constant 185 : index
    %1848 = memref.load %arg4[%c185_279] : memref<200xf32, #tpu.memory_space<smem>>
    %1849 = vector.broadcast %1848 : f32 to vector<8x128xf32>
    %1850 = arith.mulf %1849, %1309 : vector<8x128xf32>
    %1851 = arith.addf %1847, %1850 : vector<8x128xf32>
    %c186_280 = arith.constant 186 : index
    %1852 = memref.load %arg4[%c186_280] : memref<200xf32, #tpu.memory_space<smem>>
    %1853 = vector.broadcast %1852 : f32 to vector<8x128xf32>
    %1854 = arith.mulf %1853, %1352 : vector<8x128xf32>
    %1855 = arith.addf %1851, %1854 : vector<8x128xf32>
    %c187_281 = arith.constant 187 : index
    %1856 = memref.load %arg4[%c187_281] : memref<200xf32, #tpu.memory_space<smem>>
    %1857 = vector.broadcast %1856 : f32 to vector<8x128xf32>
    %1858 = arith.mulf %1857, %1395 : vector<8x128xf32>
    %1859 = arith.addf %1855, %1858 : vector<8x128xf32>
    %c188_282 = arith.constant 188 : index
    %1860 = memref.load %arg4[%c188_282] : memref<200xf32, #tpu.memory_space<smem>>
    %1861 = vector.broadcast %1860 : f32 to vector<8x128xf32>
    %1862 = arith.mulf %1861, %1438 : vector<8x128xf32>
    %1863 = arith.addf %1859, %1862 : vector<8x128xf32>
    %c189_283 = arith.constant 189 : index
    %1864 = memref.load %arg4[%c189_283] : memref<200xf32, #tpu.memory_space<smem>>
    %1865 = vector.broadcast %1864 : f32 to vector<8x128xf32>
    %1866 = arith.mulf %1865, %1481 : vector<8x128xf32>
    %1867 = arith.addf %1863, %1866 : vector<8x128xf32>
    %1868 = math.tanh %1867 : vector<8x128xf32>
    %c190_284 = arith.constant 190 : index
    %1869 = memref.load %arg4[%c190_284] : memref<200xf32, #tpu.memory_space<smem>>
    %1870 = vector.broadcast %1869 : f32 to vector<8x128xf32>
    %1871 = arith.mulf %1870, %1094 : vector<8x128xf32>
    %c19_285 = arith.constant 19 : index
    %1872 = memref.load %arg5[%c19_285] : memref<20xf32, #tpu.memory_space<smem>>
    %1873 = vector.broadcast %1872 : f32 to vector<8x128xf32>
    %1874 = arith.addf %1871, %1873 : vector<8x128xf32>
    %c191_286 = arith.constant 191 : index
    %1875 = memref.load %arg4[%c191_286] : memref<200xf32, #tpu.memory_space<smem>>
    %1876 = vector.broadcast %1875 : f32 to vector<8x128xf32>
    %1877 = arith.mulf %1876, %1137 : vector<8x128xf32>
    %1878 = arith.addf %1874, %1877 : vector<8x128xf32>
    %c192_287 = arith.constant 192 : index
    %1879 = memref.load %arg4[%c192_287] : memref<200xf32, #tpu.memory_space<smem>>
    %1880 = vector.broadcast %1879 : f32 to vector<8x128xf32>
    %1881 = arith.mulf %1880, %1180 : vector<8x128xf32>
    %1882 = arith.addf %1878, %1881 : vector<8x128xf32>
    %c193_288 = arith.constant 193 : index
    %1883 = memref.load %arg4[%c193_288] : memref<200xf32, #tpu.memory_space<smem>>
    %1884 = vector.broadcast %1883 : f32 to vector<8x128xf32>
    %1885 = arith.mulf %1884, %1223 : vector<8x128xf32>
    %1886 = arith.addf %1882, %1885 : vector<8x128xf32>
    %c194_289 = arith.constant 194 : index
    %1887 = memref.load %arg4[%c194_289] : memref<200xf32, #tpu.memory_space<smem>>
    %1888 = vector.broadcast %1887 : f32 to vector<8x128xf32>
    %1889 = arith.mulf %1888, %1266 : vector<8x128xf32>
    %1890 = arith.addf %1886, %1889 : vector<8x128xf32>
    %c195_290 = arith.constant 195 : index
    %1891 = memref.load %arg4[%c195_290] : memref<200xf32, #tpu.memory_space<smem>>
    %1892 = vector.broadcast %1891 : f32 to vector<8x128xf32>
    %1893 = arith.mulf %1892, %1309 : vector<8x128xf32>
    %1894 = arith.addf %1890, %1893 : vector<8x128xf32>
    %c196_291 = arith.constant 196 : index
    %1895 = memref.load %arg4[%c196_291] : memref<200xf32, #tpu.memory_space<smem>>
    %1896 = vector.broadcast %1895 : f32 to vector<8x128xf32>
    %1897 = arith.mulf %1896, %1352 : vector<8x128xf32>
    %1898 = arith.addf %1894, %1897 : vector<8x128xf32>
    %c197_292 = arith.constant 197 : index
    %1899 = memref.load %arg4[%c197_292] : memref<200xf32, #tpu.memory_space<smem>>
    %1900 = vector.broadcast %1899 : f32 to vector<8x128xf32>
    %1901 = arith.mulf %1900, %1395 : vector<8x128xf32>
    %1902 = arith.addf %1898, %1901 : vector<8x128xf32>
    %c198_293 = arith.constant 198 : index
    %1903 = memref.load %arg4[%c198_293] : memref<200xf32, #tpu.memory_space<smem>>
    %1904 = vector.broadcast %1903 : f32 to vector<8x128xf32>
    %1905 = arith.mulf %1904, %1438 : vector<8x128xf32>
    %1906 = arith.addf %1902, %1905 : vector<8x128xf32>
    %c199_294 = arith.constant 199 : index
    %1907 = memref.load %arg4[%c199_294] : memref<200xf32, #tpu.memory_space<smem>>
    %1908 = vector.broadcast %1907 : f32 to vector<8x128xf32>
    %1909 = arith.mulf %1908, %1481 : vector<8x128xf32>
    %1910 = arith.addf %1906, %1909 : vector<8x128xf32>
    %1911 = math.tanh %1910 : vector<8x128xf32>
    %c0_295 = arith.constant 0 : index
    %1912 = memref.load %arg6[%c0_295] : memref<10xf32, #tpu.memory_space<smem>>
    %1913 = vector.broadcast %1912 : f32 to vector<8x128xf32>
    %1914 = arith.mulf %1913, %1524 : vector<8x128xf32>
    %c0_296 = arith.constant 0 : index
    %1915 = memref.load %arg7[%c0_296] : memref<1xf32, #tpu.memory_space<smem>>
    %1916 = vector.broadcast %1915 : f32 to vector<8x128xf32>
    %1917 = arith.addf %1914, %1916 : vector<8x128xf32>
    %c1_297 = arith.constant 1 : index
    %1918 = memref.load %arg6[%c1_297] : memref<10xf32, #tpu.memory_space<smem>>
    %1919 = vector.broadcast %1918 : f32 to vector<8x128xf32>
    %1920 = arith.mulf %1919, %1567 : vector<8x128xf32>
    %1921 = arith.addf %1917, %1920 : vector<8x128xf32>
    %c2_298 = arith.constant 2 : index
    %1922 = memref.load %arg6[%c2_298] : memref<10xf32, #tpu.memory_space<smem>>
    %1923 = vector.broadcast %1922 : f32 to vector<8x128xf32>
    %1924 = arith.mulf %1923, %1610 : vector<8x128xf32>
    %1925 = arith.addf %1921, %1924 : vector<8x128xf32>
    %c3_299 = arith.constant 3 : index
    %1926 = memref.load %arg6[%c3_299] : memref<10xf32, #tpu.memory_space<smem>>
    %1927 = vector.broadcast %1926 : f32 to vector<8x128xf32>
    %1928 = arith.mulf %1927, %1653 : vector<8x128xf32>
    %1929 = arith.addf %1925, %1928 : vector<8x128xf32>
    %c4_300 = arith.constant 4 : index
    %1930 = memref.load %arg6[%c4_300] : memref<10xf32, #tpu.memory_space<smem>>
    %1931 = vector.broadcast %1930 : f32 to vector<8x128xf32>
    %1932 = arith.mulf %1931, %1696 : vector<8x128xf32>
    %1933 = arith.addf %1929, %1932 : vector<8x128xf32>
    %c5_301 = arith.constant 5 : index
    %1934 = memref.load %arg6[%c5_301] : memref<10xf32, #tpu.memory_space<smem>>
    %1935 = vector.broadcast %1934 : f32 to vector<8x128xf32>
    %1936 = arith.mulf %1935, %1739 : vector<8x128xf32>
    %1937 = arith.addf %1933, %1936 : vector<8x128xf32>
    %c6_302 = arith.constant 6 : index
    %1938 = memref.load %arg6[%c6_302] : memref<10xf32, #tpu.memory_space<smem>>
    %1939 = vector.broadcast %1938 : f32 to vector<8x128xf32>
    %1940 = arith.mulf %1939, %1782 : vector<8x128xf32>
    %1941 = arith.addf %1937, %1940 : vector<8x128xf32>
    %c7_303 = arith.constant 7 : index
    %1942 = memref.load %arg6[%c7_303] : memref<10xf32, #tpu.memory_space<smem>>
    %1943 = vector.broadcast %1942 : f32 to vector<8x128xf32>
    %1944 = arith.mulf %1943, %1825 : vector<8x128xf32>
    %1945 = arith.addf %1941, %1944 : vector<8x128xf32>
    %c8_304 = arith.constant 8 : index
    %1946 = memref.load %arg6[%c8_304] : memref<10xf32, #tpu.memory_space<smem>>
    %1947 = vector.broadcast %1946 : f32 to vector<8x128xf32>
    %1948 = arith.mulf %1947, %1868 : vector<8x128xf32>
    %1949 = arith.addf %1945, %1948 : vector<8x128xf32>
    %c9_305 = arith.constant 9 : index
    %1950 = memref.load %arg6[%c9_305] : memref<10xf32, #tpu.memory_space<smem>>
    %1951 = vector.broadcast %1950 : f32 to vector<8x128xf32>
    %1952 = arith.mulf %1951, %1911 : vector<8x128xf32>
    %1953 = arith.addf %1949, %1952 : vector<8x128xf32>
    %1954 = arith.index_cast %979 : i32 to index
    %c0_306 = arith.constant 0 : index
    %1955 = vector.load %arg8[%1954, %c0_306] : memref<16x128xf32, #tpu.memory_space<vmem>>, vector<8x128xf32>
    tpu.vector_store %arg8[%1954, %c0_306], %1953 {strides = array<i32>} : memref<16x128xf32, #tpu.memory_space<vmem>>, vector<8x128xf32>,
    %c2_i32 = arith.constant 2 : i32
    return
  }
  func.func @transform_0(%arg0: i32) -> (i32, i32) {
    %c0_i32 = arith.constant 0 : i32
    %c0_i32_0 = arith.constant 0 : i32
    return %arg0, %c0_i32 : i32, i32
  }
  func.func @transform_1(%arg0: i32) -> i32 {
    %c0_i32 = arith.constant 0 : i32
    %c0_i32_0 = arith.constant 0 : i32
    return %c0_i32 : i32
  }
  func.func @transform_2(%arg0: i32) -> i32 {
    %c0_i32 = arith.constant 0 : i32
    %c0_i32_0 = arith.constant 0 : i32
    return %c0_i32 : i32
  }
  func.func @transform_3(%arg0: i32) -> i32 {
    %c0_i32 = arith.constant 0 : i32
    %c0_i32_0 = arith.constant 0 : i32
    return %c0_i32 : i32
  }
  func.func @transform_4(%arg0: i32) -> i32 {
    %c0_i32 = arith.constant 0 : i32
    %c0_i32_0 = arith.constant 0 : i32
    return %c0_i32 : i32
  }
  func.func @transform_5(%arg0: i32) -> i32 {
    %c0_i32 = arith.constant 0 : i32
    %c0_i32_0 = arith.constant 0 : i32
    return %c0_i32 : i32
  }
  func.func @transform_6(%arg0: i32) -> i32 {
    %c0_i32 = arith.constant 0 : i32
    %c0_i32_0 = arith.constant 0 : i32
    return %c0_i32 : i32
  }
  func.func @transform_7(%arg0: i32) -> (i32, i32) {
    %c0_i32 = arith.constant 0 : i32
    %c0_i32_0 = arith.constant 0 : i32
    return %arg0, %c0_i32 : i32, i32
  }
}

</mosaic_0001>

<bundles_post_ra>
// kernel: tpu_custom_call.1
= control target key start
LH: loop header
LB: loop body
LE: loop exit
PB: predicated region body
PF: predicated region fallthrough
CT: control target
= control target key end

     0   :  { %s4903_s0 = inlined_call_operand.hbm [shape: f32[16,128], index: 0, kind: input, shape index: {}]   ;;  %s4904_s1 = inlined_call_operand.vmem [shape: f32[10], index: 1, kind: input, shape index: {}]   ;;  %s4905_s2 = inlined_call_operand.vmem [shape: f32[10], index: 2, kind: input, shape index: {}]   ;;  %s4906_s3 = inlined_call_operand.vmem [shape: f32[200], index: 3, kind: input, shape index: {}]   ;;  %s4907_s4 = inlined_call_operand.vmem [shape: f32[20], index: 4, kind: input, shape index: {}]   ;;  %s4908_s5 = inlined_call_operand.vmem [shape: f32[10], index: 5, kind: input, shape index: {}]   ;;  %s4909_s6 = inlined_call_operand.<no memory space> [shape: f32[1], index: 6, kind: input, shape index: {}]   ;;  %s4910_s7 = inlined_call_operand.hbm [shape: f32[16,128], index: 7, kind: output, shape index: {}]  }
   0x1   :  { %4915 = sst [smem:[#allocation45_spill]] %s4909_s6 }
   0x2   :  { %4916 = sst [smem:[#allocation46_spill]] %s4910_s7 }
   0x3   :  { %13 = vsyncpa [#allocation4], 0 }
   0x4   :  { %14 = vsyncpa [#allocation6], 0 }
   0x5   :  { %15 = vsyncpa [#allocation9], 0 }
   0x6   :  { %16 = vsyncpa [#allocation12], 0  ;;  %s46_s26 = sshll.u32 %s4905_s2, 4  ;;  %s47_s26 = int_to_ptr.vmem [resolvable:$true] %s46_s26 }
   0x7   :  { %17 = vsyncpa [#allocation5], 0  ;;  %s66_s29 = sshll.u32 %s4907_s4, 4  ;;  %s2690_s30 = scalar_lea.vmem %s47_s26, 16  ;;  %s67_s29 = int_to_ptr.vmem [resolvable:$true] %s66_s29 }
   0x8   :  { %p2691_p0 = scmp.ne.s32.totalorder %s47_s26, %s2690_s30  ;;  %p2695_p1 = scmp.lt.s32.totalorder %s47_s26, %s47_s26 }
   0x9   :  { %p2696_p2 = scmp.lt.s32.totalorder %s2690_s30, %s2690_s30 }
   0xb   :  { %p2697_p3 = por %p2696_p2, %p2695_p1 }
   0xd   :  { %p2698_p4 = pnand %p2697_p3, %p2691_p0 }
   0xf   :  { %2701 = shalt.err (!%p2698_p4)
}
  0x10   :  { %s2800_s8 = smov [#allocation8]   ;;  %s2702_s9 = scalar_lea.vmem %s67_s29, 16 }
  0x11   :  { %49 = dma.vmem_to_smem %s47_s26, 16, %s2800_s8, [#allocation9]  }
  0x12   :  { %p2703_p5 = scmp.ne.s32.totalorder %s67_s29, %s2702_s9  ;;  %p2707_p6 = scmp.lt.s32.totalorder %s67_s29, %s67_s29 }
  0x13   :  { %p2708_p7 = scmp.lt.s32.totalorder %s2702_s9, %s2702_s9 }
  0x15   :  { %p2709_p8 = por %p2708_p7, %p2707_p6 }
  0x17   :  { %p2710_p9 = pnand %p2709_p8, %p2703_p5 }
  0x19   :  { %2713 = shalt.err (!%p2710_p9)
}
  0x1a   :  { %s2801_s2 = smov [#allocation11]   ;;  %s2802_s4 = smov [#allocation3]  }
  0x1b   :  { %69 = dma.vmem_to_smem %s67_s29, 16, %s2801_s2, [#allocation12]  }
  0x1c   :  { %s23_s10 = sshll.u32 %s2802_s4, 4  ;;  %s36_s13 = sshll.u32 %s4904_s1, 4  ;;  %s24_s10 = int_to_ptr.vmem [resolvable:$true] %s23_s10  ;;  %s37_s13 = int_to_ptr.vmem [resolvable:$true] %s36_s13 }
  0x1d   :  { %s2722_s14 = scalar_lea.vmem %s24_s10, 256  ;;  %p2727_p11 = scmp.lt.s32.totalorder %s24_s10, %s24_s10 }
  0x1e   :  { %p2723_p10 = scmp.ne.s32.totalorder %s24_s10, %s2722_s14  ;;  %p2728_p12 = scmp.lt.s32.totalorder %s2722_s14, %s2722_s14 }
  0x20   :  { %p2729_p13 = por %p2728_p12, %p2727_p11 }
  0x22   :  { %p2730_p0 = pnand %p2729_p13, %p2723_p10 }
  0x24   :  { %2733 = shalt.err (!%p2730_p0)
}
  0x25   :  { %s4911_s15 = smov 128   ;;  %s4912_s16 = smov 8  }
  0x26   :  { %29 = dma.hbm_to_vmem [thread:$0]  %s4903_s0, 256, %s24_s10, [#allocation4], %s4911_s15, %s4911_s15, %s4912_s16  }
  0x27   :  { %s2734_s19 = scalar_lea.vmem %s37_s13, 16  ;;  %p2739_p2 = scmp.lt.s32.totalorder %s37_s13, %s37_s13 }
  0x28   :  { %p2735_p1 = scmp.ne.s32.totalorder %s37_s13, %s2734_s19  ;;  %p2740_p3 = scmp.lt.s32.totalorder %s2734_s19, %s2734_s19 }
  0x2a   :  { %p2741_p4 = por %p2740_p3, %p2739_p2 }
  0x2c   :  { %p2742_p5 = pnand %p2741_p4, %p2735_p1 }
  0x2e   :  { %2745 = shalt.err (!%p2742_p5)
}
  0x2f   :  { %s2805_s1 = smov [#allocation7]   ;;  %s56_s22 = sshll.u32 %s4906_s3, 4  ;;  %s57_s22 = int_to_ptr.vmem [resolvable:$true] %s56_s22 }
  0x30   :  { %39 = dma.vmem_to_smem %s37_s13, 16, %s2805_s1, [#allocation6]  }
  0x31   :  { %s76_s25 = sshll.u32 %s4908_s5, 4  ;;  %s2746_s0 = scalar_lea.vmem %s57_s22, 32  ;;  %s77_s25 = int_to_ptr.vmem [resolvable:$true] %s76_s25 }
  0x32   :  { %p2747_p6 = scmp.ne.s32.totalorder %s57_s22, %s2746_s0  ;;  %p2751_p7 = scmp.lt.s32.totalorder %s57_s22, %s57_s22 }
  0x33   :  { %p2752_p8 = scmp.lt.s32.totalorder %s2746_s0, %s2746_s0 }
  0x35   :  { %p2753_p9 = por %p2752_p8, %p2751_p7 }
  0x37   :  { %p2754_p10 = pnand %p2753_p9, %p2747_p6 }
  0x39   :  { %2757 = shalt.err (!%p2754_p10)
}
  0x3a   :  { %s2806_s26 = smov [#allocation10]   ;;  %s2758_s27 = scalar_lea.vmem %s77_s25, 16 }
  0x3b   :  { %59 = dma.vmem_to_smem %s57_s22, 32, %s2806_s26, [#allocation9]  }
  0x3c   :  { %p2759_p11 = scmp.ne.s32.totalorder %s77_s25, %s2758_s27  ;;  %p2763_p12 = scmp.lt.s32.totalorder %s77_s25, %s77_s25 }
  0x3d   :  { %p2764_p13 = scmp.lt.s32.totalorder %s2758_s27, %s2758_s27 }
  0x3f   :  { %p2765_p0 = por %p2764_p13, %p2763_p12 }
  0x41   :  { %p2766_p1 = pnand %p2765_p0, %p2759_p11 }
  0x43   :  { %2769 = shalt.err (!%p2766_p1)
}
  0x44   :  { %s2807_s3 = smov [#allocation13]  }
  0x45   :  { %79 = dma.vmem_to_smem %s77_s25, 16, %s2807_s3, [#allocation12]  }
  0x46   :  { %2790 = dma.done.wait [#allocation4], 256  }
  0x47   :  { %2791 = vsyncadd [#allocation4], 4294967040 }
  0x48   :  { %2792 = dma.done.wait [#allocation6], 16  }
  0x49   :  { %2793 = vsyncadd [#allocation6], 4294967280 }
  0x4a   :  { %2794 = dma.done.wait [#allocation9], 48  }
  0x4b   :  { %2795 = vsyncadd [#allocation9], 4294967248 }
  0x4c   :  { %2796 = dma.done.wait [#allocation12], 32  }
  0x4d   :  { %2797 = vsyncadd [#allocation12], 4294967264 }
  0x4e   :  { %100 = sfence }
  0x4f   :  { %s2870_s5 = sld [smem:[#allocation7]]  ;;  %v2950_v0 = vld [vmem:[#allocation3] sm:$0xff] }
  0x50   :  { %s2872_s28 = sld [smem:[#allocation8]] }
  0x51   :  { %s2874_s29 = sld [smem:[#allocation7 + $0x1]] }
  0x52   :  { %s2876_s30 = sld [smem:[#allocation8 + $0x1]] }
  0x53   :  { %s2878_s8 = sld [smem:[#allocation7 + $0x2]] }
  0x54   :  { %s2880_s9 = sld [smem:[#allocation8 + $0x2]] }
  0x55   :  { %s2882_s2 = sld [smem:[#allocation7 + $0x3]]  ;;  %v103_v1 = vstv %s2870_s5 }
  0x56   :  { %s2884_s4 = sld [smem:[#allocation8 + $0x3]]  ;;  %v104_v2 = vmul.f32 %v103_v1, %v2950_v0  ;;  %v106_v3 = vstv %s2872_s28 }
  0x57   :  { %s2886_s10 = sld [smem:[#allocation7 + $0x4]]  ;;  %v110_v4 = vstv %s2874_s29 }
  0x58   :  { %s2888_s11 = sld [smem:[#allocation8 + $0x4]]  ;;  %v107_v5 = vadd.f32 %v106_v3, %v104_v2  ;;  %v111_v6 = vmul.f32 %v110_v4, %v2950_v0  ;;  %v113_v7 = vstv %s2876_s30 }
  0x59   :  { %s2890_s12 = sld [smem:[#allocation7 + $0x5]]  ;;  %v117_v8 = vstv %s2878_s8 }
  0x5a   :  { %s2892_s13 = sld [smem:[#allocation8 + $0x5]]  ;;  %2570 = vtanh.f32 %v107_v5  ;;  %v114_v9 = vadd.f32 %v113_v7, %v111_v6  ;;  %v118_v10 = vmul.f32 %v117_v8, %v2950_v0  ;;  %v120_v11 = vstv %s2880_s9 }
  0x5b   :  { %s2894_s14 = sld [smem:[#allocation7 + $0x6]]  ;;  %v124_v12 = vstv %s2882_s2 }
  0x5c   :  { %s2896_s17 = sld [smem:[#allocation8 + $0x6]]  ;;  %2572 = vtanh.f32 %v114_v9  ;;  %v121_v13 = vadd.f32 %v120_v11, %v118_v10  ;;  %v125_v14 = vmul.f32 %v124_v12, %v2950_v0  ;;  %v127_v15 = vstv %s2884_s4 }
  0x5d   :  { %s2898_s18 = sld [smem:[#allocation7 + $0x7]]  ;;  %v131_v16 = vstv %s2886_s10 }
  0x5e   :  { %s2900_s19 = sld [smem:[#allocation8 + $0x7]]  ;;  %2574 = vtanh.f32 %v121_v13  ;;  %v128_v18 = vadd.f32 %v127_v15, %v125_v14  ;;  %v132_v19 = vmul.f32 %v131_v16, %v2950_v0  ;;  %v134_v20 = vstv %s2888_s11 }
  0x5f   :  { %s2902_s1 = sld [smem:[#allocation7 + $0x8]]  ;;  %v138_v17 = vstv %s2890_s12 }
  0x60   :  { %s2904_s20 = sld [smem:[#allocation8 + $0x8]]  ;;  %v139_v21 = vmul.f32 %v138_v17, %v2950_v0  ;;  %v141_v22 = vstv %s2892_s13  ;;  %2576 = vtanh.f32 %v128_v18  ;;  %v135_v23 = vadd.f32 %v134_v20, %v132_v19 }
  0x61   :  { %s2906_s21 = sld [smem:[#allocation7 + $0x9]]  ;;  %v145_v24 = vstv %s2894_s14 }
  0x62   :  { %s2908_s22 = sld [smem:[#allocation8 + $0x9]]  ;;  %v142_v27 = vadd.f32 %v141_v22, %v139_v21  ;;  %v146_v29 = vmul.f32 %v145_v24, %v2950_v0  ;;  %2578 = vtanh.f32 %v135_v23  ;;  %v148_v31 = vstv %s2896_s17 }
  0x63   :  { %s2910_s23 = sld [smem:[#allocation10]]  ;;  %v152_v30 = vstv %s2898_s18 }
  0x64   :  { %s2912_s24 = sld [smem:[#allocation11]]  ;;  %2580 = vtanh.f32 %v142_v27  ;;  %v153_v38 = vmul.f32 %v152_v30, %v2950_v0  ;;  %v149_v41 = vadd.f32 %v148_v31, %v146_v29  ;;  %v155_v42 = vstv %s2900_s19 }
  0x65   :  { %s2914_s25 = sld [smem:[#allocation10 + $0x1]]  ;;  %v159_v43 = vstv %s2902_s1 }
  0x66   :  { %4917 = sst [smem:[#allocation20_spill]] %s2904_s20  ;;  %v156_v53 = vadd.f32 %v155_v42, %v153_v38  ;;  %v160_v54 = vmul.f32 %v159_v43, %v2950_v0  ;;  %2582 = vtanh.f32 %v149_v41 }
  0x67   :  { %4918 = sst [smem:[#allocation21_spill]] %s2906_s21  ;;  %v3019_v25 = vpop.eup %2570 }
  0x68   :  { %4919 = sst [smem:[#allocation22_spill]] %s2908_s22  ;;  %2584 = vtanh.f32 %v156_v53 }
  0x69   :  { %s2916_s0 = sld [smem:[#allocation10 + $0x2]]  ;;  %v173_v26 = vstv %s2910_s23  ;;  %v3036_v34 = vpop.eup %2572 }
  0x6a   :  { %s2918_s26 = sld [smem:[#allocation10 + $0x3]]  ;;  %v174_v32 = vmul.f32 %v3019_v25, %v173_v26  ;;  %v176_v35 = vstv %s2912_s24 }
  0x6b   :  { %s2920_s27 = sld [smem:[#allocation10 + $0x4]]  ;;  %v179_v36 = vstv %s2914_s25  ;;  %v3058_v49 = vpop.eup %2574 }
  0x6c   :  { %s2922_s3 = sld [smem:[#allocation10 + $0x5]]  ;;  %v177_v45 = vadd.f32 %v176_v35, %v174_v32  ;;  %v180_v46 = vmul.f32 %v3036_v34, %v179_v36 }
  0x6d   :  { %s2924_s15 = sld [smem:[#allocation10 + $0x6]]  ;;  %v3077_v63 = vpop.eup %2576 }
  0x6e   :  { %s2926_s16 = sld [smem:[#allocation10 + $0x7]]  ;;  %v181_v60 = vadd.f32 %v180_v46, %v177_v45 }
  0x6f   :  { %4920 = sst [smem:[#allocation23_spill]] %s2916_s0 }
  0x70   :  { %4921 = sst [smem:[#allocation24_spill]] %s2918_s26 }
  0x71   :  { %4922 = sst [smem:[#allocation25_spill]] %s2920_s27 }
  0x72   :  { %4923 = sst [smem:[#allocation26_spill]] %s2922_s3 }
  0x73   :  { %4924 = sst [smem:[#allocation27_spill]] %s2924_s15 }
  0x74   :  { %4925 = sst [smem:[#allocation28_spill]] %s2926_s16 }
  0x75   :  { %s2928_s7 = sld [smem:[#allocation10 + $0x8]] }
  0x76   :  { %s2930_s6 = sld [smem:[#allocation10 + $0x9]] }
  0x77   :  { %s2932_s22 = sld [smem:[#allocation10 + $0xa]] }
  0x78   :  { %s2934_s21 = sld [smem:[#allocation11 + $0x1]] }
  0x79   :  { %s2936_s26 = sld [smem:[#allocation10 + $0xb]] }
  0x7a   :  { %s2938_s27 = sld [smem:[#allocation10 + $0xc]] }
  0x7b   :  { %4926 = sst [smem:[#allocation29_spill]] %s2928_s7 }
  0x7c   :  { %4927 = sst [smem:[#allocation30_spill]] %s2930_s6 }
  0x7d   :  { %s2940_s20 = sld [smem:[#allocation10 + $0xd]]  ;;  %v216_v28 = vstv %s2932_s22 }
  0x7e   :  { %s2942_s3 = sld [smem:[#allocation10 + $0xe]]  ;;  %v217_v37 = vmul.f32 %v3019_v25, %v216_v28  ;;  %v219_v39 = vstv %s2934_s21 }
  0x7f   :  { %s2944_s15 = sld [smem:[#allocation10 + $0xf]]  ;;  %v222_v40 = vstv %s2936_s26 }
  0x80   :  { %4928 = sst [smem:[#allocation31_spill]] %s2938_s27  ;;  %v220_v51 = vadd.f32 %v219_v39, %v217_v37  ;;  %v223_v52 = vmul.f32 %v3036_v34, %v222_v40 }
  0x81   :  { %s2946_s16 = sld [smem:[#allocation10 + $0x10]] }
  0x82   :  { %s2948_s7 = sld [smem:[#allocation10 + $0x11]]  ;;  %v224_v2 = vadd.f32 %v223_v52, %v220_v51 }
  0x83   :  { %s2953_s6 = sld [smem:[#allocation10 + $0x12]]  ;;  %v230_v6 = vstv %s2940_s20 }
  0x84   :  { %4929 = sst [smem:[#allocation32_spill]] %s2942_s3  ;;  %v231_v16 = vmul.f32 %v3077_v63, %v230_v6 }
  0x85   :  { %4930 = sst [smem:[#allocation33_spill]] %s2944_s15 }
  0x86   :  { %s2955_s0 = sld [smem:[#allocation10 + $0x13]] }
  0x87   :  { %4931 = sst [smem:[#allocation34_spill]] %s2946_s16 }
  0x88   :  { %4932 = sst [smem:[#allocation35_spill]] %s2948_s7 }
  0x89   :  { %4933 = sst [smem:[#allocation36_spill]] %s2953_s6 }
  0x8a   :  { %s2957_s27 = sld [smem:[#allocation10 + $0x14]] }
  0x8b   :  { %s2960_s3 = sld [smem:[#allocation11 + $0x2]] }
  0x8c   :  { %4934 = sst [smem:[#allocation37_spill]] %s2955_s0 }
  0x8d   :  { %s2964_s16 = sld [smem:[#allocation10 + $0x15]] }
  0x8e   :  { %s2966_s7 = sld [smem:[#allocation10 + $0x16]] }
  0x8f   :  { %s2968_s15 = sld [smem:[#allocation10 + $0x17]] }
  0x90   :  { %s2971_s5 = sld [smem:[#allocation10 + $0x18]]  ;;  %v259_v33 = vstv %s2957_s27 }
  0x91   :  { %s2975_s0 = sld [smem:[#allocation10 + $0x19]]  ;;  %v260_v44 = vmul.f32 %v3019_v25, %v259_v33  ;;  %v262_v47 = vstv %s2960_s3 }
  0x92   :  { %s2977_s28 = sld [smem:[#allocation10 + $0x1a]] }
  0x93   :  { %s2979_s29 = sld [smem:[#allocation10 + $0x1b]]  ;;  %v265_v48 = vstv %s2964_s16  ;;  %v263_v58 = vadd.f32 %v262_v47, %v260_v44 }
  0x94   :  { %s2982_s6 = sld [smem:[#allocation10 + $0x1c]]  ;;  %v266_v59 = vmul.f32 %v3036_v34, %v265_v48  ;;  %v269_v62 = vstv %s2966_s7 }
  0x95   :  { %s2988_s30 = sld [smem:[#allocation10 + $0x1e]]  ;;  %v270_v9 = vmul.f32 %v3058_v49, %v269_v62  ;;  %v273_v12 = vstv %s2968_s15 }
  0x96   :  { %4935 = sst [smem:[#allocation38_spill]] %s2971_s5  ;;  %v267_v8 = vadd.f32 %v266_v59, %v263_v58  ;;  %v274_v21 = vmul.f32 %v3077_v63, %v273_v12 }
  0x97   :  { %s2986_s5 = sld [smem:[#allocation10 + $0x1d]]  ;;  %v281_v36 = vstv %s2975_s0 }
  0x98   :  { %4936 = sst [smem:[#allocation39_spill]] %s2977_s28  ;;  %v271_v20 = vadd.f32 %v270_v9, %v267_v8 }
  0x99   :  { %4937 = sst [smem:[#allocation40_spill]] %s2979_s29 }
  0x9a   :  { %4938 = sst [smem:[#allocation41_spill]] %s2982_s6  ;;  %v275_v35 = vadd.f32 %v274_v21, %v271_v20 }
  0x9b   :  { %s2990_s8 = sld [smem:[#allocation11 + $0x3]]  ;;  %v302_v13 = vstv %s2988_s30 }
  0x9c   :  { %s2993_s29 = sld [smem:[#allocation10 + $0x1f]]  ;;  %v303_v23 = vmul.f32 %v3019_v25, %v302_v13 }
  0x9d   :  { %4939 = sst [smem:[#allocation42_spill]] %s2986_s5 }
  0x9e   :  { %s2997_s28 = sld [smem:[#allocation10 + $0x20]] }
  0x9f   :  { %s2999_s9 = sld [smem:[#allocation10 + $0x21]] }
  0xa0   :  { %s3002_s2 = sld [smem:[#allocation10 + $0x22]] }
  0xa1   :  { %s3005_s5 = sld [smem:[#allocation10 + $0x23]]  ;;  %v305_v27 = vstv %s2990_s8 }
  0xa2   :  { %s3008_s6 = sld [smem:[#allocation10 + $0x24]]  ;;  %v308_v28 = vstv %s2993_s29  ;;  %v306_v37 = vadd.f32 %v305_v27, %v303_v23 }
  0xa3   :  { %s3011_s4 = sld [smem:[#allocation10 + $0x25]]  ;;  %v309_v38 = vmul.f32 %v3036_v34, %v308_v28 }
  0xa4   :  { %s3014_s10 = sld [smem:[#allocation10 + $0x26]]  ;;  %v312_v41 = vstv %s2997_s28 }
  0xa5   :  { %s3017_s12 = sld [smem:[#allocation10 + $0x27]]  ;;  %v310_v51 = vadd.f32 %v309_v38, %v306_v37  ;;  %v313_v52 = vmul.f32 %v3058_v49, %v312_v41 }
  0xa6   :  { %s3022_s11 = sld [smem:[#allocation10 + $0x28]] }
  0xa7   :  { %s3029_s13 = sld [smem:[#allocation10 + $0x29]]  ;;  %v324_v20 = vstv %s3005_s5 }
  0xa8   :  { %s3034_s14 = sld [smem:[#allocation10 + $0x2a]] }
  0xa9   :  { %4940 = sst [smem:[#allocation43_spill]] %s3011_s4 }
  0xaa   :  { %s3025_s4 = sld [smem:[#allocation11 + $0x4]] }
  0xab   :  { %s3041_s18 = sld [smem:[#allocation10 + $0x2b]] }
  0xac   :  { %s4942_s22 = sld [smem:[#allocation23_spill]] }
  0xad   :  { %s3046_s17 = sld [smem:[#allocation10 + $0x2c]]  ;;  %v351_v41 = vstv %s3029_s13 }
  0xae   :  { %s4943_s23 = sld [smem:[#allocation31_spill]] }
  0xaf   :  { %s4944_s24 = sld [smem:[#allocation20_spill]] }
  0xb0   :  { %s3051_s25 = sld [smem:[#allocation10 + $0x2d]] }
  0xb1   :  { %4941 = sst [smem:[#allocation44_spill]] %s3041_s18 }
  0xb2   :  { %s4945_s27 = sld [smem:[#allocation21_spill]]  ;;  %v183_v50 = vstv %s4942_s22 }
  0xb3   :  { %s3056_s18 = sld [smem:[#allocation10 + $0x2e]]  ;;  %v184_v61 = vmul.f32 %v3058_v49, %v183_v50 }
  0xb4   :  { %s3062_s19 = sld [smem:[#allocation10 + $0x2f]]  ;;  %v226_v55 = vstv %s4943_s23 }
  0xb5   :  { %s4946_s1 = sld [smem:[#allocation24_spill]]  ;;  %v162_v56 = vstv %s4944_s24  ;;  %v227_v3 = vmul.f32 %v3058_v49, %v226_v55  ;;  %v185_v10 = vadd.f32 %v184_v61, %v181_v60 }
  0xb6   :  { %s3066_s21 = sld [smem:[#allocation10 + $0x30]]  ;;  %v163_v4 = vadd.f32 %v162_v56, %v160_v54  ;;  %v316_v56 = vstv %s2999_s9 }
  0xb7   :  { %s3071_s16 = sld [smem:[#allocation10 + $0x31]]  ;;  %v228_v15 = vadd.f32 %v227_v3, %v224_v2  ;;  %v314_v3 = vadd.f32 %v313_v52, %v310_v51  ;;  %v352_v51 = vmul.f32 %v3036_v34, %v351_v41 }
  0xb8   :  { %v166_v57 = vstv %s4945_s27  ;;  %s4949_s26 = sld [smem:[#allocation22_spill]]  ;;  %2586 = vtanh.f32 %v163_v4  ;;  %v317_v4 = vmul.f32 %v3077_v63, %v316_v56 }
  0xb9   :  { %s3075_s3 = sld [smem:[#allocation10 + $0x32]]  ;;  %v167_v5 = vmul.f32 %v166_v57, %v2950_v0  ;;  %v3096_v0 = vpop.eup %2578  ;;  %v232_v30 = vadd.f32 %v231_v16, %v228_v15 }
  0xba   :  { %s3081_s22 = sld [smem:[#allocation11 + $0x5]]  ;;  %v3105_v19 = vpop.eup %2580  ;;  %v318_v15 = vadd.f32 %v317_v4, %v314_v3 }
  0xbb   :  { %v187_v1 = vstv %s4946_s1  ;;  %s4950_s23 = sld [smem:[#allocation25_spill]]  ;;  %v3133_v42 = vpop.eup %2582  ;;  %v282_v47 = vmul.f32 %v3105_v19, %v281_v36  ;;  %v328_v36 = vstv %s3008_s6 }
  0xbc   :  { %4947 = sst [smem:[#allocation23_spill]] %s3066_s21  ;;  %v188_v11 = vmul.f32 %v3077_v63, %v187_v1  ;;  %v3147_v53 = vpop.eup %2584 }
  0xbd   :  { %4948 = sst [smem:[#allocation31_spill]] %s3071_s16 }
  0xbe   :  { %s3085_s24 = sld [smem:[#allocation10 + $0x33]]  ;;  %v169_v7 = vstv %s4949_s26  ;;  %v189_v24 = vadd.f32 %v188_v11, %v185_v10 }
  0xbf   :  { %s4951_s7 = sld [smem:[#allocation32_spill]]  ;;  %v170_v17 = vadd.f32 %v169_v7, %v167_v5  ;;  %v320_v7 = vstv %s3002_s2  ;;  %v388_v56 = vstv %s3075_s3 }
  0xc0   :  { %s3089_s27 = sld [smem:[#allocation10 + $0x34]]  ;;  %v321_v16 = vmul.f32 %v3096_v0, %v320_v7  ;;  %v389_v3 = vmul.f32 %v3019_v25, %v388_v56  ;;  %v391_v7 = vstv %s3081_s22 }
  0xc1   :  { %s4952_s1 = sld [smem:[#allocation38_spill]]  ;;  %v191_v14 = vstv %s4950_s23  ;;  %2588 = vtanh.f32 %v170_v17 }
  0xc2   :  { %s3094_s16 = sld [smem:[#allocation10 + $0x35]]  ;;  %v192_v26 = vmul.f32 %v3096_v0, %v191_v14 }
  0xc3   :  { %s3100_s20 = sld [smem:[#allocation10 + $0x36]] }
  0xc4   :  { %s4954_s26 = sld [smem:[#allocation26_spill]]  ;;  %v193_v39 = vadd.f32 %v192_v26, %v189_v24  ;;  %v345_v26 = vstv %s3022_s11 }
  0xc5   :  { %v234_v18 = vstv %s4951_s7  ;;  %s3103_s21 = sld [smem:[#allocation10 + $0x37]]  ;;  %v3161_v62 = vpop.eup %2586  ;;  %v346_v37 = vmul.f32 %v3019_v25, %v345_v26 }
  0xc6   :  { %s4956_s15 = sld [smem:[#allocation33_spill]]  ;;  %v235_v31 = vmul.f32 %v3096_v0, %v234_v18 }
  0xc7   :  { %v277_v22 = vstv %s4952_s1  ;;  %s3110_s30 = sld [smem:[#allocation10 + $0x38]] }
  0xc8   :  { %s3115_s23 = sld [smem:[#allocation10 + $0x39]]  ;;  %v278_v33 = vmul.f32 %v3096_v0, %v277_v22  ;;  %v236_v44 = vadd.f32 %v235_v31, %v232_v30  ;;  %v322_v31 = vadd.f32 %v321_v16, %v318_v15  ;;  %v392_v16 = vadd.f32 %v391_v7, %v389_v3 }
  0xc9   :  { %4953 = sst [smem:[#allocation20_spill]] %s3100_s20 }
  0xca   :  { %v195_v29 = vstv %s4954_s26  ;;  %s4959_s7 = sld [smem:[#allocation27_spill]]  ;;  %v279_v48 = vadd.f32 %v278_v33, %v275_v35 }
  0xcb   :  { %4955 = sst [smem:[#allocation21_spill]] %s3103_s21  ;;  %v196_v40 = vmul.f32 %v3105_v19, %v195_v29 }
  0xcc   :  { %s3119_s21 = sld [smem:[#allocation10 + $0x3a]]  ;;  %v238_v32 = vstv %s4956_s15  ;;  %v283_v1 = vadd.f32 %v282_v47, %v279_v48 }
  0xcd   :  { %4957 = sst [smem:[#allocation24_spill]] %s3110_s30  ;;  %v239_v45 = vmul.f32 %v3105_v19, %v238_v32  ;;  %v197_v54 = vadd.f32 %v196_v40, %v193_v39  ;;  %v325_v32 = vmul.f32 %v3105_v19, %v324_v20  ;;  %v348_v40 = vstv %s3025_s4 }
  0xce   :  { %4958 = sst [smem:[#allocation22_spill]] %s3115_s23  ;;  %v3187_v21 = vpop.eup %2588 }
  0xcf   :  { %s3123_s1 = sld [smem:[#allocation10 + $0x3b]]  ;;  %v240_v58 = vadd.f32 %v239_v45, %v236_v44  ;;  %v326_v45 = vadd.f32 %v325_v32, %v322_v31  ;;  %v375_v32 = vstv %s3062_s19 }
  0xd0   :  { %s4962_s30 = sld [smem:[#allocation34_spill]]  ;;  %v199_v43 = vstv %s4959_s7 }
  0xd1   :  { %s4963_s29 = sld [smem:[#allocation39_spill]]  ;;  %v200_v55 = vmul.f32 %v3133_v42, %v199_v43 }
  0xd2   :  { %4960 = sst [smem:[#allocation25_spill]] %s3119_s21 }
  0xd3   :  { %s3127_s8 = sld [smem:[#allocation10 + $0x3c]]  ;;  %v201_v5 = vadd.f32 %v200_v55, %v197_v54  ;;  %v355_v54 = vstv %s3034_s14 }
  0xd4   :  { %s3131_s26 = sld [smem:[#allocation11 + $0x6]] }
  0xd5   :  { %4961 = sst [smem:[#allocation32_spill]] %s3123_s1 }
  0xd6   :  { %s4964_s0 = sld [smem:[#allocation28_spill]]  ;;  %v242_v46 = vstv %s4962_s30 }
  0xd7   :  { %s3137_s15 = sld [smem:[#allocation10 + $0x3d]]  ;;  %v285_v50 = vstv %s4963_s29  ;;  %v243_v59 = vmul.f32 %v3133_v42, %v242_v46  ;;  %v329_v46 = vmul.f32 %v3133_v42, %v328_v36 }
  0xd8   :  { %s4965_s1 = sld [smem:[#allocation35_spill]]  ;;  %v286_v61 = vmul.f32 %v3133_v42, %v285_v50  ;;  %v349_v50 = vadd.f32 %v348_v40, %v346_v37  ;;  %v402_v40 = vstv %s3094_s16 }
  0xd9   :  { %s3141_s21 = sld [smem:[#allocation10 + $0x3e]]  ;;  %v244_v9 = vadd.f32 %v243_v59, %v240_v58  ;;  %v330_v58 = vadd.f32 %v329_v46, %v326_v45  ;;  %v336_v59 = vstv %s3014_s10  ;;  %v431_v4 = vstv %s3127_s8 }
  0xda   :  { %s4966_s28 = sld [smem:[#allocation40_spill]]  ;;  %v287_v13 = vadd.f32 %v286_v61, %v283_v1  ;;  %v353_v61 = vadd.f32 %v352_v51, %v349_v50  ;;  %v356_v1 = vmul.f32 %v3058_v49, %v355_v54  ;;  %v432_v15 = vmul.f32 %v3019_v25, %v431_v4 }
  0xdb   :  { %s3145_s23 = sld [smem:[#allocation10 + $0x3f]]  ;;  %v3293_v45 = vmul.f32 %v3147_v53, %v375_v32 }
  0xdc   :  { %s3151_s30 = sld [smem:[#allocation10 + $0x40]]  ;;  %v203_v57 = vstv %s4964_s0 }
  0xdd   :  { %s4968_s7 = sld [smem:[#allocation29_spill]]  ;;  %v204_v6 = vmul.f32 %v3147_v53, %v203_v57  ;;  %v437_v20 = vstv %s3137_s15 }
  0xde   :  { %s3155_s29 = sld [smem:[#allocation10 + $0x41]]  ;;  %v246_v60 = vstv %s4965_s1 }
  0xdf   :  { %s3159_s20 = sld [smem:[#allocation10 + $0x42]]  ;;  %v247_v10 = vmul.f32 %v3147_v53, %v246_v60  ;;  %v205_v17 = vadd.f32 %v204_v6, %v201_v5  ;;  %v340_v60 = vstv %s3017_s12  ;;  %v337_v5 = vmul.f32 %v3161_v62, %v336_v59 }
  0xe0   :  { %v289_v2 = vstv %s4966_s28  ;;  %s4972_s9 = sld [smem:[#allocation41_spill]]  ;;  %v3243_v6 = vmul.f32 %v3187_v21, %v340_v60 }
  0xe1   :  { %4967 = sst [smem:[#allocation38_spill]] %s3145_s23  ;;  %v290_v12 = vmul.f32 %v3147_v53, %v289_v2  ;;  %v248_v23 = vadd.f32 %v247_v10, %v244_v9  ;;  %v363_v10 = vstv %s3046_s17 }
  0xe2   :  { %s4970_s23 = sld [smem:[#allocation36_spill]] }
  0xe3   :  { %s3165_s0 = sld [smem:[#allocation10 + $0x43]]  ;;  %v207_v8 = vstv %s4968_s7  ;;  %v291_v29 = vadd.f32 %v290_v12, %v287_v13  ;;  %v357_v12 = vadd.f32 %v356_v1, %v353_v61 }
  0xe4   :  { %4969 = sst [smem:[#allocation26_spill]] %s3155_s29  ;;  %v208_v18 = vmul.f32 %v3161_v62, %v207_v8  ;;  %v394_v8 = vstv %s3085_s24 }
  0xe5   :  { %4971 = sst [smem:[#allocation33_spill]] %s3159_s20 }
  0xe6   :  { %s3169_s1 = sld [smem:[#allocation10 + $0x44]]  ;;  %v293_v14 = vstv %s4972_s9  ;;  %v209_v33 = vadd.f32 %v208_v18, %v205_v17  ;;  %v395_v17 = vmul.f32 %v3036_v34, %v394_v8  ;;  %v434_v18 = vstv %s3131_s26 }
  0xe7   :  { %s4975_s20 = sld [smem:[#allocation30_spill]]  ;;  %v294_v28 = vmul.f32 %v3161_v62, %v293_v14  ;;  %v367_v14 = vstv %s3051_s25 }
  0xe8   :  { %s3173_s29 = sld [smem:[#allocation10 + $0x45]]  ;;  %v250_v11 = vstv %s4970_s23  ;;  %v396_v37 = vadd.f32 %v395_v17, %v392_v16 }
  0xe9   :  { %4973 = sst [smem:[#allocation27_spill]] %s3165_s0  ;;  %v251_v24 = vmul.f32 %v3161_v62, %v250_v11  ;;  %v295_v44 = vadd.f32 %v294_v28, %v291_v29  ;;  %v368_v28 = vmul.f32 %v3105_v19, %v367_v14 }
  0xea   :  { %s3177_s28 = sld [smem:[#allocation10 + $0x46]] }
  0xeb   :  { %s4977_s0 = sld [smem:[#allocation37_spill]]  ;;  %v252_v38 = vadd.f32 %v251_v24, %v248_v23  ;;  %v371_v23 = vstv %s3056_s18  ;;  %v398_v24 = vstv %s3089_s27 }
  0xec   :  { %4974 = sst [smem:[#allocation34_spill]] %s3169_s1  ;;  %v3281_v36 = vmul.f32 %v3133_v42, %v371_v23 }
  0xed   :  { %s4978_s2 = sld [smem:[#allocation42_spill]]  ;;  %v211_v22 = vstv %s4975_s20 }
  0xee   :  { %4976 = sst [smem:[#allocation39_spill]] %s3173_s29  ;;  %v212_v35 = vmul.f32 %v3187_v21, %v211_v22  ;;  %v364_v22 = vmul.f32 %v3096_v0, %v363_v10 }
  0xef   :  { %s3181_s7 = sld [smem:[#allocation11 + $0x7]] }
  0xf0   :  { %s3185_s29 = sld [smem:[#allocation10 + $0x47]]  ;;  %v213_v48 = vadd.f32 %v212_v35, %v209_v33  ;;  %v474_v11 = vstv %s3177_s28  ;;  %v435_v33 = vadd.f32 %v434_v18, %v432_v15  ;;  %v438_v35 = vmul.f32 %v3036_v34, %v437_v20 }
  0xf1   :  { %s3192_s23 = sld [smem:[#allocation10 + $0x48]]  ;;  %v254_v27 = vstv %s4977_s0  ;;  %v475_v26 = vmul.f32 %v3019_v25, %v474_v11  ;;  %v449_v15 = vstv %s3151_s30 }
  0xf2   :  { %s3196_s9 = sld [smem:[#allocation10 + $0x49]]  ;;  %v255_v39 = vmul.f32 %v3187_v21, %v254_v27  ;;  %2590 = vtanh.f32 %v213_v48 }
  0xf3   :  { %v297_v30 = vstv %s4978_s2  ;;  %s3200_s5 = sld [smem:[#allocation10 + $0x4a]] }
  0xf4   :  { %s4979_s20 = sld [smem:[#allocation43_spill]]  ;;  %v298_v43 = vmul.f32 %v3187_v21, %v297_v30  ;;  %v256_v52 = vadd.f32 %v255_v39, %v252_v38  ;;  %v399_v38 = vmul.f32 %v3058_v49, %v398_v24  ;;  %v441_v39 = vstv %s3141_s21 }
  0xf5   :  { %s3205_s11 = sld [smem:[#allocation10 + $0x4b]]  ;;  %v477_v29 = vstv %s3181_s7  ;;  %v442_v54 = vmul.f32 %v3058_v49, %v441_v39 }
  0xf6   :  { %s3210_s0 = sld [smem:[#allocation10 + $0x4c]]  ;;  %v299_v57 = vadd.f32 %v298_v43, %v295_v44  ;;  %2592 = vtanh.f32 %v256_v52  ;;  %v480_v30 = vstv %s3185_s29  ;;  %v478_v41 = vadd.f32 %v477_v29, %v475_v26 }
  0xf7   :  { %s3213_s2 = sld [smem:[#allocation10 + $0x4d]]  ;;  %v481_v43 = vmul.f32 %v3036_v34, %v480_v30  ;;  %v484_v48 = vstv %s3192_s23  ;;  %v439_v52 = vadd.f32 %v438_v35, %v435_v33  ;;  %v400_v56 = vadd.f32 %v399_v38, %v396_v37 }
  0xf8   :  { %s3217_s6 = sld [smem:[#allocation10 + $0x4e]]  ;;  %2594 = vtanh.f32 %v299_v57  ;;  %v403_v57 = vmul.f32 %v3077_v63, %v402_v40  ;;  %v485_v1 = vmul.f32 %v3058_v49, %v484_v48  ;;  %v488_v8 = vstv %s3196_s9 }
  0xf9   :  { %s3220_s4 = sld [smem:[#allocation10 + $0x4f]]  ;;  %v482_v61 = vadd.f32 %v481_v43, %v478_v41  ;;  %v443_v11 = vadd.f32 %v442_v54, %v439_v52  ;;  %v492_v29 = vstv %s3200_s5 }
  0xfa   :  { %v332_v47 = vstv %s4979_s20  ;;  %s4981_s13 = sld [smem:[#allocation44_spill]]  ;;  %v404_v14 = vadd.f32 %v403_v57, %v400_v56  ;;  %v493_v41 = vmul.f32 %v3096_v0, %v492_v29 }
  0xfb   :  { %s3223_s1 = sld [smem:[#allocation10 + $0x50]]  ;;  %v333_v55 = vmul.f32 %v3147_v53, %v332_v47  ;;  %v486_v20 = vadd.f32 %v485_v1, %v482_v61 }
  0xfc   :  { %s3231_s20 = sld [smem:[#allocation10 + $0x51]] }
  0xfd   :  { %4980 = sst [smem:[#allocation28_spill]] %s3213_s2  ;;  %v334_v9 = vadd.f32 %v333_v55, %v330_v58 }
  0xfe   :  { %s3227_s2 = sld [smem:[#allocation11 + $0x8]] }
  0xff   :  { %s3234_s14 = sld [smem:[#allocation10 + $0x52]]  ;;  %v3269_v27 = vadd.f32 %v337_v5, %v334_v9  ;;  %v3304_v55 = vpop.eup %2590 }
 0x100   :  { %v359_v2 = vstv %s4981_s13  ;;  %s3239_s3 = sld [smem:[#allocation10 + $0x53]] }
 0x101   :  { %s3247_s10 = sld [smem:[#allocation10 + $0x54]]  ;;  %v360_v13 = vmul.f32 %v3077_v63, %v359_v2  ;;  %v517_v44 = vstv %s3223_s1 }
 0x102   :  { %s3251_s12 = sld [smem:[#allocation10 + $0x55]]  ;;  %v518_v59 = vmul.f32 %v3019_v25, %v517_v44  ;;  %v523_v3 = vstv %s3231_s20 }
 0x103   :  { %s3256_s22 = sld [smem:[#allocation10 + $0x56]]  ;;  %v361_v31 = vadd.f32 %v360_v13, %v357_v12  ;;  %v3311_v60 = vpop.eup %2592  ;;  %v524_v17 = vmul.f32 %v3036_v34, %v523_v3  ;;  %v500_v3 = vstv %s3210_s0 }
 0x104   :  { %s3261_s17 = sld [smem:[#allocation10 + $0x57]]  ;;  %v520_v2 = vstv %s3227_s2 }
 0x105   :  { %s3267_s25 = sld [smem:[#allocation10 + $0x58]]  ;;  %v365_v50 = vadd.f32 %v364_v22, %v361_v31  ;;  %v3328_v9 = vpop.eup %2594  ;;  %v521_v16 = vadd.f32 %v520_v2, %v518_v59  ;;  %v489_v22 = vmul.f32 %v3077_v63, %v488_v8  ;;  %v527_v23 = vstv %s3234_s14 }
 0x106   :  { %s3274_s24 = sld [smem:[#allocation10 + $0x59]]  ;;  %v528_v39 = vmul.f32 %v3058_v49, %v527_v23  ;;  %v531_v43 = vstv %s3239_s3 }
 0x107   :  { %s4982_s8 = sld [smem:[#allocation23_spill]]  ;;  %v369_v18 = vadd.f32 %v368_v28, %v365_v50  ;;  %v450_v28 = vmul.f32 %v3096_v0, %v449_v15  ;;  %v525_v38 = vadd.f32 %v524_v17, %v521_v16  ;;  %v490_v40 = vadd.f32 %v489_v22, %v486_v20 }
 0x108   :  { %s4983_s18 = sld [smem:[#allocation31_spill]]  ;;  %v535_v1 = vstv %s3247_s10  ;;  %v539_v20 = vstv %s3251_s12 }
 0x109   :  { %s3278_s27 = sld [smem:[#allocation10 + $0x5a]]  ;;  %v529_v57 = vadd.f32 %v528_v39, %v525_v38  ;;  %v494_v59 = vadd.f32 %v493_v41, %v490_v40  ;;  %v536_v16 = vmul.f32 %v3096_v0, %v535_v1  ;;  %v543_v39 = vstv %s3256_s22 }
 0x10a   :  { %s4984_s26 = sld [smem:[#allocation20_spill]]  ;;  %v508_v40 = vstv %s3217_s6 }
 0x10b   :  { %s3285_s15 = sld [smem:[#allocation11 + $0x9]] }
 0x10c   :  { %s4985_s19 = sld [smem:[#allocation38_spill]] }
 0x10d   :  { %s3290_s29 = sld [smem:[#allocation10 + $0x5b]]  ;;  %v379_v46 = vstv %s4982_s8 }
 0x10e   :  { %v383_v47 = vstv %s4983_s18  ;;  %s3298_s28 = sld [smem:[#allocation10 + $0x5c]]  ;;  %v3319_v4 = vmul.f32 %v3161_v62, %v379_v46  ;;  %v496_v46 = vstv %s3205_s11 }
 0x10f   :  { %s3302_s21 = sld [smem:[#allocation10 + $0x5d]]  ;;  %v3322_v5 = vmul.f32 %v3187_v21, %v383_v47  ;;  %v560_v13 = vstv %s3278_s27  ;;  %v497_v61 = vmul.f32 %v3105_v19, %v496_v46 }
 0x110   :  { %v406_v51 = vstv %s4984_s26  ;;  %s4986_s16 = sld [smem:[#allocation21_spill]]  ;;  %v561_v30 = vmul.f32 %v3019_v25, %v560_v13  ;;  %v373_v25 = vadd.f32 %v3281_v36, %v369_v18  ;;  %v501_v18 = vmul.f32 %v3133_v42, %v500_v3 }
 0x111   :  { %s3309_s1 = sld [smem:[#allocation10 + $0x5e]]  ;;  %v407_v7 = vmul.f32 %v3096_v0, %v406_v51  ;;  %v563_v32 = vstv %s3285_s15  ;;  %v498_v17 = vadd.f32 %v497_v61, %v494_v59 }
 0x112   :  { %v445_v58 = vstv %s4985_s19  ;;  %s3316_s7 = sld [smem:[#allocation10 + $0x5f]]  ;;  %v564_v47 = vadd.f32 %v563_v32, %v561_v30 }
 0x113   :  { %s3326_s23 = sld [smem:[#allocation10 + $0x60]]  ;;  %v446_v12 = vmul.f32 %v3077_v63, %v445_v58  ;;  %v566_v33 = vstv %s3290_s29  ;;  %v408_v35 = vadd.f32 %v407_v7, %v404_v14  ;;  %v532_v58 = vmul.f32 %v3077_v63, %v531_v43 }
 0x114   :  { %s4987_s13 = sld [smem:[#allocation24_spill]]  ;;  %v567_v48 = vmul.f32 %v3036_v34, %v566_v33  ;;  %v570_v52 = vstv %s3298_s28  ;;  %v377_v34 = vadd.f32 %v3293_v45, %v373_v25 }
 0x115   :  { %s3333_s2 = sld [smem:[#allocation10 + $0x61]]  ;;  %v447_v31 = vadd.f32 %v446_v12, %v443_v11  ;;  %v571_v8 = vmul.f32 %v3058_v49, %v570_v52  ;;  %v574_v12 = vstv %s3302_s21  ;;  %v533_v15 = vadd.f32 %v532_v58, %v529_v57 }
 0x116   :  { %v410_v10 = vstv %s4986_s16  ;;  %s3337_s9 = sld [smem:[#allocation10 + $0x62]]  ;;  %v568_v7 = vadd.f32 %v567_v48, %v564_v47  ;;  %v381_v49 = vadd.f32 %v3319_v4, %v377_v34  ;;  %v512_v52 = vstv %s3220_s4 }
 0x117   :  { %s4988_s20 = sld [smem:[#allocation26_spill]]  ;;  %v411_v24 = vmul.f32 %v3105_v19, %v410_v10  ;;  %v451_v51 = vadd.f32 %v450_v28, %v447_v31  ;;  %v578_v31 = vstv %s3309_s1  ;;  %v537_v33 = vadd.f32 %v536_v16, %v533_v15 }
 0x118   :  { %s3341_s8 = sld [smem:[#allocation10 + $0x63]]  ;;  %v385_v25 = vadd.f32 %v3322_v5, %v381_v49  ;;  %v579_v43 = vmul.f32 %v3096_v0, %v578_v31  ;;  %v582_v46 = vstv %s3316_s7  ;;  %v513_v3 = vmul.f32 %v3187_v21, %v512_v52 }
 0x119   :  { %s3347_s30 = sld [smem:[#allocation10 + $0x64]]  ;;  %v412_v54 = vadd.f32 %v411_v24, %v408_v35  ;;  %v572_v24 = vadd.f32 %v571_v8, %v568_v7  ;;  %v540_v35 = vmul.f32 %v3105_v19, %v539_v20  ;;  %v586_v59 = vstv %s3326_s23 }
 0x11a   :  { %v414_v26 = vstv %s4987_s13  ;;  %s3352_s18 = sld [smem:[#allocation11 + $0xa]]  ;;  %v551_v7 = vstv %s3267_s25  ;;  %v555_v49 = vstv %s3274_s24 }
 0x11b   :  { %s4989_s14 = sld [smem:[#allocation22_spill]]  ;;  %v415_v44 = vmul.f32 %v3133_v42, %v414_v26  ;;  %v575_v26 = vmul.f32 %v3077_v63, %v574_v12  ;;  %v342_v63 = vadd.f32 %v3243_v6, %v3269_v27  ;;  %v541_v5 = vadd.f32 %v540_v35, %v537_v33 }
 0x11c   :  { %s3356_s5 = sld [smem:[#allocation10 + $0x65]]  ;;  %v552_v16 = vmul.f32 %v3161_v62, %v551_v7 }
 0x11d   :  { %v453_v37 = vstv %s4988_s20  ;;  %s4990_s27 = sld [smem:[#allocation33_spill]]  ;;  %v416_v13 = vadd.f32 %v415_v44, %v412_v54  ;;  %v576_v41 = vadd.f32 %v575_v26, %v572_v24  ;;  %2596 = vtanh.f32 %v342_v63 }
 0x11e   :  { %s3361_s26 = sld [smem:[#allocation10 + $0x66]]  ;;  %v454_v36 = vmul.f32 %v3105_v19, %v453_v37  ;;  %v502_v37 = vadd.f32 %v501_v18, %v498_v17  ;;  %2598 = vtanh.f32 %v385_v25  ;;  %v556_v26 = vmul.f32 %v3187_v21, %v555_v49 }
 0x11f   :  { %s3366_s15 = sld [smem:[#allocation10 + $0x67]]  ;;  %v580_v54 = vadd.f32 %v579_v43, %v576_v41  ;;  %v603_v57 = vstv %s3347_s30 }
 0x120   :  { %s3371_s19 = sld [smem:[#allocation10 + $0x68]]  ;;  %v455_v11 = vadd.f32 %v454_v36, %v451_v51  ;;  %v509_v51 = vmul.f32 %v3161_v62, %v508_v40  ;;  %v547_v36 = vstv %s3261_s17  ;;  %v604_v8 = vmul.f32 %v3304_v55, %v603_v57 }
 0x121   :  { %v418_v50 = vstv %s4989_s14  ;;  %s4991_s3 = sld [smem:[#allocation25_spill]] }
 0x122   :  { %s3375_s11 = sld [smem:[#allocation10 + $0x69]]  ;;  %v419_v2 = vmul.f32 %v3147_v53, %v418_v50  ;;  %v544_v50 = vmul.f32 %v3133_v42, %v543_v39  ;;  %v609_v12 = vstv %s3356_s5 }
 0x123   :  { %v457_v56 = vstv %s4990_s27  ;;  %s4992_s29 = sld [smem:[#allocation27_spill]]  ;;  %v610_v20 = vmul.f32 %v3311_v60, %v609_v12 }
 0x124   :  { %s3380_s16 = sld [smem:[#allocation10 + $0x6a]]  ;;  %v458_v45 = vmul.f32 %v3133_v42, %v457_v56  ;;  %v420_v28 = vadd.f32 %v419_v2, %v416_v13  ;;  %v583_v56 = vmul.f32 %v3105_v19, %v582_v46  ;;  %v545_v1 = vadd.f32 %v544_v50, %v541_v5 }
 0x125   :  { %s3385_s28 = sld [smem:[#allocation10 + $0x6b]]  ;;  %v548_v2 = vmul.f32 %v3147_v53, %v547_v36  ;;  %v613_v24 = vstv %s3361_s26  ;;  %v617_v39 = vstv %s3366_s15 }
 0x126   :  { %s4993_s13 = sld [smem:[#allocation28_spill]]  ;;  %v459_v30 = vadd.f32 %v458_v45, %v455_v11  ;;  %v587_v11 = vmul.f32 %v3133_v42, %v586_v59  ;;  %v606_v45 = vstv %s3352_s18  ;;  %v614_v33 = vmul.f32 %v3328_v9, %v613_v24 }
 0x127   :  { %v422_v10 = vstv %s4991_s3  ;;  %s3390_s20 = sld [smem:[#allocation10 + $0x6c]]  ;;  %v549_v15 = vadd.f32 %v548_v2, %v545_v1  ;;  %v607_v18 = vadd.f32 %v606_v45, %v604_v8  ;;  %v621_v50 = vstv %s3371_s19 }
 0x128   :  { %s4994_s10 = sld [smem:[#allocation32_spill]]  ;;  %v423_v22 = vmul.f32 %v3161_v62, %v422_v10  ;;  %v584_v10 = vadd.f32 %v583_v56, %v580_v54  ;;  %v625_v59 = vstv %s3375_s11 }
 0x129   :  { %v461_v14 = vstv %s4992_s29  ;;  %s3394_s0 = sld [smem:[#allocation10 + $0x6d]] }
 0x12a   :  { %s4995_s14 = sld [smem:[#allocation34_spill]]  ;;  %v462_v4 = vmul.f32 %v3147_v53, %v461_v14  ;;  %v424_v47 = vadd.f32 %v423_v22, %v420_v28  ;;  %v590_v14 = vstv %s3333_s2  ;;  %v588_v22 = vadd.f32 %v587_v11, %v584_v10  ;;  %v3489_v35 = vpop.eup %2596 }
 0x12b   :  { %s3399_s27 = sld [smem:[#allocation10 + $0x6e]]  ;;  %v629_v12 = vstv %s3380_s16 }
 0x12c   :  { %v504_v23 = vstv %s4993_s13  ;;  %s3404_s21 = sld [smem:[#allocation11 + $0xb]]  ;;  %v463_v6 = vadd.f32 %v462_v4, %v459_v30  ;;  %v553_v4 = vadd.f32 %v552_v16, %v549_v15 }
 0x12d   :  { %s3409_s3 = sld [smem:[#allocation10 + $0x6f]]  ;;  %v505_v38 = vmul.f32 %v3147_v53, %v504_v23  ;;  %v591_v23 = vmul.f32 %v3147_v53, %v590_v14  ;;  %v611_v53 = vadd.f32 %v610_v20, %v607_v18 }
 0x12e   :  { %v426_v29 = vstv %s4994_s10  ;;  %s3413_s12 = sld [smem:[#allocation10 + $0x70]] }
 0x12f   :  { %s4996_s29 = sld [smem:[#allocation39_spill]]  ;;  %v427_v44 = vmul.f32 %v3187_v21, %v426_v29  ;;  %v506_v0 = vadd.f32 %v505_v38, %v502_v37  ;;  %v594_v29 = vstv %s3337_s9  ;;  %v592_v63 = vadd.f32 %v591_v23, %v588_v22 }
 0x130   :  { %v465_v32 = vstv %s4995_s14  ;;  %s3419_s13 = sld [smem:[#allocation10 + $0x71]]  ;;  %v595_v37 = vmul.f32 %v3161_v62, %v594_v29  ;;  %v598_v38 = vstv %s3341_s8  ;;  %v615_v46 = vadd.f32 %v614_v33, %v611_v53 }
 0x131   :  { %s3424_s1 = sld [smem:[#allocation10 + $0x72]]  ;;  %v466_v27 = vmul.f32 %v3161_v62, %v465_v32  ;;  %v428_v61 = vadd.f32 %v427_v44, %v424_v47  ;;  %v510_v19 = vadd.f32 %v509_v51, %v506_v0  ;;  %v646_v17 = vstv %s3399_s27  ;;  %v3505_v62 = vpop.eup %2598 }
 0x132   :  { %s3429_s22 = sld [smem:[#allocation10 + $0x73]]  ;;  %v647_v30 = vmul.f32 %v3304_v55, %v646_v17  ;;  %v649_v31 = vstv %s3404_s21  ;;  %v557_v44 = vadd.f32 %v556_v26, %v553_v4  ;;  %v618_v47 = vmul.f32 %v3489_v35, %v617_v39 }
 0x133   :  { %s3433_s6 = sld [smem:[#allocation10 + $0x74]]  ;;  %v467_v58 = vadd.f32 %v466_v27, %v463_v6  ;;  %2600 = vtanh.f32 %v428_v61  ;;  %v514_v42 = vadd.f32 %v513_v3, %v510_v19  ;;  %v652_v28 = vstv %s3409_s3 }
 0x134   :  { %s3437_s10 = sld [smem:[#allocation10 + $0x75]]  ;;  %v650_v25 = vadd.f32 %v649_v31, %v647_v30  ;;  %v653_v40 = vmul.f32 %v3311_v60, %v652_v28  ;;  %v656_v41 = vstv %s3413_s12  ;;  %v599_v5 = vmul.f32 %v3187_v21, %v598_v38 }
 0x135   :  { %v469_v48 = vstv %s4996_s29  ;;  %s3442_s7 = sld [smem:[#allocation10 + $0x76]]  ;;  %v657_v0 = vmul.f32 %v3328_v9, %v656_v41  ;;  %v622_v57 = vmul.f32 %v3505_v62, %v621_v50  ;;  %v637_v31 = vstv %s3390_s20 }
 0x136   :  { %v470_v34 = vmul.f32 %v3187_v21, %v469_v48  ;;  %s3446_s14 = sld [smem:[#allocation10 + $0x77]]  ;;  %v596_v48 = vadd.f32 %v595_v37, %v592_v63  ;;  %v654_v51 = vadd.f32 %v653_v40, %v650_v25  ;;  %v660_v36 = vstv %s3419_s13 }
 0x137   :  { %s3449_s4 = sld [smem:[#allocation10 + $0x78]]  ;;  %v619_v21 = vadd.f32 %v618_v47, %v615_v46  ;;  %v661_v61 = vmul.f32 %v3489_v35, %v660_v36  ;;  %v664_v2 = vstv %s3424_s1 }
 0x138   :  { %s3454_s17 = sld [smem:[#allocation11 + $0xc]]  ;;  %v471_v13 = vadd.f32 %v470_v34, %v467_v58  ;;  %v600_v34 = vadd.f32 %v599_v5, %v596_v48  ;;  %v658_v1 = vadd.f32 %v657_v0, %v654_v51  ;;  %v665_v14 = vmul.f32 %v3505_v62, %v664_v2 }
 0x139   :  { %s3459_s23 = sld [smem:[#allocation10 + $0x79]]  ;;  %v623_v10 = vadd.f32 %v622_v57, %v619_v21  ;;  %v668_v16 = vstv %s3429_s22  ;;  %v672_v29 = vstv %s3433_s6 }
 0x13a   :  { %s3462_s30 = sld [smem:[#allocation10 + $0x7a]]  ;;  %2602 = vtanh.f32 %v471_v13  ;;  %v633_v13 = vstv %s3385_s28  ;;  %v662_v15 = vadd.f32 %v661_v61, %v658_v1 }
 0x13b   :  { %s3467_s25 = sld [smem:[#allocation10 + $0x7b]]  ;;  %2604 = vtanh.f32 %v514_v42 }
 0x13c   :  { %s3470_s18 = sld [smem:[#allocation10 + $0x7c]]  ;;  %2606 = vtanh.f32 %v557_v44  ;;  %v666_v26 = vadd.f32 %v665_v14, %v662_v15  ;;  %v676_v44 = vstv %s3437_s10 }
 0x13d   :  { %s3474_s2 = sld [smem:[#allocation10 + $0x7d]]  ;;  %v689_v32 = vstv %s3449_s4  ;;  %2608 = vtanh.f32 %v600_v34 }
 0x13e   :  { %s3479_s24 = sld [smem:[#allocation10 + $0x7e]]  ;;  %v690_v43 = vmul.f32 %v3304_v55, %v689_v32  ;;  %v692_v6 = vstv %s3454_s17 }
 0x13f   :  { %s3484_s5 = sld [smem:[#allocation10 + $0x7f]]  ;;  %v695_v27 = vstv %s3459_s23 }
 0x140   :  { %s3487_s26 = sld [smem:[#allocation10 + $0x80]]  ;;  %v693_v52 = vadd.f32 %v692_v6, %v690_v43  ;;  %v696_v54 = vmul.f32 %v3311_v60, %v695_v27  ;;  %v699_v56 = vstv %s3462_s30  ;;  %v3525_v58 = vpop.eup %2600 }
 0x141   :  { %s3494_s9 = sld [smem:[#allocation10 + $0x81]]  ;;  %v700_v3 = vmul.f32 %v3328_v9, %v699_v56  ;;  %v703_v8 = vstv %s3467_s25  ;;  %v626_v11 = vmul.f32 %v3525_v58, %v625_v59  ;;  %v669_v24 = vmul.f32 %v3525_v58, %v668_v16 }
 0x142   :  { %s3499_s27 = sld [smem:[#allocation10 + $0x82]]  ;;  %v697_v19 = vadd.f32 %v696_v54, %v693_v52  ;;  %v704_v17 = vmul.f32 %v3489_v35, %v703_v8  ;;  %v707_v42 = vstv %s3470_s18  ;;  %v641_v52 = vstv %s3394_s0 }
 0x143   :  { %s3503_s21 = sld [smem:[#allocation11 + $0xd]]  ;;  %v627_v18 = vadd.f32 %v626_v11, %v623_v10  ;;  %v708_v4 = vmul.f32 %v3505_v62, %v707_v42  ;;  %v711_v28 = vstv %s3474_s2  ;;  %v670_v43 = vadd.f32 %v669_v24, %v666_v26 }
 0x144   :  { %s3508_s8 = sld [smem:[#allocation10 + $0x83]]  ;;  %v701_v49 = vadd.f32 %v700_v3, %v697_v19  ;;  %v712_v27 = vmul.f32 %v3525_v58, %v711_v28  ;;  %v715_v47 = vstv %s3479_s24  ;;  %v680_v56 = vstv %s3442_s7 }
 0x145   :  { %s3513_s15 = sld [smem:[#allocation10 + $0x84]]  ;;  %v684_v59 = vstv %s3446_s14  ;;  %v719_v2 = vstv %s3484_s5 }
 0x146   :  { %s3517_s3 = sld [smem:[#allocation10 + $0x85]]  ;;  %v705_v30 = vadd.f32 %v704_v17, %v701_v49 }
 0x147   :  { %s3520_s12 = sld [smem:[#allocation10 + $0x86]]  ;;  %v3535_v7 = vpop.eup %2602 }
 0x148   :  { %s3523_s19 = sld [smem:[#allocation10 + $0x87]]  ;;  %v3543_v45 = vpop.eup %2604  ;;  %v630_v20 = vmul.f32 %v3535_v7, %v629_v12  ;;  %v732_v22 = vstv %s3499_s27  ;;  %v673_v25 = vmul.f32 %v3535_v7, %v672_v29  ;;  %v709_v6 = vadd.f32 %v708_v4, %v705_v30 }
 0x149   :  { %s3529_s29 = sld [smem:[#allocation10 + $0x88]]  ;;  %v634_v23 = vmul.f32 %v3543_v45, %v633_v13  ;;  %v733_v32 = vmul.f32 %v3304_v55, %v732_v22  ;;  %v3572_v33 = vpop.eup %2606  ;;  %v735_v37 = vstv %s3503_s21  ;;  %v677_v54 = vmul.f32 %v3543_v45, %v676_v44 }
 0x14a   :  { %s3533_s13 = sld [smem:[#allocation10 + $0x89]]  ;;  %v631_v63 = vadd.f32 %v630_v20, %v627_v18  ;;  %v738_v38 = vstv %s3508_s8  ;;  %v638_v46 = vmul.f32 %v3572_v33, %v637_v31  ;;  %v3603_v57 = vpop.eup %2608  ;;  %v674_v34 = vadd.f32 %v673_v25, %v670_v43 }
 0x14b   :  { %s3538_s4 = sld [smem:[#allocation10 + $0x8a]]  ;;  %v736_v48 = vadd.f32 %v735_v37, %v733_v32  ;;  %v739_v5 = vmul.f32 %v3311_v60, %v738_v38  ;;  %v742_v0 = vstv %s3513_s15  ;;  %v713_v61 = vadd.f32 %v712_v27, %v709_v6 }
 0x14c   :  { %s3541_s11 = sld [smem:[#allocation10 + $0x8b]]  ;;  %v635_v50 = vadd.f32 %v634_v23, %v631_v63  ;;  %v716_v1 = vmul.f32 %v3535_v7, %v715_v47  ;;  %v743_v3 = vmul.f32 %v3328_v9, %v742_v0  ;;  %v746_v10 = vstv %s3517_s3 }
 0x14d   :  { %s2241_s1 = sld [smem:[#allocation10 + $0x8c]]  ;;  %v740_v19 = vadd.f32 %v739_v5, %v736_v48  ;;  %v642_v13 = vmul.f32 %v3603_v57, %v641_v52  ;;  %v681_v14 = vmul.f32 %v3572_v33, %v680_v56  ;;  %v685_v15 = vmul.f32 %v3603_v57, %v684_v59 }
 0x14e   :  { %s3550_s17 = sld [smem:[#allocation11 + $0xe]]  ;;  %v639_v8 = vadd.f32 %v638_v46, %v635_v50  ;;  %v678_v49 = vadd.f32 %v677_v54, %v674_v34  ;;  %v717_v17 = vadd.f32 %v716_v1, %v713_v61  ;;  %v720_v42 = vmul.f32 %v3543_v45, %v719_v2 }
 0x14f   :  { %s3553_s23 = sld [smem:[#allocation10 + $0x8d]]  ;;  %v744_v20 = vadd.f32 %v743_v3, %v740_v19  ;;  %v747_v22 = vmul.f32 %v3489_v35, %v746_v10  ;;  %v750_v26 = vstv %s3520_s12  ;;  %v723_v38 = vstv %s3487_s26 }
 0x150   :  { %s3557_s16 = sld [smem:[#allocation10 + $0x8e]]  ;;  %v643_v63 = vadd.f32 %v642_v13, %v639_v8  ;;  %v682_v37 = vadd.f32 %v681_v14, %v678_v49  ;;  %v754_v44 = vstv %s3523_s19  ;;  %v721_v46 = vadd.f32 %v720_v42, %v717_v17 }
 0x151   :  { %s3561_s28 = sld [smem:[#allocation10 + $0x8f]]  ;;  %v748_v25 = vadd.f32 %v747_v22, %v744_v20  ;;  %v724_v47 = vmul.f32 %v3572_v33, %v723_v38  ;;  %v727_v48 = vstv %s3494_s9  ;;  %v758_v50 = vstv %s3529_s29 }
 0x152   :  { %s3565_s22 = sld [smem:[#allocation10 + $0x90]]  ;;  %2610 = vtanh.f32 %v643_v63  ;;  %v686_v52 = vadd.f32 %v685_v15, %v682_v37  ;;  %v755_v56 = vmul.f32 %v3525_v58, %v754_v44  ;;  %v759_v2 = vmul.f32 %v3535_v7, %v758_v50 }
 0x153   :  { %v775_v53 = vstv %s2241_s1  ;;  %s3570_s30 = sld [smem:[#allocation10 + $0x91]]  ;;  %v725_v1 = vadd.f32 %v724_v47, %v721_v46  ;;  %v762_v14 = vstv %s3533_s13  ;;  %v770_v63 = vstv %s3541_s11 }
 0x154   :  { %v776_v39 = vmul.f32 %v3304_v55, %v775_v53  ;;  %s3577_s6 = sld [smem:[#allocation10 + $0x92]]  ;;  %v778_v40 = vstv %s3550_s17  ;;  %2612 = vtanh.f32 %v686_v52 }
 0x155   :  { %v781_v41 = vstv %s3553_s23  ;;  %s3582_s20 = sld [smem:[#allocation10 + $0x93]] }
 0x156   :  { %s3586_s25 = sld [smem:[#allocation10 + $0x94]]  ;;  %v779_v51 = vadd.f32 %v778_v40, %v776_v39  ;;  %v782_v36 = vmul.f32 %v3311_v60, %v781_v41  ;;  %v785_v21 = vstv %s3557_s16  ;;  %v751_v40 = vmul.f32 %v3505_v62, %v750_v26 }
 0x157   :  { %s3591_s18 = sld [smem:[#allocation10 + $0x95]]  ;;  %v786_v12 = vmul.f32 %v3328_v9, %v785_v21  ;;  %v789_v16 = vstv %s3561_s28  ;;  %v728_v21 = vmul.f32 %v3603_v57, %v727_v48  ;;  %v771_v48 = vmul.f32 %v3603_v57, %v770_v63 }
 0x158   :  { %s3595_s10 = sld [smem:[#allocation10 + $0x96]]  ;;  %v783_v11 = vadd.f32 %v782_v36, %v779_v51  ;;  %v790_v30 = vmul.f32 %v3489_v35, %v789_v16  ;;  %v793_v31 = vstv %s3565_s22  ;;  %v752_v54 = vadd.f32 %v751_v40, %v748_v25 }
 0x159   :  { %s3601_s2 = sld [smem:[#allocation11 + $0xf]]  ;;  %v794_v27 = vmul.f32 %v3505_v62, %v793_v31  ;;  %v797_v5 = vstv %s3570_s30  ;;  %v729_v25 = vadd.f32 %v728_v21, %v725_v1 }
 0x15a   :  { %s3607_s24 = sld [smem:[#allocation10 + $0x97]]  ;;  %v787_v29 = vadd.f32 %v786_v12, %v783_v11  ;;  %v798_v59 = vmul.f32 %v3525_v58, %v797_v5  ;;  %v801_v61 = vstv %s3577_s6  ;;  %v756_v13 = vadd.f32 %v755_v56, %v752_v54 }
 0x15b   :  { %s3611_s0 = sld [smem:[#allocation10 + $0x98]]  ;;  %v802_v15 = vmul.f32 %v3535_v7, %v801_v61  ;;  %v805_v20 = vstv %s3582_s20  ;;  %2614 = vtanh.f32 %v729_v25 }
 0x15c   :  { %s3615_s7 = sld [smem:[#allocation10 + $0x99]]  ;;  %v791_v6 = vadd.f32 %v790_v30, %v787_v29  ;;  %v760_v31 = vadd.f32 %v759_v2, %v756_v13  ;;  %v806_v38 = vmul.f32 %v3543_v45, %v805_v20  ;;  %v809_v40 = vstv %s3586_s25 }
 0x15d   :  { %s3621_s14 = sld [smem:[#allocation10 + $0x9a]] }
 0x15e   :  { %v818_v18 = vstv %s3595_s10  ;;  %s3625_s5 = sld [smem:[#allocation10 + $0x9b]]  ;;  %v795_v34 = vadd.f32 %v794_v27, %v791_v6 }
 0x15f   :  { %v819_v23 = vmul.f32 %v3304_v55, %v818_v18  ;;  %v821_v24 = vstv %s3601_s2  ;;  %s3630_s27 = sld [smem:[#allocation10 + $0x9c]]  ;;  %v3723_v50 = vpop.eup %2610 }
 0x160   :  { %v824_v4 = vstv %s3607_s24  ;;  %s3635_s21 = sld [smem:[#allocation10 + $0x9d]]  ;;  %v799_v49 = vadd.f32 %v798_v59, %v795_v34 }
 0x161   :  { %v822_v28 = vadd.f32 %v821_v24, %v819_v23  ;;  %v825_v32 = vmul.f32 %v3311_v60, %v824_v4  ;;  %v828_v53 = vstv %s3611_s0  ;;  %s3640_s8 = sld [smem:[#allocation10 + $0x9e]] }
 0x162   :  { %v829_v39 = vmul.f32 %v3328_v9, %v828_v53  ;;  %s3644_s15 = sld [smem:[#allocation10 + $0x9f]]  ;;  %v832_v43 = vstv %s3615_s7  ;;  %v803_v37 = vadd.f32 %v802_v15, %v799_v49 }
 0x163   :  { %v826_v41 = vadd.f32 %v825_v32, %v822_v28  ;;  %s3648_s3 = sld [smem:[#allocation10 + $0xa0]]  ;;  %v833_v51 = vmul.f32 %v3489_v35, %v832_v43  ;;  %v836_v36 = vstv %s3621_s14  ;;  %v763_v28 = vmul.f32 %v3543_v45, %v762_v14 }
 0x164   :  { %s3652_s12 = sld [smem:[#allocation11 + $0x10]]  ;;  %v837_v19 = vmul.f32 %v3505_v62, %v836_v36  ;;  %v840_v10 = vstv %s3625_s5  ;;  %v766_v32 = vstv %s3538_s4  ;;  %v813_v36 = vstv %s3591_s18 }
 0x165   :  { %s3657_s26 = sld [smem:[#allocation10 + $0xa1]]  ;;  %v830_v0 = vadd.f32 %v829_v39, %v826_v41  ;;  %v841_v22 = vmul.f32 %v3525_v58, %v840_v10  ;;  %v844_v29 = vstv %s3630_s27  ;;  %v764_v46 = vadd.f32 %v763_v28, %v760_v31 }
 0x166   :  { %s3662_s19 = sld [smem:[#allocation10 + $0xa2]]  ;;  %v845_v41 = vmul.f32 %v3535_v7, %v844_v29  ;;  %v848_v44 = vstv %s3635_s21  ;;  %v767_v47 = vmul.f32 %v3572_v33, %v766_v32 }
 0x167   :  { %s3665_s9 = sld [smem:[#allocation10 + $0xa3]]  ;;  %v834_v8 = vadd.f32 %v833_v51, %v830_v0  ;;  %v807_v0 = vadd.f32 %v806_v38, %v803_v37  ;;  %v810_v51 = vmul.f32 %v3572_v33, %v809_v40  ;;  %v849_v54 = vmul.f32 %v3543_v45, %v848_v44 }
 0x168   :  { %s3670_s29 = sld [smem:[#allocation10 + $0xa4]]  ;;  %v852_v56 = vstv %s3640_s8 }
 0x169   :  { %v861_v3 = vstv %s3648_s3  ;;  %s3675_s1 = sld [smem:[#allocation10 + $0xa5]]  ;;  %v838_v26 = vadd.f32 %v837_v19, %v834_v8  ;;  %v811_v15 = vadd.f32 %v810_v51, %v807_v0 }
 0x16a   :  { %v862_v11 = vmul.f32 %v3304_v55, %v861_v3  ;;  %v864_v12 = vstv %s3652_s12  ;;  %s3680_s17 = sld [smem:[#allocation10 + $0xa6]] }
 0x16b   :  { %v867_v16 = vstv %s3657_s26  ;;  %s3685_s23 = sld [smem:[#allocation10 + $0xa7]]  ;;  %v842_v43 = vadd.f32 %v841_v22, %v838_v26 }
 0x16c   :  { %v865_v17 = vadd.f32 %v864_v12, %v862_v11  ;;  %v868_v42 = vmul.f32 %v3311_v60, %v867_v16  ;;  %v871_v18 = vstv %s3662_s19  ;;  %s3689_s16 = sld [smem:[#allocation10 + $0xa8]]  ;;  %v768_v11 = vadd.f32 %v767_v47, %v764_v46 }
 0x16d   :  { %v872_v23 = vmul.f32 %v3328_v9, %v871_v18  ;;  %v875_v24 = vstv %s3665_s9  ;;  %s3695_s13 = sld [smem:[#allocation10 + $0xa9]]  ;;  %v846_v59 = vadd.f32 %v845_v41, %v842_v43  ;;  %v814_v12 = vmul.f32 %v3603_v57, %v813_v36 }
 0x16e   :  { %v869_v30 = vadd.f32 %v868_v42, %v865_v17  ;;  %v876_v4 = vmul.f32 %v3489_v35, %v875_v24  ;;  %s3699_s28 = sld [smem:[#allocation10 + $0xaa]]  ;;  %v879_v53 = vstv %s3670_s29  ;;  %v853_v42 = vmul.f32 %v3572_v33, %v852_v56 }
 0x16f   :  { %s3704_s22 = sld [smem:[#allocation11 + $0x11]]  ;;  %v880_v27 = vmul.f32 %v3505_v62, %v879_v53  ;;  %v883_v5 = vstv %s3675_s1  ;;  %v3770_v53 = vpop.eup %2612  ;;  %v815_v63 = vadd.f32 %v814_v12, %v811_v15 }
 0x170   :  { %v873_v39 = vadd.f32 %v872_v23, %v869_v30  ;;  %s3708_s30 = sld [smem:[#allocation10 + $0xab]]  ;;  %v884_v1 = vmul.f32 %v3525_v58, %v883_v5  ;;  %v887_v19 = vstv %s3680_s17  ;;  %v850_v23 = vadd.f32 %v849_v54, %v846_v59 }
 0x171   :  { %s3712_s6 = sld [smem:[#allocation10 + $0xac]]  ;;  %v888_v20 = vmul.f32 %v3535_v7, %v887_v19  ;;  %v891_v24 = vstv %s3685_s23  ;;  %v856_v30 = vstv %s3644_s15 }
 0x172   :  { %v877_v6 = vadd.f32 %v876_v4, %v873_v39  ;;  %s3716_s4 = sld [smem:[#allocation10 + $0xad]]  ;;  %v772_v4 = vadd.f32 %v771_v48, %v768_v11  ;;  %v892_v38 = vmul.f32 %v3543_v45, %v891_v24  ;;  %v895_v39 = vstv %s3689_s16 }
 0x173   :  { %s3721_s11 = sld [smem:[#allocation10 + $0xae]]  ;;  %v854_v25 = vadd.f32 %v853_v42, %v850_v23  ;;  %v857_v40 = vmul.f32 %v3603_v57, %v856_v30  ;;  %v896_v47 = vmul.f32 %v3572_v33, %v895_v39  ;;  %v899_v48 = vstv %s3695_s13 }
 0x174   :  { %v904_v52 = vstv %s3699_s28  ;;  %s3728_s20 = sld [smem:[#allocation10 + $0xaf]]  ;;  %v881_v61 = vadd.f32 %v880_v27, %v877_v6  ;;  %2616 = vtanh.f32 %v772_v4 }
 0x175   :  { %v905_v21 = vmul.f32 %v3304_v55, %v904_v52  ;;  %v907_v34 = vstv %s3704_s22  ;;  %s3734_s25 = sld [smem:[#allocation10 + $0xb0]]  ;;  %2618 = vtanh.f32 %v815_v63 }
 0x176   :  { %v910_v2 = vstv %s3708_s30  ;;  %s3738_s18 = sld [smem:[#allocation10 + $0xb1]]  ;;  %v885_v18 = vadd.f32 %v884_v1, %v881_v61 }
 0x177   :  { %v908_v3 = vadd.f32 %v907_v34, %v905_v21  ;;  %v911_v8 = vmul.f32 %v3311_v60, %v910_v2  ;;  %v914_v10 = vstv %s3712_s6  ;;  %s3743_s10 = sld [smem:[#allocation10 + $0xb2]] }
 0x178   :  { %v915_v13 = vmul.f32 %v3328_v9, %v914_v10  ;;  %v918_v14 = vstv %s3716_s4  ;;  %s3748_s2 = sld [smem:[#allocation10 + $0xb3]]  ;;  %v889_v37 = vadd.f32 %v888_v20, %v885_v18  ;;  %v3818_v18 = vpop.eup %2614 }
 0x179   :  { %v912_v16 = vadd.f32 %v911_v8, %v908_v3  ;;  %v919_v49 = vmul.f32 %v3489_v35, %v918_v14  ;;  %v922_v17 = vstv %s3721_s11  ;;  %s3752_s24 = sld [smem:[#allocation10 + $0xb4]]  ;;  %v858_v3 = vadd.f32 %v857_v40, %v854_v25 }
 0x17a   :  { %v926_v22 = vstv %s3728_s20  ;;  %s3757_s0 = sld [smem:[#allocation11 + $0x12]]  ;;  %v923_v29 = vmul.f32 %v3505_v62, %v922_v17  ;;  %v893_v51 = vadd.f32 %v892_v38, %v889_v37 }
 0x17b   :  { %v916_v26 = vadd.f32 %v915_v13, %v912_v16  ;;  %s3761_s7 = sld [smem:[#allocation10 + $0xb5]]  ;;  %v927_v28 = vmul.f32 %v3525_v58, %v926_v22  ;;  %v930_v32 = vstv %s3734_s25  ;;  %v900_v13 = vmul.f32 %v3603_v57, %v899_v48 }
 0x17c   :  { %s3764_s14 = sld [smem:[#allocation10 + $0xb6]]  ;;  %v931_v44 = vmul.f32 %v3535_v7, %v930_v32  ;;  %v934_v6 = vstv %s3738_s18  ;;  %v897_v12 = vadd.f32 %v896_v47, %v893_v51  ;;  %2620 = vtanh.f32 %v858_v3 }
 0x17d   :  { %v920_v31 = vadd.f32 %v919_v49, %v916_v26  ;;  %s3768_s5 = sld [smem:[#allocation10 + $0xb7]]  ;;  %v935_v56 = vmul.f32 %v3543_v45, %v934_v6  ;;  %v938_v21 = vstv %s3743_s10 }
 0x17e   :  { %s3774_s27 = sld [smem:[#allocation10 + $0xb8]]  ;;  %v939_v14 = vmul.f32 %v3572_v33, %v938_v21  ;;  %v942_v49 = vstv %s3748_s2 }
 0x17f   :  { %v924_v41 = vadd.f32 %v923_v29, %v920_v31  ;;  %v947_v43 = vstv %s3752_s24  ;;  %s3778_s21 = sld [smem:[#allocation10 + $0xb9]]  ;;  %v901_v29 = vadd.f32 %v900_v13, %v897_v12  ;;  %v943_v30 = vmul.f32 %v3603_v57, %v942_v49 }
 0x180   :  { %v948_v27 = vmul.f32 %v3304_v55, %v947_v43  ;;  %v950_v46 = vstv %s3757_s0  ;;  %s3784_s8 = sld [smem:[#allocation10 + $0xba]] }
 0x181   :  { %v928_v5 = vadd.f32 %v927_v28, %v924_v41  ;;  %v953_v0 = vstv %s3761_s7  ;;  %s3789_s15 = sld [smem:[#allocation10 + $0xbb]]  ;;  %2622 = vtanh.f32 %v901_v29  ;;  %v2617_v51 = vpop.eup %2616 }
 0x182   :  { %v951_v36 = vadd.f32 %v950_v46, %v948_v27  ;;  %v954_v52 = vmul.f32 %v3311_v60, %v953_v0  ;;  %v957_v54 = vstv %s3764_s14  ;;  %s3793_s3 = sld [smem:[#allocation10 + $0xbc]] }
 0x183   :  { %v958_v34 = vmul.f32 %v3328_v9, %v957_v54  ;;  %v961_v59 = vstv %s3768_s5  ;;  %s3799_s12 = sld [smem:[#allocation10 + $0xbd]]  ;;  %v932_v61 = vadd.f32 %v931_v44, %v928_v5 }
 0x184   :  { %v955_v1 = vadd.f32 %v954_v52, %v951_v36  ;;  %v962_v2 = vmul.f32 %v3489_v35, %v961_v59  ;;  %v965_v19 = vstv %s3774_s27  ;;  %s2296_s26 = sld [smem:[#allocation10 + $0xbe]] }
 0x185   :  { %v969_v8 = vstv %s3778_s21  ;;  %s3804_s19 = sld [smem:[#allocation11 + $0x13]]  ;;  %v966_v11 = vmul.f32 %v3505_v62, %v965_v19  ;;  %v936_v16 = vadd.f32 %v935_v56, %v932_v61 }
 0x186   :  { %v959_v10 = vadd.f32 %v958_v34, %v955_v1  ;;  %s3807_s9 = sld [smem:[#allocation10 + $0xbf]]  ;;  %v973_v15 = vstv %s3784_s8  ;;  %v970_v42 = vmul.f32 %v3525_v58, %v969_v8 }
 0x187   :  { %s3812_s29 = sld [smem:[#allocation10 + $0xc0]]  ;;  %v977_v20 = vstv %s3789_s15  ;;  %v974_v23 = vmul.f32 %v3535_v7, %v973_v15  ;;  %v940_v28 = vadd.f32 %v939_v14, %v936_v16 }
 0x188   :  { %v963_v17 = vadd.f32 %v962_v2, %v959_v10  ;;  %s3816_s1 = sld [smem:[#allocation10 + $0xc1]]  ;;  %v981_v24 = vstv %s3793_s3  ;;  %v978_v63 = vmul.f32 %v3543_v45, %v977_v20 }
 0x189   :  { %s3821_s17 = sld [smem:[#allocation10 + $0xc2]]  ;;  %v982_v38 = vmul.f32 %v3572_v33, %v981_v24  ;;  %v985_v41 = vstv %s3799_s12  ;;  %v944_v47 = vadd.f32 %v943_v30, %v940_v28 }
 0x18a   :  { %v967_v22 = vadd.f32 %v966_v11, %v963_v17  ;;  %v990_v26 = vstv %s2296_s26  ;;  %s3825_s23 = sld [smem:[#allocation10 + $0xc3]] }
 0x18b   :  { %v991_v4 = vmul.f32 %v3304_v55, %v990_v26  ;;  %v993_v31 = vstv %s3804_s19  ;;  %s3830_s16 = sld [smem:[#allocation10 + $0xc4]]  ;;  %2624 = vtanh.f32 %v944_v47 }
 0x18c   :  { %v971_v32 = vadd.f32 %v970_v42, %v967_v22  ;;  %v996_v37 = vstv %s3807_s9  ;;  %s3834_s13 = sld [smem:[#allocation10 + $0xc5]] }
 0x18d   :  { %v994_v39 = vadd.f32 %v993_v31, %v991_v4  ;;  %v997_v25 = vmul.f32 %v3311_v60, %v996_v37  ;;  %v1000_v40 = vstv %s3812_s29  ;;  %s3839_s28 = sld [smem:[#allocation10 + $0xc6]]  ;;  %v986_v60 = vmul.f32 %v3603_v57, %v985_v41 }
 0x18e   :  { %v975_v55 = vadd.f32 %v974_v23, %v971_v32  ;;  %v1001_v43 = vmul.f32 %v3328_v9, %v1000_v40  ;;  %v1004_v44 = vstv %s3816_s1  ;;  %s3844_s22 = sld [smem:[#allocation10 + $0xc7]] }
 0x18f   :  { %v998_v6 = vadd.f32 %v997_v25, %v994_v39  ;;  %v1005_v27 = vmul.f32 %v3489_v35, %v1004_v44  ;;  %v1008_v46 = vstv %s3821_s17  ;;  %s1032_s30 = sld [smem:[#allocation13]]  ;;  %v2619_v35 = vpop.eup %2618 }
 0x190   :  { %v979_v48 = vadd.f32 %v978_v63, %v975_v55  ;;  %v1012_v5 = vstv %s3825_s23  ;;  %s2307_s6 = sld [smem:[#allocation13 + $0x1]]  ;;  %v1009_v9 = vmul.f32 %v3505_v62, %v1008_v46 }
 0x191   :  { %v1002_v0 = vadd.f32 %v1001_v43, %v998_v6  ;;  %s2308_s4 = sld [smem:[#allocation13 + $0x2]]  ;;  %v1016_v52 = vstv %s3830_s16  ;;  %v1013_v56 = vmul.f32 %v3525_v58, %v1012_v5  ;;  %v2621_v58 = vpop.eup %2620 }
 0x192   :  { %v983_v36 = vadd.f32 %v982_v38, %v979_v48  ;;  %s3852_s11 = sld [smem:[#allocation13 + $0x3]]  ;;  %v1020_v21 = vstv %s3834_s13  ;;  %v1017_v61 = vmul.f32 %v3535_v7, %v1016_v52 }
 0x193   :  { %v1006_v54 = vadd.f32 %v1005_v27, %v1002_v0  ;;  %s3855_s20 = sld [smem:[#allocation13 + $0x4]]  ;;  %v1024_v2 = vstv %s3839_s28  ;;  %v1021_v10 = vmul.f32 %v3543_v45, %v1020_v21  ;;  %v3971_v27 = vld [vmem:[#allocation3 + $0x8] sm:$0xff] }
 0x194   :  { %s4997_s10 = sld [smem:[#allocation45_spill]]  ;;  %v987_v62 = vadd.f32 %v986_v60, %v983_v36  ;;  %v1028_v7 = vstv %s3844_s22  ;;  %v1025_v45 = vmul.f32 %v3572_v33, %v1024_v2  ;;  %v2623_v33 = vpop.eup %2622 }
 0x195   :  { %s3861_s2 = sld [smem:[#allocation13 + $0x5]]  ;;  %v1010_v59 = vadd.f32 %v1009_v9, %v1006_v54  ;;  %v1033_v1 = vstv %s1032_s30  ;;  %v1029_v42 = vmul.f32 %v3603_v57, %v1028_v7 }
 0x196   :  { %s3864_s24 = sld [smem:[#allocation13 + $0x6]]  ;;  %v1034_v19 = vmul.f32 %v3723_v50, %v1033_v1  ;;  %v1039_v3 = vstv %s2307_s6  ;;  %2626 = vtanh.f32 %v987_v62 }
 0x197   :  { %s3868_s0 = sld [smem:[#allocation13 + $0x7]]  ;;  %v1014_v8 = vadd.f32 %v1013_v56, %v1010_v59  ;;  %v1040_v11 = vmul.f32 %v3770_v53, %v1039_v3  ;;  %v1043_v12 = vstv %s2308_s4 }
 0x198   :  { %s3872_s7 = sld [smem:[#allocation13 + $0x8]]  ;;  %v1044_v50 = vmul.f32 %v3818_v18, %v1043_v12  ;;  %v1047_v14 = vstv %s3852_s11  ;;  %v2625_v4 = vpop.eup %2624 }
 0x199   :  { %s3881_s27 = sld [smem:[#allocation13 + $0x9]]  ;;  %v1018_v15 = vadd.f32 %v1017_v61, %v1014_v8  ;;  %v1051_v53 = vstv %s3855_s20  ;;  %v1048_v49 = vmul.f32 %v2617_v51, %v1047_v14 }
 0x19a   :  { %v1036_v34 = vstv %s4997_s10  ;;  %s3885_s21 = sld [smem:[#allocation7]]  ;;  %v1052_v22 = vmul.f32 %v2619_v35, %v1051_v53 }
 0x19b   :  { %v1037_v13 = vadd.f32 %v1036_v34, %v1034_v19  ;;  %s3887_s8 = sld [smem:[#allocation8]]  ;;  %v1022_v17 = vadd.f32 %v1021_v10, %v1018_v15  ;;  %v1055_v20 = vstv %s3861_s2 }
 0x19c   :  { %s3891_s15 = sld [smem:[#allocation7 + $0x1]]  ;;  %v1056_v26 = vmul.f32 %v2621_v58, %v1055_v20  ;;  %v1059_v29 = vstv %s3864_s24 }
 0x19d   :  { %v1041_v16 = vadd.f32 %v1040_v11, %v1037_v13  ;;  %s3893_s3 = sld [smem:[#allocation8 + $0x1]]  ;;  %v1026_v23 = vadd.f32 %v1025_v45, %v1022_v17  ;;  %v1060_v31 = vmul.f32 %v2623_v33, %v1059_v29  ;;  %v1063_v32 = vstv %s3868_s0 }
 0x19e   :  { %s3895_s12 = sld [smem:[#allocation7 + $0x2]]  ;;  %v1064_v37 = vmul.f32 %v2625_v4, %v1063_v32  ;;  %v1067_v39 = vstv %s3872_s7 }
 0x19f   :  { %v1045_v18 = vadd.f32 %v1044_v50, %v1041_v16  ;;  %s3898_s26 = sld [smem:[#allocation8 + $0x2]]  ;;  %v1030_v30 = vadd.f32 %v1029_v42, %v1026_v23  ;;  %v1071_v55 = vstv %s3881_s27 }
 0x1a0   :  { %s3900_s19 = sld [smem:[#allocation7 + $0x3]]  ;;  %v1078_v46 = vstv %s3885_s21 }
 0x1a1   :  { %v1049_v24 = vadd.f32 %v1048_v49, %v1045_v18  ;;  %s3902_s9 = sld [smem:[#allocation8 + $0x3]]  ;;  %2628 = vtanh.f32 %v1030_v30  ;;  %v1079_v47 = vmul.f32 %v1078_v46, %v3971_v27  ;;  %v1081_v48 = vstv %s3887_s8 }
 0x1a2   :  { %s3904_s29 = sld [smem:[#allocation7 + $0x4]]  ;;  %v1085_v5 = vstv %s3891_s15 }
 0x1a3   :  { %v1053_v57 = vadd.f32 %v1052_v22, %v1049_v24  ;;  %s3907_s1 = sld [smem:[#allocation8 + $0x4]]  ;;  %v2627_v38 = vpop.eup %2626  ;;  %v1082_v60 = vadd.f32 %v1081_v48, %v1079_v47  ;;  %v1086_v0 = vmul.f32 %v1085_v5, %v3971_v27  ;;  %v1088_v9 = vstv %s3893_s3 }
 0x1a4   :  { %s3909_s17 = sld [smem:[#allocation7 + $0x5]]  ;;  %v1068_v40 = vmul.f32 %v2627_v38, %v1067_v39  ;;  %v1092_v51 = vstv %s3895_s12 }
 0x1a5   :  { %v1057_v28 = vadd.f32 %v1056_v26, %v1053_v57  ;;  %s3911_s23 = sld [smem:[#allocation8 + $0x5]]  ;;  %2630 = vtanh.f32 %v1082_v60  ;;  %v1089_v36 = vadd.f32 %v1088_v9, %v1086_v0  ;;  %v1093_v52 = vmul.f32 %v1092_v51, %v3971_v27 }
 0x1a6   :  { %s3913_s16 = sld [smem:[#allocation7 + $0x6]]  ;;  %v1095_v35 = vstv %s3898_s26  ;;  %v1099_v54 = vstv %s3900_s19 }
 0x1a7   :  { %v1061_v63 = vadd.f32 %v1060_v31, %v1057_v28  ;;  %s3916_s13 = sld [smem:[#allocation8 + $0x6]]  ;;  %2632 = vtanh.f32 %v1089_v36  ;;  %v1096_v56 = vadd.f32 %v1095_v35, %v1093_v52  ;;  %v1100_v21 = vmul.f32 %v1099_v54, %v3971_v27 }
 0x1a8   :  { %s3918_s28 = sld [smem:[#allocation7 + $0x7]]  ;;  %v1102_v62 = vstv %s3902_s9  ;;  %v1106_v59 = vstv %s3904_s29 }
 0x1a9   :  { %s3920_s22 = sld [smem:[#allocation8 + $0x7]]  ;;  %v1065_v25 = vadd.f32 %v1064_v37, %v1061_v63  ;;  %2634 = vtanh.f32 %v1096_v56  ;;  %v1103_v1 = vadd.f32 %v1102_v62, %v1100_v21  ;;  %v1107_v58 = vmul.f32 %v1106_v59, %v3971_v27 }
 0x1aa   :  { %s3922_s30 = sld [smem:[#allocation7 + $0x8]]  ;;  %v1113_v61 = vstv %s3909_s17  ;;  %v1109_v2 = vstv %s3907_s1 }
 0x1ab   :  { %s3924_s6 = sld [smem:[#allocation8 + $0x8]]  ;;  %v1069_v41 = vadd.f32 %v1068_v40, %v1065_v25  ;;  %v1114_v19 = vmul.f32 %v1113_v61, %v3971_v27  ;;  %v1116_v3 = vstv %s3911_s23  ;;  %2636 = vtanh.f32 %v1103_v1 }
 0x1ac   :  { %s3926_s4 = sld [smem:[#allocation7 + $0x9]]  ;;  %v1110_v8 = vadd.f32 %v1109_v2, %v1107_v58  ;;  %v1120_v10 = vstv %s3913_s16 }
 0x1ad   :  { %s3929_s11 = sld [smem:[#allocation8 + $0x9]]  ;;  %v1117_v7 = vadd.f32 %v1116_v3, %v1114_v19  ;;  %v1121_v50 = vmul.f32 %v1120_v10, %v3971_v27  ;;  %v1123_v15 = vstv %s3916_s13 }
 0x1ae   :  { %s3931_s20 = sld [smem:[#allocation10]]  ;;  %v2629_v43 = vpop.eup %2628  ;;  %v1127_v14 = vstv %s3918_s28  ;;  %2638 = vtanh.f32 %v1110_v8 }
 0x1af   :  { %s3933_s25 = sld [smem:[#allocation11]]  ;;  %v1072_v44 = vmul.f32 %v2629_v43, %v1071_v55  ;;  %2640 = vtanh.f32 %v1117_v7  ;;  %v1128_v20 = vmul.f32 %v1127_v14, %v3971_v27  ;;  %v1124_v23 = vadd.f32 %v1123_v15, %v1121_v50 }
 0x1b0   :  { %s3935_s18 = sld [smem:[#allocation10 + $0x1]]  ;;  %v1130_v33 = vstv %s3920_s22  ;;  %v1134_v24 = vstv %s3922_s30 }
 0x1b1   :  { %4998 = sst [smem:[#allocation35_spill]] %s3924_s6  ;;  %v1073_v6 = vadd.f32 %v1072_v44, %v1069_v41  ;;  %v1131_v37 = vadd.f32 %v1130_v33, %v1128_v20  ;;  %v1135_v38 = vmul.f32 %v1134_v24, %v3971_v27  ;;  %2642 = vtanh.f32 %v1124_v23 }
 0x1b2   :  { %4999 = sst [smem:[#allocation40_spill]] %s3926_s4  ;;  %v4040_v11 = vpop.eup %2630 }
 0x1b3   :  { %5000 = sst [smem:[#allocation29_spill]] %s3929_s11  ;;  %1074 = vst [vmem:[#allocation14] sm:$0xff] %v1073_v6  ;;  %2644 = vtanh.f32 %v1131_v37 }
 0x1b4   :  { %s3937_s2 = sld [smem:[#allocation10 + $0x2]]  ;;  %v1148_v12 = vstv %s3931_s20  ;;  %v4057_v16 = vpop.eup %2632 }
 0x1b5   :  { %s3939_s24 = sld [smem:[#allocation10 + $0x3]]  ;;  %v1149_v45 = vmul.f32 %v4040_v11, %v1148_v12  ;;  %v1151_v49 = vstv %s3933_s25 }
 0x1b6   :  { %s3941_s0 = sld [smem:[#allocation10 + $0x4]]  ;;  %v1154_v17 = vstv %s3935_s18  ;;  %v4079_v31 = vpop.eup %2634 }
 0x1b7   :  { %s3943_s7 = sld [smem:[#allocation10 + $0x5]]  ;;  %v1152_v29 = vadd.f32 %v1151_v49, %v1149_v45  ;;  %v1155_v30 = vmul.f32 %v4057_v16, %v1154_v17 }
 0x1b8   :  { %s3945_s14 = sld [smem:[#allocation10 + $0x6]]  ;;  %v4098_v46 = vpop.eup %2636 }
 0x1b9   :  { %s3947_s5 = sld [smem:[#allocation10 + $0x7]]  ;;  %v1156_v43 = vadd.f32 %v1155_v30, %v1152_v29 }
 0x1ba   :  { %5001 = sst [smem:[#allocation36_spill]] %s3937_s2 }
 0x1bb   :  { %5002 = sst [smem:[#allocation41_spill]] %s3939_s24 }
 0x1bc   :  { %5003 = sst [smem:[#allocation30_spill]] %s3941_s0 }
 0x1bd   :  { %5004 = sst [smem:[#allocation37_spill]] %s3943_s7 }
 0x1be   :  { %5005 = sst [smem:[#allocation42_spill]] %s3945_s14 }
 0x1bf   :  { %5006 = sst [smem:[#allocation43_spill]] %s3947_s5 }
 0x1c0   :  { %s3949_s27 = sld [smem:[#allocation10 + $0x8]] }
 0x1c1   :  { %s3951_s10 = sld [smem:[#allocation10 + $0x9]] }
 0x1c2   :  { %s3953_s11 = sld [smem:[#allocation10 + $0xa]] }
 0x1c3   :  { %s3955_s4 = sld [smem:[#allocation11 + $0x1]] }
 0x1c4   :  { %s3957_s24 = sld [smem:[#allocation10 + $0xb]] }
 0x1c5   :  { %s3959_s0 = sld [smem:[#allocation10 + $0xc]] }
 0x1c6   :  { %5007 = sst [smem:[#allocation44_spill]] %s3949_s27 }
 0x1c7   :  { %5008 = sst [smem:[#allocation23_spill]] %s3951_s10 }
 0x1c8   :  { %s3961_s6 = sld [smem:[#allocation10 + $0xd]]  ;;  %v1191_v13 = vstv %s3953_s11 }
 0x1c9   :  { %s3963_s7 = sld [smem:[#allocation10 + $0xe]]  ;;  %v1192_v42 = vmul.f32 %v4040_v11, %v1191_v13  ;;  %v1194_v18 = vstv %s3955_s4 }
 0x1ca   :  { %s3965_s14 = sld [smem:[#allocation10 + $0xf]]  ;;  %v1197_v22 = vstv %s3957_s24 }
 0x1cb   :  { %5009 = sst [smem:[#allocation31_spill]] %s3959_s0  ;;  %v1195_v32 = vadd.f32 %v1194_v18, %v1192_v42  ;;  %v1198_v63 = vmul.f32 %v4057_v16, %v1197_v22 }
 0x1cc   :  { %s3967_s5 = sld [smem:[#allocation10 + $0x10]] }
 0x1cd   :  { %s3969_s27 = sld [smem:[#allocation10 + $0x11]]  ;;  %v1199_v48 = vadd.f32 %v1198_v63, %v1195_v32 }
 0x1ce   :  { %s3974_s10 = sld [smem:[#allocation10 + $0x12]]  ;;  %v1205_v9 = vstv %s3961_s6 }
 0x1cf   :  { %5010 = sst [smem:[#allocation20_spill]] %s3963_s7  ;;  %v1206_v61 = vmul.f32 %v4098_v46, %v1205_v9 }
 0x1d0   :  { %5011 = sst [smem:[#allocation38_spill]] %s3965_s14 }
 0x1d1   :  { %s3976_s2 = sld [smem:[#allocation10 + $0x13]] }
 0x1d2   :  { %5012 = sst [smem:[#allocation21_spill]] %s3967_s5 }
 0x1d3   :  { %5013 = sst [smem:[#allocation24_spill]] %s3969_s27 }
 0x1d4   :  { %5014 = sst [smem:[#allocation26_spill]] %s3974_s10 }
 0x1d5   :  { %s3978_s0 = sld [smem:[#allocation10 + $0x14]] }
 0x1d6   :  { %s3981_s7 = sld [smem:[#allocation11 + $0x2]] }
 0x1d7   :  { %5015 = sst [smem:[#allocation22_spill]] %s3976_s2 }
 0x1d8   :  { %s3985_s5 = sld [smem:[#allocation10 + $0x15]] }
 0x1d9   :  { %s3987_s27 = sld [smem:[#allocation10 + $0x16]] }
 0x1da   :  { %s3989_s14 = sld [smem:[#allocation10 + $0x17]] }
 0x1db   :  { %s3992_s21 = sld [smem:[#allocation10 + $0x18]]  ;;  %v1234_v53 = vstv %s3978_s0 }
 0x1dc   :  { %s3996_s2 = sld [smem:[#allocation10 + $0x19]]  ;;  %v1235_v26 = vmul.f32 %v4040_v11, %v1234_v53  ;;  %v1237_v57 = vstv %s3981_s7 }
 0x1dd   :  { %s3998_s8 = sld [smem:[#allocation10 + $0x1a]] }
 0x1de   :  { %s4000_s15 = sld [smem:[#allocation10 + $0x1b]]  ;;  %v1240_v4 = vstv %s3985_s5  ;;  %v1238_v55 = vadd.f32 %v1237_v57, %v1235_v26 }
 0x1df   :  { %s4003_s10 = sld [smem:[#allocation10 + $0x1c]]  ;;  %v1241_v41 = vmul.f32 %v4057_v16, %v1240_v4  ;;  %v1244_v6 = vstv %s3987_s27 }
 0x1e0   :  { %s4009_s3 = sld [smem:[#allocation10 + $0x1e]]  ;;  %v1245_v52 = vmul.f32 %v4079_v31, %v1244_v6  ;;  %v1248_v56 = vstv %s3989_s14 }
 0x1e1   :  { %5016 = sst [smem:[#allocation33_spill]] %s3992_s21  ;;  %v1242_v36 = vadd.f32 %v1241_v41, %v1238_v55  ;;  %v1249_v3 = vmul.f32 %v4098_v46, %v1248_v56 }
 0x1e2   :  { %s4007_s21 = sld [smem:[#allocation10 + $0x1d]]  ;;  %v1256_v42 = vstv %s3996_s2 }
 0x1e3   :  { %5017 = sst [smem:[#allocation25_spill]] %s3998_s8  ;;  %v1246_v19 = vadd.f32 %v1245_v52, %v1242_v36 }
 0x1e4   :  { %5018 = sst [smem:[#allocation27_spill]] %s4000_s15 }
 0x1e5   :  { %5019 = sst [smem:[#allocation28_spill]] %s4003_s10  ;;  %v1250_v17 = vadd.f32 %v1249_v3, %v1246_v19 }
 0x1e6   :  { %s4011_s12 = sld [smem:[#allocation11 + $0x3]]  ;;  %v1277_v21 = vstv %s4009_s3 }
 0x1e7   :  { %s4014_s15 = sld [smem:[#allocation10 + $0x1f]]  ;;  %v1278_v10 = vmul.f32 %v4040_v11, %v1277_v21 }
 0x1e8   :  { %5020 = sst [smem:[#allocation32_spill]] %s4007_s21 }
 0x1e9   :  { %s4018_s8 = sld [smem:[#allocation10 + $0x20]] }
 0x1ea   :  { %s4020_s26 = sld [smem:[#allocation10 + $0x21]] }
 0x1eb   :  { %s4023_s19 = sld [smem:[#allocation10 + $0x22]] }
 0x1ec   :  { %s4026_s21 = sld [smem:[#allocation10 + $0x23]]  ;;  %v1280_v13 = vstv %s4011_s12 }
 0x1ed   :  { %s4029_s10 = sld [smem:[#allocation10 + $0x24]]  ;;  %v1283_v50 = vstv %s4014_s15  ;;  %v1281_v20 = vadd.f32 %v1280_v13, %v1278_v10 }
 0x1ee   :  { %s4032_s9 = sld [smem:[#allocation10 + $0x25]]  ;;  %v1284_v18 = vmul.f32 %v4057_v16, %v1283_v50 }
 0x1ef   :  { %s4035_s29 = sld [smem:[#allocation10 + $0x26]]  ;;  %v1287_v33 = vstv %s4018_s8 }
 0x1f0   :  { %s4038_s17 = sld [smem:[#allocation10 + $0x27]]  ;;  %v1285_v63 = vadd.f32 %v1284_v18, %v1281_v20  ;;  %v1288_v37 = vmul.f32 %v4079_v31, %v1287_v33 }
 0x1f1   :  { %s4043_s1 = sld [smem:[#allocation10 + $0x28]]  ;;  %v1295_v36 = vstv %s4023_s19 }
 0x1f2   :  { %s4050_s23 = sld [smem:[#allocation10 + $0x29]]  ;;  %v1299_v3 = vstv %s4026_s21 }
 0x1f3   :  { %s4055_s16 = sld [smem:[#allocation10 + $0x2a]]  ;;  %v1303_v20 = vstv %s4029_s10 }
 0x1f4   :  { %5021 = sst [smem:[#allocation34_spill]] %s4032_s9 }
 0x1f5   :  { %s4046_s9 = sld [smem:[#allocation11 + $0x4]] }
 0x1f6   :  { %s4062_s28 = sld [smem:[#allocation10 + $0x2b]] }
 0x1f7   :  { %s5023_s11 = sld [smem:[#allocation36_spill]]  ;;  %v1320_v13 = vstv %s4043_s1 }
 0x1f8   :  { %s4067_s13 = sld [smem:[#allocation10 + $0x2c]]  ;;  %v1321_v18 = vmul.f32 %v4040_v11, %v1320_v13 }
 0x1f9   :  { %s5024_s20 = sld [smem:[#allocation31_spill]] }
 0x1fa   :  { %s5025_s25 = sld [smem:[#allocation35_spill]] }
 0x1fb   :  { %s4072_s18 = sld [smem:[#allocation10 + $0x2d]]  ;;  %v1323_v33 = vstv %s4046_s9 }
 0x1fc   :  { %5022 = sst [smem:[#allocation39_spill]] %s4062_s28 }
 0x1fd   :  { %s5026_s0 = sld [smem:[#allocation40_spill]]  ;;  %v1158_v28 = vstv %s5023_s11 }
 0x1fe   :  { %s4077_s28 = sld [smem:[#allocation10 + $0x2e]]  ;;  %v1159_v44 = vmul.f32 %v4079_v31, %v1158_v28 }
 0x1ff   :  { %s4083_s22 = sld [smem:[#allocation10 + $0x2f]]  ;;  %v1201_v39 = vstv %s5024_s20 }
 0x200   :  { %s5027_s30 = sld [smem:[#allocation41_spill]]  ;;  %v1137_v25 = vstv %s5025_s25  ;;  %v1202_v5 = vmul.f32 %v4079_v31, %v1201_v39  ;;  %v1160_v35 = vadd.f32 %v1159_v44, %v1156_v43 }
 0x201   :  { %s4087_s4 = sld [smem:[#allocation10 + $0x30]]  ;;  %v1138_v60 = vadd.f32 %v1137_v25, %v1135_v38 }
 0x202   :  { %s4092_s24 = sld [smem:[#allocation10 + $0x31]]  ;;  %v1203_v59 = vadd.f32 %v1202_v5, %v1199_v48 }
 0x203   :  { %v1141_v40 = vstv %s5026_s0  ;;  %s5030_s7 = sld [smem:[#allocation29_spill]]  ;;  %2646 = vtanh.f32 %v1138_v60  ;;  %v1289_v60 = vadd.f32 %v1288_v37, %v1285_v63  ;;  %v1324_v63 = vadd.f32 %v1323_v33, %v1321_v18 }
 0x204   :  { %s4096_s5 = sld [smem:[#allocation10 + $0x32]]  ;;  %v1142_v0 = vmul.f32 %v1141_v40, %v3971_v27  ;;  %v4117_v27 = vpop.eup %2638  ;;  %v1207_v15 = vadd.f32 %v1206_v61, %v1203_v59  ;;  %v1291_v40 = vstv %s4020_s26 }
 0x205   :  { %s4102_s11 = sld [smem:[#allocation11 + $0x5]]  ;;  %v4126_v2 = vpop.eup %2640 }
 0x206   :  { %v1162_v47 = vstv %s5027_s30  ;;  %s5031_s20 = sld [smem:[#allocation30_spill]]  ;;  %v4154_v24 = vpop.eup %2642  ;;  %v1257_v4 = vmul.f32 %v4126_v2, %v1256_v42 }
 0x207   :  { %5028 = sst [smem:[#allocation36_spill]] %s4087_s4  ;;  %v1163_v54 = vmul.f32 %v4098_v46, %v1162_v47  ;;  %v4168_v38 = vpop.eup %2644 }
 0x208   :  { %5029 = sst [smem:[#allocation31_spill]] %s4092_s24 }
 0x209   :  { %s4106_s25 = sld [smem:[#allocation10 + $0x33]]  ;;  %v1144_v51 = vstv %s5030_s7  ;;  %v1164_v12 = vadd.f32 %v1163_v54, %v1160_v35 }
 0x20a   :  { %s5032_s27 = sld [smem:[#allocation20_spill]]  ;;  %v1145_v1 = vadd.f32 %v1144_v51, %v1142_v0  ;;  %v1292_v0 = vmul.f32 %v4098_v46, %v1291_v40 }
 0x20b   :  { %s4110_s0 = sld [smem:[#allocation10 + $0x34]] }
 0x20c   :  { %s5033_s30 = sld [smem:[#allocation33_spill]]  ;;  %v1166_v62 = vstv %s5031_s20  ;;  %2648 = vtanh.f32 %v1145_v1  ;;  %v1293_v61 = vadd.f32 %v1292_v0, %v1289_v60  ;;  %v1296_v1 = vmul.f32 %v4117_v27, %v1295_v36 }
 0x20d   :  { %s4115_s24 = sld [smem:[#allocation10 + $0x35]]  ;;  %v1167_v7 = vmul.f32 %v4117_v27, %v1166_v62 }
 0x20e   :  { %s4121_s6 = sld [smem:[#allocation10 + $0x36]] }
 0x20f   :  { %s5035_s7 = sld [smem:[#allocation37_spill]]  ;;  %v1168_v22 = vadd.f32 %v1167_v7, %v1164_v12 }
 0x210   :  { %v1209_v58 = vstv %s5032_s27  ;;  %s4124_s4 = sld [smem:[#allocation10 + $0x37]]  ;;  %v4182_v47 = vpop.eup %2646 }
 0x211   :  { %s5037_s14 = sld [smem:[#allocation38_spill]]  ;;  %v1210_v45 = vmul.f32 %v4117_v27, %v1209_v58  ;;  %v1373_v13 = vstv %s4110_s0 }
 0x212   :  { %v1252_v8 = vstv %s5033_s30  ;;  %s4131_s3 = sld [smem:[#allocation10 + $0x38]] }
 0x213   :  { %s4136_s20 = sld [smem:[#allocation10 + $0x39]]  ;;  %v1253_v49 = vmul.f32 %v4117_v27, %v1252_v8  ;;  %v1211_v29 = vadd.f32 %v1210_v45, %v1207_v15 }
 0x214   :  { %5034 = sst [smem:[#allocation35_spill]] %s4121_s6 }
 0x215   :  { %v1170_v14 = vstv %s5035_s7  ;;  %s5040_s27 = sld [smem:[#allocation42_spill]]  ;;  %v1254_v28 = vadd.f32 %v1253_v49, %v1250_v17  ;;  %v1300_v49 = vmul.f32 %v4126_v2, %v1299_v3 }
 0x216   :  { %5036 = sst [smem:[#allocation40_spill]] %s4124_s4  ;;  %v1171_v23 = vmul.f32 %v4126_v2, %v1170_v14 }
 0x217   :  { %s4140_s4 = sld [smem:[#allocation10 + $0x3a]]  ;;  %v1213_v53 = vstv %s5037_s14  ;;  %v1258_v48 = vadd.f32 %v1257_v4, %v1254_v28  ;;  %v1304_v4 = vmul.f32 %v4154_v24, %v1303_v20 }
 0x218   :  { %5038 = sst [smem:[#allocation41_spill]] %s4131_s3  ;;  %v1214_v30 = vmul.f32 %v4126_v2, %v1213_v53  ;;  %v1172_v39 = vadd.f32 %v1171_v23, %v1168_v22  ;;  %v1297_v53 = vadd.f32 %v1296_v1, %v1293_v61  ;;  %v1342_v61 = vstv %s4072_s18 }
 0x219   :  { %5039 = sst [smem:[#allocation29_spill]] %s4136_s20  ;;  %v4208_v8 = vpop.eup %2648 }
 0x21a   :  { %s4144_s30 = sld [smem:[#allocation10 + $0x3b]]  ;;  %v1215_v41 = vadd.f32 %v1214_v30, %v1211_v29 }
 0x21b   :  { %s5043_s3 = sld [smem:[#allocation21_spill]]  ;;  %v1174_v26 = vstv %s5040_s27 }
 0x21c   :  { %s5044_s15 = sld [smem:[#allocation25_spill]]  ;;  %v1175_v25 = vmul.f32 %v4154_v24, %v1174_v26  ;;  %v1326_v26 = vstv %s4050_s23 }
 0x21d   :  { %5041 = sst [smem:[#allocation30_spill]] %s4140_s4  ;;  %v1327_v37 = vmul.f32 %v4057_v16, %v1326_v26  ;;  %v1377_v26 = vstv %s4115_s24 }
 0x21e   :  { %s4148_s12 = sld [smem:[#allocation10 + $0x3c]]  ;;  %v1176_v9 = vadd.f32 %v1175_v25, %v1172_v39  ;;  %v1330_v25 = vstv %s4055_s16 }
 0x21f   :  { %s4152_s7 = sld [smem:[#allocation11 + $0x6]] }
 0x220   :  { %5042 = sst [smem:[#allocation20_spill]] %s4144_s30 }
 0x221   :  { %s5045_s2 = sld [smem:[#allocation43_spill]]  ;;  %v1217_v57 = vstv %s5043_s3 }
 0x222   :  { %s4158_s14 = sld [smem:[#allocation10 + $0x3d]]  ;;  %v1260_v32 = vstv %s5044_s15  ;;  %v1218_v43 = vmul.f32 %v4154_v24, %v1217_v57  ;;  %v1301_v57 = vadd.f32 %v1300_v49, %v1297_v53 }
 0x223   :  { %s5046_s30 = sld [smem:[#allocation24_spill]]  ;;  %v1261_v6 = vmul.f32 %v4154_v24, %v1260_v32 }
 0x224   :  { %s4162_s4 = sld [smem:[#allocation10 + $0x3e]]  ;;  %v1219_v35 = vadd.f32 %v1218_v43, %v1215_v41  ;;  %v1305_v43 = vadd.f32 %v1304_v4, %v1301_v57 }
 0x225   :  { %s5047_s8 = sld [smem:[#allocation27_spill]]  ;;  %v1262_v62 = vadd.f32 %v1261_v6, %v1258_v48  ;;  %v1315_v6 = vstv %s4038_s17  ;;  %v1328_v48 = vadd.f32 %v1327_v37, %v1324_v63  ;;  %v1409_v3 = vstv %s4152_s7 }
 0x226   :  { %s4166_s20 = sld [smem:[#allocation10 + $0x3f]]  ;;  %v4264_v36 = vmul.f32 %v4208_v8, %v1315_v6 }
 0x227   :  { %s4172_s3 = sld [smem:[#allocation10 + $0x40]]  ;;  %v1178_v55 = vstv %s5045_s2 }
 0x228   :  { %s5049_s27 = sld [smem:[#allocation44_spill]]  ;;  %v1179_v51 = vmul.f32 %v4168_v38, %v1178_v55  ;;  %v1363_v55 = vstv %s4096_s5 }
 0x229   :  { %s4176_s15 = sld [smem:[#allocation10 + $0x41]]  ;;  %v1221_v44 = vstv %s5046_s30  ;;  %v1364_v0 = vmul.f32 %v4040_v11, %v1363_v55 }
 0x22a   :  { %s4180_s6 = sld [smem:[#allocation10 + $0x42]]  ;;  %v1222_v54 = vmul.f32 %v4168_v38, %v1221_v44  ;;  %v1180_v58 = vadd.f32 %v1179_v51, %v1176_v9  ;;  %v1311_v44 = vstv %s4035_s29  ;;  %v1406_v9 = vstv %s4148_s12 }
 0x22b   :  { %v1264_v5 = vstv %s5047_s8  ;;  %s5053_s26 = sld [smem:[#allocation28_spill]]  ;;  %v1312_v51 = vmul.f32 %v4182_v47, %v1311_v44  ;;  %v1407_v1 = vmul.f32 %v4040_v11, %v1406_v9  ;;  %v1416_v33 = vstv %s4162_s4 }
 0x22c   :  { %5048 = sst [smem:[#allocation33_spill]] %s4166_s20  ;;  %v1265_v21 = vmul.f32 %v4168_v38, %v1264_v5  ;;  %v1223_v12 = vadd.f32 %v1222_v54, %v1219_v35  ;;  %v1331_v5 = vmul.f32 %v4079_v31, %v1330_v25  ;;  %v1369_v35 = vstv %s4106_s25 }
 0x22d   :  { %s5051_s20 = sld [smem:[#allocation26_spill]] }
 0x22e   :  { %s4186_s2 = sld [smem:[#allocation10 + $0x43]]  ;;  %v1182_v52 = vstv %s5049_s27  ;;  %v1266_v15 = vadd.f32 %v1265_v21, %v1262_v62  ;;  %v1332_v62 = vadd.f32 %v1331_v5, %v1328_v48 }
 0x22f   :  { %5050 = sst [smem:[#allocation37_spill]] %s4176_s15  ;;  %v1183_v19 = vmul.f32 %v4182_v47, %v1182_v52  ;;  %v1366_v52 = vstv %s4102_s11 }
 0x230   :  { %5052 = sst [smem:[#allocation38_spill]] %s4180_s6 }
 0x231   :  { %s4190_s30 = sld [smem:[#allocation10 + $0x44]]  ;;  %v1268_v59 = vstv %s5053_s26  ;;  %v1184_v17 = vadd.f32 %v1183_v19, %v1180_v58  ;;  %v1367_v58 = vadd.f32 %v1366_v52, %v1364_v0  ;;  %v1370_v19 = vmul.f32 %v4057_v16, %v1369_v35 }
 0x232   :  { %s5056_s6 = sld [smem:[#allocation23_spill]]  ;;  %v1269_v14 = vmul.f32 %v4182_v47, %v1268_v59 }
 0x233   :  { %s4194_s15 = sld [smem:[#allocation10 + $0x45]]  ;;  %v1225_v56 = vstv %s5051_s20 }
 0x234   :  { %5054 = sst [smem:[#allocation42_spill]] %s4186_s2  ;;  %v1226_v7 = vmul.f32 %v4182_v47, %v1225_v56  ;;  %v1270_v30 = vadd.f32 %v1269_v14, %v1266_v15  ;;  %v1338_v56 = vstv %s4067_s13  ;;  %v1343_v15 = vmul.f32 %v4126_v2, %v1342_v61 }
 0x235   :  { %s4198_s8 = sld [smem:[#allocation10 + $0x46]] }
 0x236   :  { %s5058_s2 = sld [smem:[#allocation22_spill]]  ;;  %v1227_v22 = vadd.f32 %v1226_v7, %v1223_v12  ;;  %v1339_v12 = vmul.f32 %v4117_v27, %v1338_v56  ;;  %v1346_v7 = vstv %s4077_s28 }
 0x237   :  { %5055 = sst [smem:[#allocation21_spill]] %s4190_s30  ;;  %v4302_v18 = vmul.f32 %v4154_v24, %v1346_v7 }
 0x238   :  { %s5059_s19 = sld [smem:[#allocation32_spill]]  ;;  %v1186_v10 = vstv %s5056_s6 }
 0x239   :  { %5057 = sst [smem:[#allocation25_spill]] %s4194_s15  ;;  %v1187_v42 = vmul.f32 %v4208_v8, %v1186_v10  ;;  %v1412_v10 = vstv %s4158_s14 }
 0x23a   :  { %s4202_s27 = sld [smem:[#allocation11 + $0x7]]  ;;  %v1413_v20 = vmul.f32 %v4057_v16, %v1412_v10 }
 0x23b   :  { %s4206_s15 = sld [smem:[#allocation10 + $0x47]]  ;;  %v1188_v32 = vadd.f32 %v1187_v42, %v1184_v17  ;;  %v1449_v21 = vstv %s4198_s8  ;;  %v1350_v17 = vstv %s4083_s22  ;;  %v1410_v42 = vadd.f32 %v1409_v3, %v1407_v1 }
 0x23c   :  { %s4213_s20 = sld [smem:[#allocation10 + $0x48]]  ;;  %v1229_v50 = vstv %s5058_s2  ;;  %v4314_v4 = vmul.f32 %v4168_v38, %v1350_v17 }
 0x23d   :  { %s4217_s26 = sld [smem:[#allocation10 + $0x49]]  ;;  %v1230_v23 = vmul.f32 %v4208_v8, %v1229_v50  ;;  %2650 = vtanh.f32 %v1188_v32  ;;  %v1450_v50 = vmul.f32 %v4040_v11, %v1449_v21  ;;  %v1414_v25 = vadd.f32 %v1413_v20, %v1410_v42 }
 0x23e   :  { %v1272_v45 = vstv %s5059_s19  ;;  %s4221_s21 = sld [smem:[#allocation10 + $0x4a]] }
 0x23f   :  { %s5060_s6 = sld [smem:[#allocation34_spill]]  ;;  %v1273_v29 = vmul.f32 %v4208_v8, %v1272_v45  ;;  %v1231_v39 = vadd.f32 %v1230_v23, %v1227_v22  ;;  %v1371_v22 = vadd.f32 %v1370_v19, %v1367_v58  ;;  %v1374_v23 = vmul.f32 %v4079_v31, %v1373_v13 }
 0x240   :  { %s4226_s1 = sld [smem:[#allocation10 + $0x4b]]  ;;  %v1452_v45 = vstv %s4202_s27  ;;  %v1424_v58 = vstv %s4172_s3 }
 0x241   :  { %s4231_s2 = sld [smem:[#allocation10 + $0x4c]]  ;;  %v1274_v41 = vadd.f32 %v1273_v29, %v1270_v30  ;;  %2652 = vtanh.f32 %v1231_v39  ;;  %v1455_v53 = vstv %s4206_s15  ;;  %v1453_v29 = vadd.f32 %v1452_v45, %v1450_v50 }
 0x242   :  { %s4234_s19 = sld [smem:[#allocation10 + $0x4d]]  ;;  %v1456_v30 = vmul.f32 %v4057_v16, %v1455_v53  ;;  %v1459_v63 = vstv %s4213_s20 }
 0x243   :  { %s4238_s10 = sld [smem:[#allocation10 + $0x4e]]  ;;  %2654 = vtanh.f32 %v1274_v41  ;;  %v1375_v41 = vadd.f32 %v1374_v23, %v1371_v22 }
 0x244   :  { %s4241_s9 = sld [smem:[#allocation10 + $0x4f]]  ;;  %v1457_v5 = vadd.f32 %v1456_v30, %v1453_v29  ;;  %v1467_v53 = vstv %s4221_s21 }
 0x245   :  { %v1307_v28 = vstv %s5060_s6  ;;  %s5062_s23 = sld [smem:[#allocation39_spill]]  ;;  %v1468_v30 = vmul.f32 %v4117_v27, %v1467_v53 }
 0x246   :  { %s4244_s30 = sld [smem:[#allocation10 + $0x50]]  ;;  %v1308_v40 = vmul.f32 %v4168_v38, %v1307_v28 }
 0x247   :  { %s4252_s6 = sld [smem:[#allocation10 + $0x51]] }
 0x248   :  { %5061 = sst [smem:[#allocation43_spill]] %s4234_s19  ;;  %v1309_v54 = vadd.f32 %v1308_v40, %v1305_v43  ;;  %v1417_v40 = vmul.f32 %v4079_v31, %v1416_v33  ;;  %v1378_v43 = vmul.f32 %v4098_v46, %v1377_v26 }
 0x249   :  { %s4248_s19 = sld [smem:[#allocation11 + $0x8]] }
 0x24a   :  { %s4255_s16 = sld [smem:[#allocation10 + $0x52]]  ;;  %v4290_v14 = vadd.f32 %v1312_v51, %v1309_v54  ;;  %v4325_v55 = vpop.eup %2650  ;;  %v1463_v54 = vstv %s4217_s26  ;;  %v1379_v1 = vadd.f32 %v1378_v43, %v1375_v41 }
 0x24b   :  { %v1334_v60 = vstv %s5062_s23  ;;  %s4260_s5 = sld [smem:[#allocation10 + $0x53]]  ;;  %v1464_v7 = vmul.f32 %v4098_v46, %v1463_v54 }
 0x24c   :  { %s4268_s29 = sld [smem:[#allocation10 + $0x54]]  ;;  %v1335_v59 = vmul.f32 %v4098_v46, %v1334_v60  ;;  %v1492_v57 = vstv %s4244_s30  ;;  %v1460_v60 = vmul.f32 %v4079_v31, %v1459_v63 }
 0x24d   :  { %s4272_s17 = sld [smem:[#allocation10 + $0x55]]  ;;  %v1493_v6 = vmul.f32 %v4040_v11, %v1492_v57  ;;  %v1498_v9 = vstv %s4252_s6 }
 0x24e   :  { %s4277_s11 = sld [smem:[#allocation10 + $0x56]]  ;;  %v1336_v49 = vadd.f32 %v1335_v59, %v1332_v62  ;;  %v4332_v48 = vpop.eup %2652  ;;  %v1418_v62 = vadd.f32 %v1417_v40, %v1414_v25  ;;  %v1499_v3 = vmul.f32 %v4057_v16, %v1498_v9 }
 0x24f   :  { %s4282_s13 = sld [smem:[#allocation10 + $0x57]]  ;;  %v1495_v0 = vstv %s4248_s19 }
 0x250   :  { %s4288_s18 = sld [smem:[#allocation10 + $0x58]]  ;;  %v1340_v37 = vadd.f32 %v1339_v12, %v1336_v49  ;;  %v4349_v56 = vpop.eup %2654  ;;  %v1496_v19 = vadd.f32 %v1495_v0, %v1493_v6  ;;  %v1461_v12 = vadd.f32 %v1460_v60, %v1457_v5  ;;  %v1502_v13 = vstv %s4255_s16 }
 0x251   :  { %s4295_s25 = sld [smem:[#allocation10 + $0x59]]  ;;  %v1503_v26 = vmul.f32 %v4079_v31, %v1502_v13  ;;  %v1506_v57 = vstv %s4260_s5 }
 0x252   :  { %s5063_s12 = sld [smem:[#allocation36_spill]]  ;;  %v1344_v10 = vadd.f32 %v1343_v15, %v1340_v37  ;;  %v1425_v15 = vmul.f32 %v4117_v27, %v1424_v58  ;;  %v1500_v33 = vadd.f32 %v1499_v3, %v1496_v19  ;;  %v1465_v29 = vadd.f32 %v1464_v7, %v1461_v12 }
 0x253   :  { %s5064_s28 = sld [smem:[#allocation31_spill]]  ;;  %v1507_v6 = vmul.f32 %v4098_v46, %v1506_v57  ;;  %v1510_v0 = vstv %s4268_s29  ;;  %v1514_v7 = vstv %s4272_s17 }
 0x254   :  { %s4299_s0 = sld [smem:[#allocation10 + $0x5a]]  ;;  %v1469_v5 = vadd.f32 %v1468_v30, %v1465_v29  ;;  %v1511_v3 = vmul.f32 %v4117_v27, %v1510_v0  ;;  %v1483_v30 = vstv %s4238_s10 }
 0x255   :  { %s5065_s7 = sld [smem:[#allocation35_spill]] }
 0x256   :  { %s4306_s14 = sld [smem:[#allocation11 + $0x9]] }
 0x257   :  { %s5066_s22 = sld [smem:[#allocation33_spill]] }
 0x258   :  { %s4311_s15 = sld [smem:[#allocation10 + $0x5b]]  ;;  %v1354_v28 = vstv %s5063_s12 }
 0x259   :  { %v1358_v32 = vstv %s5064_s28  ;;  %s4319_s8 = sld [smem:[#allocation10 + $0x5c]]  ;;  %v4340_v51 = vmul.f32 %v4182_v47, %v1354_v28 }
 0x25a   :  { %s4323_s4 = sld [smem:[#allocation10 + $0x5d]]  ;;  %v4343_v52 = vmul.f32 %v4208_v8, %v1358_v32  ;;  %v1535_v61 = vstv %s4299_s0  ;;  %v1471_v32 = vstv %s4226_s1 }
 0x25b   :  { %v1381_v39 = vstv %s5065_s7  ;;  %s5067_s24 = sld [smem:[#allocation40_spill]]  ;;  %v1536_v49 = vmul.f32 %v4040_v11, %v1535_v61  ;;  %v1348_v11 = vadd.f32 %v4302_v18, %v1344_v10  ;;  %v1472_v60 = vmul.f32 %v4126_v2, %v1471_v32 }
 0x25c   :  { %s4330_s30 = sld [smem:[#allocation10 + $0x5e]]  ;;  %v1382_v35 = vmul.f32 %v4117_v27, %v1381_v39  ;;  %v1538_v42 = vstv %s4306_s14 }
 0x25d   :  { %v1420_v44 = vstv %s5066_s22  ;;  %s4337_s27 = sld [smem:[#allocation10 + $0x5f]]  ;;  %v1539_v63 = vadd.f32 %v1538_v42, %v1536_v49  ;;  %v1473_v10 = vadd.f32 %v1472_v60, %v1469_v5 }
 0x25e   :  { %s4347_s20 = sld [smem:[#allocation10 + $0x60]]  ;;  %v1421_v59 = vmul.f32 %v4098_v46, %v1420_v44  ;;  %v1541_v20 = vstv %s4311_s15  ;;  %v1383_v22 = vadd.f32 %v1382_v35, %v1379_v1  ;;  %v1504_v44 = vadd.f32 %v1503_v26, %v1500_v33 }
 0x25f   :  { %s5068_s23 = sld [smem:[#allocation41_spill]]  ;;  %v1542_v37 = vmul.f32 %v4057_v16, %v1541_v20  ;;  %v1545_v40 = vstv %s4319_s8  ;;  %v1352_v16 = vadd.f32 %v4314_v4, %v1348_v11  ;;  %v1475_v35 = vstv %s4231_s2 }
 0x260   :  { %s4354_s19 = sld [smem:[#allocation10 + $0x61]]  ;;  %v1422_v17 = vadd.f32 %v1421_v59, %v1418_v62  ;;  %v1549_v61 = vstv %s4323_s4  ;;  %v1508_v19 = vadd.f32 %v1507_v6, %v1504_v44  ;;  %v1476_v12 = vmul.f32 %v4154_v24, %v1475_v35 }
 0x261   :  { %v1385_v21 = vstv %s5067_s24  ;;  %s4358_s26 = sld [smem:[#allocation10 + $0x62]]  ;;  %v1543_v54 = vadd.f32 %v1542_v37, %v1539_v63  ;;  %v1550_v53 = vmul.f32 %v4098_v46, %v1549_v61  ;;  %v1317_v46 = vadd.f32 %v4264_v36, %v4290_v14 }
 0x262   :  { %s5069_s6 = sld [smem:[#allocation37_spill]]  ;;  %v1386_v50 = vmul.f32 %v4126_v2, %v1385_v21  ;;  %v1426_v25 = vadd.f32 %v1425_v15, %v1422_v17  ;;  %v1546_v21 = vmul.f32 %v4079_v31, %v1545_v40  ;;  %v1356_v31 = vadd.f32 %v4340_v51, %v1352_v16 }
 0x263   :  { %s4362_s12 = sld [smem:[#allocation10 + $0x63]]  ;;  %v1553_v15 = vstv %s4330_s30  ;;  %v1477_v33 = vadd.f32 %v1476_v12, %v1473_v10  ;;  %v1518_v11 = vstv %s4277_s11  ;;  %v1557_v63 = vstv %s4337_s27 }
 0x264   :  { %s4368_s3 = sld [smem:[#allocation10 + $0x64]]  ;;  %v1387_v41 = vadd.f32 %v1386_v50, %v1383_v22  ;;  %v1512_v22 = vadd.f32 %v1511_v3, %v1508_v19  ;;  %v1360_v29 = vadd.f32 %v4343_v52, %v1356_v31  ;;  %2656 = vtanh.f32 %v1317_v46 }
 0x265   :  { %v1389_v45 = vstv %s5068_s23  ;;  %s4373_s28 = sld [smem:[#allocation11 + $0xa]]  ;;  %v1522_v40 = vstv %s4282_s13  ;;  %v1558_v44 = vmul.f32 %v4126_v2, %v1557_v63  ;;  %v1561_v60 = vstv %s4347_s20 }
 0x266   :  { %s5070_s16 = sld [smem:[#allocation29_spill]]  ;;  %v1390_v28 = vmul.f32 %v4154_v24, %v1389_v45  ;;  %v1547_v45 = vadd.f32 %v1546_v21, %v1543_v54  ;;  %2658 = vtanh.f32 %v1360_v29  ;;  %v1523_v35 = vmul.f32 %v4168_v38, %v1522_v40 }
 0x267   :  { %s4377_s21 = sld [smem:[#allocation10 + $0x65]]  ;;  %v1526_v21 = vstv %s4288_s18  ;;  %v1565_v19 = vstv %s4354_s19  ;;  %v1530_v10 = vstv %s4295_s25 }
 0x268   :  { %v1428_v23 = vstv %s5069_s6  ;;  %s5071_s0 = sld [smem:[#allocation38_spill]]  ;;  %v1391_v1 = vadd.f32 %v1390_v28, %v1387_v41  ;;  %v1551_v57 = vadd.f32 %v1550_v53, %v1547_v45  ;;  %v1554_v28 = vmul.f32 %v4117_v27, %v1553_v15 }
 0x269   :  { %s4382_s7 = sld [smem:[#allocation10 + $0x66]]  ;;  %v1429_v18 = vmul.f32 %v4126_v2, %v1428_v23  ;;  %v1515_v23 = vmul.f32 %v4126_v2, %v1514_v7  ;;  %v1487_v41 = vstv %s4241_s9  ;;  %v1527_v31 = vmul.f32 %v4182_v47, %v1526_v21 }
 0x26a   :  { %s4387_s14 = sld [smem:[#allocation10 + $0x67]]  ;;  %v1578_v6 = vstv %s4368_s3  ;;  %v1488_v54 = vmul.f32 %v4208_v8, %v1487_v41  ;;  %v1566_v45 = vmul.f32 %v4168_v38, %v1565_v19 }
 0x26b   :  { %s4392_s22 = sld [smem:[#allocation10 + $0x68]]  ;;  %v1430_v59 = vadd.f32 %v1429_v18, %v1426_v25  ;;  %v1516_v52 = vadd.f32 %v1515_v23, %v1512_v22  ;;  %v1519_v25 = vmul.f32 %v4154_v24, %v1518_v11  ;;  %v1484_v18 = vmul.f32 %v4182_v47, %v1483_v30 }
 0x26c   :  { %v1393_v39 = vstv %s5070_s16  ;;  %s5072_s5 = sld [smem:[#allocation30_spill]]  ;;  %v1581_v61 = vstv %s4373_s28  ;;  %v1573_v11 = vstv %s4362_s12 }
 0x26d   :  { %s4396_s1 = sld [smem:[#allocation10 + $0x69]]  ;;  %v1394_v9 = vmul.f32 %v4168_v38, %v1393_v39 }
 0x26e   :  { %v1432_v43 = vstv %s5071_s0  ;;  %s5073_s15 = sld [smem:[#allocation42_spill]] }
 0x26f   :  { %s4401_s24 = sld [smem:[#allocation10 + $0x6a]]  ;;  %v1433_v4 = vmul.f32 %v4154_v24, %v1432_v43  ;;  %v1395_v42 = vadd.f32 %v1394_v9, %v1391_v1  ;;  %v1555_v43 = vadd.f32 %v1554_v28, %v1551_v57  ;;  %v1520_v9 = vadd.f32 %v1519_v25, %v1516_v52 }
 0x270   :  { %s4406_s8 = sld [smem:[#allocation10 + $0x6b]]  ;;  %v1584_v1 = vstv %s4377_s21  ;;  %v1588_v53 = vstv %s4382_s7  ;;  %v1592_v29 = vstv %s4387_s14  ;;  %v1574_v25 = vmul.f32 %v4208_v8, %v1573_v11 }
 0x271   :  { %s5074_s23 = sld [smem:[#allocation43_spill]]  ;;  %v1434_v17 = vadd.f32 %v1433_v4, %v1430_v59  ;;  %v1559_v59 = vadd.f32 %v1558_v44, %v1555_v43  ;;  %v1562_v4 = vmul.f32 %v4154_v24, %v1561_v60  ;;  %v1524_v3 = vadd.f32 %v1523_v35, %v1520_v9  ;;  %v4510_v46 = vpop.eup %2656 }
 0x272   :  { %v1397_v62 = vstv %s5072_s5  ;;  %s4411_s6 = sld [smem:[#allocation10 + $0x6c]]  ;;  %v1589_v23 = vmul.f32 %v4349_v56, %v1588_v53 }
 0x273   :  { %s5075_s29 = sld [smem:[#allocation20_spill]]  ;;  %v1398_v13 = vmul.f32 %v4182_v47, %v1397_v62  ;;  %v1579_v62 = vmul.f32 %v4325_v55, %v1578_v6  ;;  %v1528_v15 = vadd.f32 %v1527_v31, %v1524_v3 }
 0x274   :  { %v1436_v58 = vstv %s5073_s15  ;;  %s4415_s2 = sld [smem:[#allocation10 + $0x6d]] }
 0x275   :  { %s5076_s16 = sld [smem:[#allocation21_spill]]  ;;  %v1437_v51 = vmul.f32 %v4168_v38, %v1436_v58  ;;  %v1399_v37 = vadd.f32 %v1398_v13, %v1395_v42  ;;  %v1582_v7 = vadd.f32 %v1581_v61, %v1579_v62  ;;  %v1585_v13 = vmul.f32 %v4332_v48, %v1584_v1 }
 0x276   :  { %s4420_s0 = sld [smem:[#allocation10 + $0x6e]]  ;;  %v1608_v19 = vstv %s4406_s8 }
 0x277   :  { %v1479_v50 = vstv %s5074_s23  ;;  %s4425_s4 = sld [smem:[#allocation11 + $0xb]]  ;;  %v1438_v36 = vadd.f32 %v1437_v51, %v1434_v17  ;;  %v1569_v17 = vstv %s4358_s26 }
 0x278   :  { %s4430_s5 = sld [smem:[#allocation10 + $0x6f]]  ;;  %v1480_v26 = vmul.f32 %v4168_v38, %v1479_v50  ;;  %v1563_v50 = vadd.f32 %v1562_v4, %v1559_v59  ;;  %v1586_v38 = vadd.f32 %v1585_v13, %v1582_v7 }
 0x279   :  { %v1401_v49 = vstv %s5075_s29  ;;  %s4434_s17 = sld [smem:[#allocation10 + $0x70]] }
 0x27a   :  { %s5077_s15 = sld [smem:[#allocation25_spill]]  ;;  %v1402_v32 = vmul.f32 %v4208_v8, %v1401_v49  ;;  %v1481_v27 = vadd.f32 %v1480_v26, %v1477_v33  ;;  %v1531_v49 = vmul.f32 %v4208_v8, %v1530_v10  ;;  %v1567_v33 = vadd.f32 %v1566_v45, %v1563_v50 }
 0x27b   :  { %v1440_v20 = vstv %s5076_s16  ;;  %s4440_s23 = sld [smem:[#allocation10 + $0x71]]  ;;  %v1570_v26 = vmul.f32 %v4182_v47, %v1569_v17 }
 0x27c   :  { %s4445_s30 = sld [smem:[#allocation10 + $0x72]]  ;;  %v1441_v14 = vmul.f32 %v4182_v47, %v1440_v20  ;;  %v1403_v0 = vadd.f32 %v1402_v32, %v1399_v37  ;;  %v1485_v2 = vadd.f32 %v1484_v18, %v1481_v27  ;;  %v1621_v12 = vstv %s4420_s0  ;;  %v4526_v47 = vpop.eup %2658 }
 0x27d   :  { %s4450_s11 = sld [smem:[#allocation10 + $0x73]]  ;;  %v1622_v51 = vmul.f32 %v4325_v55, %v1621_v12  ;;  %v1624_v42 = vstv %s4425_s4  ;;  %v1590_v37 = vadd.f32 %v1589_v23, %v1586_v38  ;;  %v1571_v52 = vadd.f32 %v1570_v26, %v1567_v33 }
 0x27e   :  { %s4454_s10 = sld [smem:[#allocation10 + $0x74]]  ;;  %v1442_v16 = vadd.f32 %v1441_v14, %v1438_v36  ;;  %2660 = vtanh.f32 %v1403_v0  ;;  %v1489_v24 = vadd.f32 %v1488_v54, %v1485_v2  ;;  %v1627_v20 = vstv %s4430_s5 }
 0x27f   :  { %s4458_s29 = sld [smem:[#allocation10 + $0x75]]  ;;  %v1625_v30 = vadd.f32 %v1624_v42, %v1622_v51  ;;  %v1628_v57 = vmul.f32 %v4332_v48, %v1627_v20  ;;  %v1631_v28 = vstv %s4434_s17  ;;  %v1532_v36 = vadd.f32 %v1531_v49, %v1528_v15 }
 0x280   :  { %v1444_v39 = vstv %s5077_s15  ;;  %s4463_s27 = sld [smem:[#allocation10 + $0x76]]  ;;  %v1596_v27 = vstv %s4392_s22  ;;  %v1632_v18 = vmul.f32 %v4349_v56, %v1631_v28  ;;  %v1575_v60 = vadd.f32 %v1574_v25, %v1571_v52 }
 0x281   :  { %v1445_v5 = vmul.f32 %v4208_v8, %v1444_v39  ;;  %s4467_s16 = sld [smem:[#allocation10 + $0x77]]  ;;  %v1593_v39 = vmul.f32 %v4510_v46, %v1592_v29  ;;  %v1629_v40 = vadd.f32 %v1628_v57, %v1625_v30  ;;  %v1635_v41 = vstv %s4440_s23 }
 0x282   :  { %s4470_s9 = sld [smem:[#allocation10 + $0x78]]  ;;  %v1600_v0 = vstv %s4396_s1  ;;  %v1636_v9 = vmul.f32 %v4510_v46, %v1635_v41  ;;  %v1639_v2 = vstv %s4445_s30  ;;  %v1612_v20 = vstv %s4411_s6 }
 0x283   :  { %s4475_s13 = sld [smem:[#allocation11 + $0xc]]  ;;  %v1446_v58 = vadd.f32 %v1445_v5, %v1442_v16  ;;  %v1594_v8 = vadd.f32 %v1593_v39, %v1590_v37  ;;  %v1597_v16 = vmul.f32 %v4526_v47, %v1596_v27  ;;  %v1633_v35 = vadd.f32 %v1632_v18, %v1629_v40 }
 0x284   :  { %s4480_s20 = sld [smem:[#allocation10 + $0x79]]  ;;  %v1640_v3 = vmul.f32 %v4526_v47, %v1639_v2  ;;  %v1643_v10 = vstv %s4450_s11  ;;  %v1647_v51 = vstv %s4454_s10 }
 0x285   :  { %s4483_s3 = sld [smem:[#allocation10 + $0x7a]]  ;;  %2662 = vtanh.f32 %v1446_v58  ;;  %v1598_v4 = vadd.f32 %v1597_v16, %v1594_v8  ;;  %v1604_v58 = vstv %s4401_s24  ;;  %v1637_v31 = vadd.f32 %v1636_v9, %v1633_v35 }
 0x286   :  { %s4488_s18 = sld [smem:[#allocation10 + $0x7b]]  ;;  %2664 = vtanh.f32 %v1489_v24  ;;  %v1655_v8 = vstv %s4463_s27 }
 0x287   :  { %s4491_s28 = sld [smem:[#allocation10 + $0x7c]]  ;;  %2666 = vtanh.f32 %v1532_v36  ;;  %v1641_v17 = vadd.f32 %v1640_v3, %v1637_v31  ;;  %v1659_v9 = vstv %s4467_s16 }
 0x288   :  { %s4495_s19 = sld [smem:[#allocation10 + $0x7d]]  ;;  %v1664_v22 = vstv %s4470_s9  ;;  %2668 = vtanh.f32 %v1575_v60 }
 0x289   :  { %s4500_s25 = sld [smem:[#allocation10 + $0x7e]]  ;;  %v1665_v32 = vmul.f32 %v4325_v55, %v1664_v22  ;;  %v1667_v14 = vstv %s4475_s13 }
 0x28a   :  { %s4505_s21 = sld [smem:[#allocation10 + $0x7f]]  ;;  %v1670_v63 = vstv %s4480_s20 }
 0x28b   :  { %s4508_s7 = sld [smem:[#allocation10 + $0x80]]  ;;  %v1668_v43 = vadd.f32 %v1667_v14, %v1665_v32  ;;  %v1671_v44 = vmul.f32 %v4332_v48, %v1670_v63  ;;  %v1674_v6 = vstv %s4483_s3  ;;  %v4546_v5 = vpop.eup %2660  ;;  %v1651_v14 = vstv %s4458_s29 }
 0x28c   :  { %s4515_s26 = sld [smem:[#allocation10 + $0x81]]  ;;  %v1675_v21 = vmul.f32 %v4349_v56, %v1674_v6  ;;  %v1678_v59 = vstv %s4488_s18  ;;  %v1601_v61 = vmul.f32 %v4546_v5, %v1600_v0  ;;  %v1644_v49 = vmul.f32 %v4546_v5, %v1643_v10 }
 0x28d   :  { %s4520_s0 = sld [smem:[#allocation10 + $0x82]]  ;;  %v1672_v54 = vadd.f32 %v1671_v44, %v1668_v43  ;;  %v1679_v24 = vmul.f32 %v4510_v46, %v1678_v59  ;;  %v1682_v7 = vstv %s4491_s28  ;;  %v1616_v44 = vstv %s4415_s2 }
 0x28e   :  { %s4524_s4 = sld [smem:[#allocation11 + $0xd]]  ;;  %v1602_v13 = vadd.f32 %v1601_v61, %v1598_v4  ;;  %v1683_v42 = vmul.f32 %v4526_v47, %v1682_v7  ;;  %v1686_v22 = vstv %s4495_s19  ;;  %v1645_v36 = vadd.f32 %v1644_v49, %v1641_v17 }
 0x28f   :  { %s4529_s12 = sld [smem:[#allocation10 + $0x83]]  ;;  %v1676_v12 = vadd.f32 %v1675_v21, %v1672_v54  ;;  %v1687_v37 = vmul.f32 %v4546_v5, %v1686_v22  ;;  %v1690_v52 = vstv %s4500_s25 }
 0x290   :  { %s4534_s14 = sld [smem:[#allocation10 + $0x84]]  ;;  %v1694_v54 = vstv %s4505_s21 }
 0x291   :  { %s4538_s5 = sld [smem:[#allocation10 + $0x85]]  ;;  %v1680_v15 = vadd.f32 %v1679_v24, %v1676_v12 }
 0x292   :  { %s4541_s17 = sld [smem:[#allocation10 + $0x86]]  ;;  %v4556_v62 = vpop.eup %2662 }
 0x293   :  { %s4544_s22 = sld [smem:[#allocation10 + $0x87]]  ;;  %v4564_v1 = vpop.eup %2664  ;;  %v1605_v50 = vmul.f32 %v4556_v62, %v1604_v58  ;;  %v1707_v45 = vstv %s4520_s0  ;;  %v1648_v57 = vmul.f32 %v4556_v62, %v1647_v51  ;;  %v1684_v63 = vadd.f32 %v1683_v42, %v1680_v15 }
 0x294   :  { %s4550_s15 = sld [smem:[#allocation10 + $0x88]]  ;;  %v1609_v53 = vmul.f32 %v4564_v1, %v1608_v19  ;;  %v1708_v38 = vmul.f32 %v4325_v55, %v1707_v45  ;;  %v4593_v33 = vpop.eup %2666  ;;  %v1710_v11 = vstv %s4524_s4  ;;  %v1652_v6 = vmul.f32 %v4564_v1, %v1651_v14 }
 0x295   :  { %s4554_s23 = sld [smem:[#allocation10 + $0x89]]  ;;  %v1606_v26 = vadd.f32 %v1605_v50, %v1602_v13  ;;  %v1713_v29 = vstv %s4529_s12  ;;  %v1613_v39 = vmul.f32 %v4593_v33, %v1612_v20  ;;  %v4624_v60 = vpop.eup %2668  ;;  %v1649_v0 = vadd.f32 %v1648_v57, %v1645_v36 }
 0x296   :  { %s4559_s9 = sld [smem:[#allocation10 + $0x8a]]  ;;  %v1711_v25 = vadd.f32 %v1710_v11, %v1708_v38  ;;  %v1714_v27 = vmul.f32 %v4332_v48, %v1713_v29  ;;  %v1717_v40 = vstv %s4534_s14  ;;  %v1688_v35 = vadd.f32 %v1687_v37, %v1684_v63 }
 0x297   :  { %s4562_s1 = sld [smem:[#allocation10 + $0x8b]]  ;;  %v1610_v18 = vadd.f32 %v1609_v53, %v1606_v26  ;;  %v1691_v2 = vmul.f32 %v4556_v62, %v1690_v52  ;;  %v1718_v59 = vmul.f32 %v4349_v56, %v1717_v40  ;;  %v1721_v61 = vstv %s4538_s5 }
 0x298   :  { %s2486_s30 = sld [smem:[#allocation10 + $0x8c]]  ;;  %v1715_v21 = vadd.f32 %v1714_v27, %v1711_v25  ;;  %v1617_v3 = vmul.f32 %v4624_v60, %v1616_v44  ;;  %v1656_v31 = vmul.f32 %v4593_v33, %v1655_v8  ;;  %v1660_v10 = vmul.f32 %v4624_v60, %v1659_v9 }
 0x299   :  { %s4571_s13 = sld [smem:[#allocation11 + $0xe]]  ;;  %v1614_v4 = vadd.f32 %v1613_v39, %v1610_v18  ;;  %v1653_v24 = vadd.f32 %v1652_v6, %v1649_v0  ;;  %v1692_v7 = vadd.f32 %v1691_v2, %v1688_v35  ;;  %v1695_v13 = vmul.f32 %v4564_v1, %v1694_v54 }
 0x29a   :  { %s4574_s20 = sld [smem:[#allocation10 + $0x8d]]  ;;  %v1719_v45 = vadd.f32 %v1718_v59, %v1715_v21  ;;  %v1722_v53 = vmul.f32 %v4510_v46, %v1721_v61  ;;  %v1725_v51 = vstv %s4541_s17  ;;  %v1729_v63 = vstv %s4544_s22 }
 0x29b   :  { %s4578_s24 = sld [smem:[#allocation10 + $0x8e]]  ;;  %v1618_v11 = vadd.f32 %v1617_v3, %v1614_v4  ;;  %v1657_v29 = vadd.f32 %v1656_v31, %v1653_v24  ;;  %v1696_v52 = vadd.f32 %v1695_v13, %v1692_v7  ;;  %v1702_v27 = vstv %s4515_s26 }
 0x29c   :  { %s4582_s8 = sld [smem:[#allocation10 + $0x8f]]  ;;  %v1733_v40 = vstv %s4550_s15  ;;  %v1703_v0 = vmul.f32 %v4624_v60, %v1702_v27 }
 0x29d   :  { %s4586_s11 = sld [smem:[#allocation10 + $0x90]]  ;;  %2670 = vtanh.f32 %v1618_v11  ;;  %v1661_v6 = vadd.f32 %v1660_v10, %v1657_v29  ;;  %v1734_v21 = vmul.f32 %v4556_v62, %v1733_v40  ;;  %v1737_v10 = vstv %s4554_s23 }
 0x29e   :  { %v1750_v23 = vstv %s2486_s30  ;;  %s4591_s3 = sld [smem:[#allocation10 + $0x91]]  ;;  %v1745_v29 = vstv %s4562_s1 }
 0x29f   :  { %v1751_v30 = vmul.f32 %v4325_v55, %v1750_v23  ;;  %s4598_s10 = sld [smem:[#allocation10 + $0x92]]  ;;  %v1753_v28 = vstv %s4571_s13  ;;  %2672 = vtanh.f32 %v1661_v6 }
 0x2a0   :  { %v1756_v32 = vstv %s4574_s20  ;;  %s4603_s6 = sld [smem:[#allocation10 + $0x93]] }
 0x2a1   :  { %s4607_s18 = sld [smem:[#allocation10 + $0x94]]  ;;  %v1754_v41 = vadd.f32 %v1753_v28, %v1751_v30  ;;  %v1757_v43 = vmul.f32 %v4332_v48, %v1756_v32  ;;  %v1760_v16 = vstv %s4578_s24  ;;  %v1698_v30 = vstv %s4508_s7 }
 0x2a2   :  { %s4612_s28 = sld [smem:[#allocation10 + $0x95]]  ;;  %v1761_v19 = vmul.f32 %v4349_v56, %v1760_v16  ;;  %v1764_v12 = vstv %s4582_s8  ;;  %v1723_v28 = vadd.f32 %v1722_v53, %v1719_v45  ;;  %v1726_v32 = vmul.f32 %v4526_v47, %v1725_v51 }
 0x2a3   :  { %s4616_s29 = sld [smem:[#allocation10 + $0x96]]  ;;  %v1758_v58 = vadd.f32 %v1757_v43, %v1754_v41  ;;  %v1765_v42 = vmul.f32 %v4510_v46, %v1764_v12  ;;  %v1768_v22 = vstv %s4586_s11  ;;  %v1699_v25 = vmul.f32 %v4593_v33, %v1698_v30 }
 0x2a4   :  { %s4622_s19 = sld [smem:[#allocation11 + $0xf]]  ;;  %v1769_v39 = vmul.f32 %v4526_v47, %v1768_v22  ;;  %v1772_v18 = vstv %s4591_s3  ;;  %v1727_v8 = vadd.f32 %v1726_v32, %v1723_v28  ;;  %v1730_v16 = vmul.f32 %v4546_v5, %v1729_v63 }
 0x2a5   :  { %s4628_s25 = sld [smem:[#allocation10 + $0x97]]  ;;  %v1762_v15 = vadd.f32 %v1761_v19, %v1758_v58  ;;  %v1773_v35 = vmul.f32 %v4546_v5, %v1772_v18  ;;  %v1776_v2 = vstv %s4598_s10  ;;  %v1700_v54 = vadd.f32 %v1699_v25, %v1696_v52 }
 0x2a6   :  { %s4632_s2 = sld [smem:[#allocation10 + $0x98]]  ;;  %v1731_v31 = vadd.f32 %v1730_v16, %v1727_v8  ;;  %v1777_v12 = vmul.f32 %v4556_v62, %v1776_v2  ;;  %v1780_v53 = vstv %s4603_s6  ;;  %v1746_v18 = vmul.f32 %v4624_v60, %v1745_v29 }
 0x2a7   :  { %s4636_s27 = sld [smem:[#allocation10 + $0x99]]  ;;  %v1766_v37 = vadd.f32 %v1765_v42, %v1762_v15  ;;  %v1704_v32 = vadd.f32 %v1703_v0, %v1700_v54 }
 0x2a8   :  { %s4642_s16 = sld [smem:[#allocation10 + $0x9a]]  ;;  %v1788_v6 = vstv %s4612_s28 }
 0x2a9   :  { %v1793_v50 = vstv %s4616_s29  ;;  %s4646_s21 = sld [smem:[#allocation10 + $0x9b]]  ;;  %v1770_v9 = vadd.f32 %v1769_v39, %v1766_v37  ;;  %2674 = vtanh.f32 %v1704_v32 }
 0x2aa   :  { %v1794_v49 = vmul.f32 %v4325_v55, %v1793_v50  ;;  %v1796_v17 = vstv %s4622_s19  ;;  %s4651_s0 = sld [smem:[#allocation10 + $0x9c]] }
 0x2ab   :  { %v1799_v20 = vstv %s4628_s25  ;;  %s4656_s4 = sld [smem:[#allocation10 + $0x9d]]  ;;  %v1774_v7 = vadd.f32 %v1773_v35, %v1770_v9 }
 0x2ac   :  { %v1797_v38 = vadd.f32 %v1796_v17, %v1794_v49  ;;  %v1800_v23 = vmul.f32 %v4332_v48, %v1799_v20  ;;  %v1803_v26 = vstv %s4632_s2  ;;  %s4661_s12 = sld [smem:[#allocation10 + $0x9e]] }
 0x2ad   :  { %v1804_v57 = vmul.f32 %v4349_v56, %v1803_v26  ;;  %s4665_s14 = sld [smem:[#allocation10 + $0x9f]]  ;;  %v1807_v14 = vstv %s4636_s27  ;;  %v1741_v26 = vstv %s4559_s9  ;;  %v1778_v30 = vadd.f32 %v1777_v12, %v1774_v7 }
 0x2ae   :  { %v1801_v36 = vadd.f32 %v1800_v23, %v1797_v38  ;;  %s4669_s5 = sld [smem:[#allocation10 + $0xa0]]  ;;  %v1808_v43 = vmul.f32 %v4510_v46, %v1807_v14  ;;  %v1811_v44 = vstv %s4642_s16  ;;  %v1735_v38 = vadd.f32 %v1734_v21, %v1731_v31 }
 0x2af   :  { %s4673_s17 = sld [smem:[#allocation11 + $0x10]]  ;;  %v1812_v59 = vmul.f32 %v4526_v47, %v1811_v44  ;;  %v1815_v58 = vstv %s4646_s21  ;;  %v1738_v23 = vmul.f32 %v4564_v1, %v1737_v10  ;;  %v1742_v27 = vmul.f32 %v4593_v33, %v1741_v26 }
 0x2b0   :  { %s4678_s7 = sld [smem:[#allocation10 + $0xa1]]  ;;  %v1805_v41 = vadd.f32 %v1804_v57, %v1801_v36  ;;  %v1816_v49 = vmul.f32 %v4546_v5, %v1815_v58  ;;  %v1819_v42 = vstv %s4651_s0  ;;  %v1781_v57 = vmul.f32 %v4564_v1, %v1780_v53 }
 0x2b1   :  { %s4683_s22 = sld [smem:[#allocation10 + $0xa2]]  ;;  %v1784_v36 = vstv %s4607_s18  ;;  %v1820_v14 = vmul.f32 %v4556_v62, %v1819_v42  ;;  %v1823_v37 = vstv %s4656_s4  ;;  %v1739_v25 = vadd.f32 %v1738_v23, %v1735_v38 }
 0x2b2   :  { %s4686_s26 = sld [smem:[#allocation10 + $0xa3]]  ;;  %v1809_v61 = vadd.f32 %v1808_v43, %v1805_v41  ;;  %v4744_v41 = vpop.eup %2670  ;;  %v1782_v43 = vadd.f32 %v1781_v57, %v1778_v30  ;;  %v1785_v44 = vmul.f32 %v4593_v33, %v1784_v36  ;;  %v1824_v16 = vmul.f32 %v4564_v1, %v1823_v37 }
 0x2b3   :  { %s4691_s15 = sld [smem:[#allocation10 + $0xa4]]  ;;  %v1827_v0 = vstv %s4661_s12  ;;  %v1789_v31 = vmul.f32 %v4624_v60, %v1788_v6  ;;  %v4791_v29 = vpop.eup %2672 }
 0x2b4   :  { %v1836_v4 = vstv %s4669_s5  ;;  %s4696_s30 = sld [smem:[#allocation10 + $0xa5]]  ;;  %v1813_v15 = vadd.f32 %v1812_v59, %v1809_v61 }
 0x2b5   :  { %v1837_v19 = vmul.f32 %v4325_v55, %v1836_v4  ;;  %v1839_v3 = vstv %s4673_s17  ;;  %s4701_s13 = sld [smem:[#allocation10 + $0xa6]] }
 0x2b6   :  { %v1842_v24 = vstv %s4678_s7  ;;  %s4706_s20 = sld [smem:[#allocation10 + $0xa7]]  ;;  %v1817_v63 = vadd.f32 %v1816_v49, %v1813_v15 }
 0x2b7   :  { %v1840_v13 = vadd.f32 %v1839_v3, %v1837_v19  ;;  %v1843_v50 = vmul.f32 %v4332_v48, %v1842_v24  ;;  %v1846_v45 = vstv %s4683_s22  ;;  %s4710_s24 = sld [smem:[#allocation10 + $0xa8]]  ;;  %v1743_v3 = vadd.f32 %v1742_v27, %v1739_v25 }
 0x2b8   :  { %v1847_v17 = vmul.f32 %v4349_v56, %v1846_v45  ;;  %v1850_v51 = vstv %s4686_s26  ;;  %s4716_s23 = sld [smem:[#allocation10 + $0xa9]]  ;;  %v1821_v2 = vadd.f32 %v1820_v14, %v1817_v63  ;;  %v1786_v24 = vadd.f32 %v1785_v44, %v1782_v43 }
 0x2b9   :  { %v1844_v20 = vadd.f32 %v1843_v50, %v1840_v13  ;;  %v1851_v22 = vmul.f32 %v4510_v46, %v1850_v51  ;;  %s4720_s8 = sld [smem:[#allocation10 + $0xaa]]  ;;  %v1854_v11 = vstv %s4691_s15  ;;  %v1828_v45 = vmul.f32 %v4593_v33, %v1827_v0 }
 0x2ba   :  { %s4725_s11 = sld [smem:[#allocation11 + $0x11]]  ;;  %v1855_v52 = vmul.f32 %v4526_v47, %v1854_v11  ;;  %v1858_v40 = vstv %s4696_s30  ;;  %v1825_v51 = vadd.f32 %v1824_v16, %v1821_v2  ;;  %v1747_v38 = vadd.f32 %v1746_v18, %v1743_v3 }
 0x2bb   :  { %v1848_v28 = vadd.f32 %v1847_v17, %v1844_v20  ;;  %s4729_s3 = sld [smem:[#allocation10 + $0xab]]  ;;  %v1859_v21 = vmul.f32 %v4546_v5, %v1858_v40  ;;  %v1862_v4 = vstv %s4701_s13  ;;  %v1790_v30 = vadd.f32 %v1789_v31, %v1786_v24 }
 0x2bc   :  { %s4733_s10 = sld [smem:[#allocation10 + $0xac]]  ;;  %v1863_v49 = vmul.f32 %v4556_v62, %v1862_v4  ;;  %v1866_v15 = vstv %s4706_s20  ;;  %v1829_v36 = vadd.f32 %v1828_v45, %v1825_v51  ;;  %2676 = vtanh.f32 %v1747_v38 }
 0x2bd   :  { %v1852_v39 = vadd.f32 %v1851_v22, %v1848_v28  ;;  %s4737_s9 = sld [smem:[#allocation10 + $0xad]]  ;;  %v1831_v22 = vstv %s4665_s14  ;;  %v1867_v28 = vmul.f32 %v4564_v1, %v1866_v15  ;;  %v1870_v32 = vstv %s4710_s24 }
 0x2be   :  { %s4742_s1 = sld [smem:[#allocation10 + $0xae]]  ;;  %v1832_v14 = vmul.f32 %v4624_v60, %v1831_v22  ;;  %v1871_v18 = vmul.f32 %v4593_v33, %v1870_v32  ;;  %v1874_v40 = vstv %s4716_s23  ;;  %2678 = vtanh.f32 %v1790_v30 }
 0x2bf   :  { %v1879_v8 = vstv %s4720_s8  ;;  %s4749_s6 = sld [smem:[#allocation10 + $0xaf]]  ;;  %v1856_v54 = vadd.f32 %v1855_v52, %v1852_v39 }
 0x2c0   :  { %v1880_v9 = vmul.f32 %v4325_v55, %v1879_v8  ;;  %v1882_v35 = vstv %s4725_s11  ;;  %s4755_s18 = sld [smem:[#allocation10 + $0xb0]] }
 0x2c1   :  { %v1885_v59 = vstv %s4729_s3  ;;  %s4759_s28 = sld [smem:[#allocation10 + $0xb1]]  ;;  %v1860_v53 = vadd.f32 %v1859_v21, %v1856_v54 }
 0x2c2   :  { %v1883_v61 = vadd.f32 %v1882_v35, %v1880_v9  ;;  %v1886_v58 = vmul.f32 %v4332_v48, %v1885_v59  ;;  %v1889_v19 = vstv %s4733_s10  ;;  %s4764_s29 = sld [smem:[#allocation10 + $0xb2]] }
 0x2c3   :  { %v1890_v10 = vmul.f32 %v4349_v56, %v1889_v19  ;;  %v1893_v12 = vstv %s4737_s9  ;;  %s4769_s19 = sld [smem:[#allocation10 + $0xb3]]  ;;  %v1864_v57 = vadd.f32 %v1863_v49, %v1860_v53  ;;  %v4839_v49 = vpop.eup %2674 }
 0x2c4   :  { %v1887_v7 = vadd.f32 %v1886_v58, %v1883_v61  ;;  %v1894_v13 = vmul.f32 %v4510_v46, %v1893_v12  ;;  %v1897_v50 = vstv %s4742_s1  ;;  %s4773_s25 = sld [smem:[#allocation10 + $0xb4]]  ;;  %v1833_v58 = vadd.f32 %v1832_v14, %v1829_v36 }
 0x2c5   :  { %v1901_v17 = vstv %s4749_s6  ;;  %s4778_s2 = sld [smem:[#allocation11 + $0x12]]  ;;  %v1898_v20 = vmul.f32 %v4526_v47, %v1897_v50  ;;  %v1868_v6 = vadd.f32 %v1867_v28, %v1864_v57  ;;  %v1875_v12 = vmul.f32 %v4624_v60, %v1874_v40 }
 0x2c6   :  { %v1891_v42 = vadd.f32 %v1890_v10, %v1887_v7  ;;  %s4782_s27 = sld [smem:[#allocation10 + $0xb5]]  ;;  %v1902_v26 = vmul.f32 %v4546_v5, %v1901_v17  ;;  %v1905_v11 = vstv %s4755_s18  ;;  %2680 = vtanh.f32 %v1833_v58 }
 0x2c7   :  { %s4785_s16 = sld [smem:[#allocation10 + $0xb6]]  ;;  %v1906_v39 = vmul.f32 %v4556_v62, %v1905_v11  ;;  %v1909_v52 = vstv %s4759_s28  ;;  %v1872_v10 = vadd.f32 %v1871_v18, %v1868_v6 }
 0x2c8   :  { %v1895_v23 = vadd.f32 %v1894_v13, %v1891_v42  ;;  %s4789_s21 = sld [smem:[#allocation10 + $0xb7]]  ;;  %v1910_v9 = vmul.f32 %v4564_v1, %v1909_v52  ;;  %v1913_v35 = vstv %s4764_s29 }
 0x2c9   :  { %s4795_s0 = sld [smem:[#allocation10 + $0xb8]]  ;;  %v1914_v24 = vmul.f32 %v4593_v33, %v1913_v35  ;;  %v1917_v50 = vstv %s4769_s19  ;;  %v1876_v22 = vadd.f32 %v1875_v12, %v1872_v10 }
 0x2ca   :  { %v1899_v63 = vadd.f32 %v1898_v20, %v1895_v23  ;;  %v1922_v37 = vstv %s4773_s25  ;;  %s4799_s4 = sld [smem:[#allocation10 + $0xb9]]  ;;  %v1918_v38 = vmul.f32 %v4624_v60, %v1917_v50 }
 0x2cb   :  { %v1923_v25 = vmul.f32 %v4325_v55, %v1922_v37  ;;  %v1925_v27 = vstv %s4778_s2  ;;  %s4805_s12 = sld [smem:[#allocation10 + $0xba]]  ;;  %2682 = vtanh.f32 %v1876_v22 }
 0x2cc   :  { %v1903_v43 = vadd.f32 %v1902_v26, %v1899_v63  ;;  %v1928_v44 = vstv %s4782_s27  ;;  %s4810_s14 = sld [smem:[#allocation10 + $0xbb]] }
 0x2cd   :  { %v1926_v8 = vadd.f32 %v1925_v27, %v1923_v25  ;;  %v1929_v16 = vmul.f32 %v4332_v48, %v1928_v44  ;;  %v1932_v0 = vstv %s4785_s16  ;;  %s4814_s5 = sld [smem:[#allocation10 + $0xbc]] }
 0x2ce   :  { %v1933_v2 = vmul.f32 %v4349_v56, %v1932_v0  ;;  %v1936_v54 = vstv %s4789_s21  ;;  %s4820_s17 = sld [smem:[#allocation10 + $0xbd]]  ;;  %v1907_v21 = vadd.f32 %v1906_v39, %v1903_v43  ;;  %s2808_s21 = smov [#allocation14]  }
 0x2cf   :  { %v1930_v59 = vadd.f32 %v1929_v16, %v1926_v8  ;;  %v1937_v4 = vmul.f32 %v4510_v46, %v1936_v54  ;;  %v1940_v61 = vstv %s4795_s0  ;;  %s2541_s7 = sld [smem:[#allocation10 + $0xbe]]  ;;  %v2677_v8 = vpop.eup %2676  ;;  %s2056_s0 = sshll.u32 %s2808_s21, 4  ;;  %s2057_s0 = int_to_ptr.vmem [resolvable:$true] %s2056_s0 }
 0x2d0   :  { %v1944_v19 = vstv %s4799_s4  ;;  %s4825_s22 = sld [smem:[#allocation11 + $0x13]]  ;;  %v1941_v31 = vmul.f32 %v4526_v47, %v1940_v61  ;;  %v1911_v13 = vadd.f32 %v1910_v9, %v1907_v21  ;;  %s2770_s4 = scalar_lea.vmem %s2057_s0, 256 }
 0x2d1   :  { %v1934_v3 = vadd.f32 %v1933_v2, %v1930_v59  ;;  %s4828_s26 = sld [smem:[#allocation10 + $0xbf]]  ;;  %v1948_v7 = vstv %s4805_s12  ;;  %v1945_v53 = vmul.f32 %v4546_v5, %v1944_v19  ;;  %p2771_p2 = scmp.ne.s32.totalorder %s2057_s0, %s2770_s4 }
 0x2d2   :  { %s4833_s15 = sld [smem:[#allocation10 + $0xc0]]  ;;  %v1952_v17 = vstv %s4810_s14  ;;  %v1949_v15 = vmul.f32 %v4556_v62, %v1948_v7  ;;  %v1915_v11 = vadd.f32 %v1914_v24, %v1911_v13  ;;  %p2775_p3 = scmp.lt.s32.totalorder %s2057_s0, %s2057_s0 }
 0x2d3   :  { %v1938_v45 = vadd.f32 %v1937_v4, %v1934_v3  ;;  %s4837_s30 = sld [smem:[#allocation10 + $0xc1]]  ;;  %v1956_v42 = vstv %s4814_s5  ;;  %v1953_v57 = vmul.f32 %v4564_v1, %v1952_v17  ;;  %p2776_p4 = scmp.lt.s32.totalorder %s2770_s4, %s2770_s4 }
 0x2d4   :  { %s4842_s13 = sld [smem:[#allocation10 + $0xc2]]  ;;  %v1957_v32 = vmul.f32 %v4593_v33, %v1956_v42  ;;  %v1960_v37 = vstv %s4820_s17  ;;  %v1919_v40 = vadd.f32 %v1918_v38, %v1915_v11 }
 0x2d5   :  { %v1942_v51 = vadd.f32 %v1941_v31, %v1938_v45  ;;  %v1965_v20 = vstv %s2541_s7  ;;  %s4846_s20 = sld [smem:[#allocation10 + $0xc3]]  ;;  %p2777_p5 = por %p2776_p4, %p2775_p3 }
 0x2d6   :  { %v1966_v23 = vmul.f32 %v4325_v55, %v1965_v20  ;;  %v1968_v26 = vstv %s4825_s22  ;;  %s4851_s24 = sld [smem:[#allocation10 + $0xc4]]  ;;  %2684 = vtanh.f32 %v1919_v40 }
 0x2d7   :  { %v1946_v30 = vadd.f32 %v1945_v53, %v1942_v51  ;;  %v1971_v28 = vstv %s4828_s26  ;;  %s4855_s23 = sld [smem:[#allocation10 + $0xc5]]  ;;  %p2778_p6 = pnand %p2777_p5, %p2771_p2 }
 0x2d8   :  { %v1969_v36 = vadd.f32 %v1968_v26, %v1966_v23  ;;  %v1972_v14 = vmul.f32 %v4332_v48, %v1971_v28  ;;  %v1975_v63 = vstv %s4833_s15  ;;  %s4860_s8 = sld [smem:[#allocation10 + $0xc6]]  ;;  %v1961_v48 = vmul.f32 %v4624_v60, %v1960_v37 }
 0x2d9   :  { %v1950_v55 = vadd.f32 %v1949_v15, %v1946_v30  ;;  %v1976_v39 = vmul.f32 %v4349_v56, %v1975_v63  ;;  %v1979_v52 = vstv %s4837_s30  ;;  %s4865_s11 = sld [smem:[#allocation10 + $0xc7]] }
 0x2da   :  { %v1973_v25 = vadd.f32 %v1972_v14, %v1969_v36  ;;  %v1980_v27 = vmul.f32 %v4510_v46, %v1979_v52  ;;  %v1983_v18 = vstv %s4842_s13  ;;  %s2007_s3 = sld [smem:[#allocation13]]  ;;  %v2679_v46 = vpop.eup %2678 }
 0x2db   :  { %v1954_v43 = vadd.f32 %v1953_v57, %v1950_v55  ;;  %v1987_v44 = vstv %s4846_s20  ;;  %s2552_s10 = sld [smem:[#allocation13 + $0x1]]  ;;  %v1984_v56 = vmul.f32 %v4526_v47, %v1983_v18  ;;  %v2681_v4 = vpop.eup %2680 }
 0x2dc   :  { %v1977_v6 = vadd.f32 %v1976_v39, %v1973_v25  ;;  %s2553_s9 = sld [smem:[#allocation13 + $0x2]]  ;;  %v1991_v0 = vstv %s4851_s24  ;;  %v1988_v35 = vmul.f32 %v4546_v5, %v1987_v44 }
 0x2dd   :  { %v1958_v16 = vadd.f32 %v1957_v32, %v1954_v43  ;;  %s2554_s1 = sld [smem:[#allocation13 + $0x3]]  ;;  %v1995_v2 = vstv %s4855_s23  ;;  %v1992_v47 = vmul.f32 %v4556_v62, %v1991_v0 }
 0x2de   :  { %v1981_v9 = vadd.f32 %v1980_v27, %v1977_v6  ;;  %s4874_s6 = sld [smem:[#allocation13 + $0x4]]  ;;  %v1999_v61 = vstv %s4860_s8  ;;  %v1996_v3 = vmul.f32 %v4564_v1, %v1995_v2 }
 0x2df   :  { %s4877_s18 = sld [smem:[#allocation13 + $0x5]]  ;;  %v1962_v54 = vadd.f32 %v1961_v48, %v1958_v16  ;;  %v2003_v12 = vstv %s4865_s11  ;;  %v2000_v13 = vmul.f32 %v4593_v33, %v1999_v61 }
 0x2e0   :  { %v1985_v21 = vadd.f32 %v1984_v56, %v1981_v9  ;;  %v2008_v59 = vstv %s2007_s3  ;;  %s4882_s28 = sld [smem:[#allocation13 + $0x6]]  ;;  %v2004_v53 = vmul.f32 %v4624_v60, %v2003_v12 }
 0x2e1   :  { %v2009_v58 = vmul.f32 %v4744_v41, %v2008_v59  ;;  %v2014_v19 = vstv %s2552_s10  ;;  %2686 = vtanh.f32 %v1962_v54  ;;  %s2558_s2 = sld [smem:[#allocation13 + $0x7]] }
 0x2e2   :  { %v1989_v5 = vadd.f32 %v1988_v35, %v1985_v21  ;;  %v2015_v31 = vmul.f32 %v4791_v29, %v2014_v19  ;;  %v2018_v10 = vstv %s2553_s9  ;;  %s2559_s27 = sld [smem:[#allocation13 + $0x8]] }
 0x2e3   :  { %v2012_v62 = vadd.f32 %v2009_v58, %v1036_v34  ;;  %v2019_v24 = vmul.f32 %v4839_v49, %v2018_v10  ;;  %v2022_v7 = vstv %s2554_s1  ;;  %v2683_v34 = vpop.eup %2682  ;;  %s2560_s16 = sld [smem:[#allocation13 + $0x9]] }
 0x2e4   :  { %v1993_v41 = vadd.f32 %v1992_v47, %v1989_v5  ;;  %v2026_v50 = vstv %s4874_s6  ;;  %v2023_v45 = vmul.f32 %v2677_v8, %v2022_v7  ;;  %v2685_v26 = vpop.eup %2684 }
 0x2e5   :  { %v2016_v1 = vadd.f32 %v2015_v31, %v2012_v62  ;;  %v2030_v17 = vstv %s4877_s18  ;;  %v2027_v15 = vmul.f32 %v2679_v46, %v2026_v50 }
 0x2e6   :  { %v1997_v29 = vadd.f32 %v1996_v3, %v1993_v41  ;;  %v2031_v49 = vmul.f32 %v2681_v4, %v2030_v17  ;;  %v2034_v22 = vstv %s4882_s28 }
 0x2e7   :  { %v2020_v51 = vadd.f32 %v2019_v24, %v2016_v1  ;;  %v2035_v33 = vmul.f32 %v2683_v34, %v2034_v22  ;;  %v2038_v30 = vstv %s2558_s2 }
 0x2e8   :  { %v2001_v42 = vadd.f32 %v2000_v13, %v1997_v29  ;;  %v2039_v28 = vmul.f32 %v2685_v26, %v2038_v30  ;;  %v2042_v32 = vstv %s2559_s27 }
 0x2e9   :  { %v2024_v20 = vadd.f32 %v2023_v45, %v2020_v51  ;;  %v2046_v63 = vstv %s2560_s16 }
 0x2ea   :  { %v2005_v38 = vadd.f32 %v2004_v53, %v2001_v42 }
 0x2eb   :  { %v2028_v23 = vadd.f32 %v2027_v15, %v2024_v20 }
 0x2ec   :  { %2688 = vtanh.f32 %v2005_v38 }
 0x2ed   :  { %v2032_v11 = vadd.f32 %v2031_v49, %v2028_v23 }
 0x2ee   :  { %v2687_v60 = vpop.eup %2686 }
 0x2ef   :  { %v2036_v57 = vadd.f32 %v2035_v33, %v2032_v11  ;;  %v2043_v14 = vmul.f32 %v2687_v60, %v2042_v32 }
 0x2f1   :  { %v2040_v36 = vadd.f32 %v2039_v28, %v2036_v57 }
 0x2f3   :  { %v2044_v55 = vadd.f32 %v2043_v14, %v2040_v36 }
 0x2f9   :  { %v2689_v37 = vpop.eup %2688 }
 0x2fa   :  { %v2047_v39 = vmul.f32 %v2689_v37, %v2046_v63 }
 0x2fc   :  { %v2048_v52 = vadd.f32 %v2047_v39, %v2044_v55 }
 0x2fe   :  { %2050 = vst [vmem:[#allocation14 + $0x8] sm:$0xff] %v2048_v52 }
 0x2ff   :  { %2781 = shalt.err (!%p2778_p6)
}
 0x300   :  { %s5079_s12 = smov 8   ;;  %s5080_s14 = smov 128  }
 0x301   :  { %s5081_s7 = sld [smem:[#allocation46_spill]] }
 0x307   :  { %2062 = dma.vmem_to_hbm [thread:$0]  %s2057_s0, 256, %s5081_s7, [#allocation5], %s5080_s14, %s5080_s14, %s5079_s12  }
 0x308   :  { %2798 = dma.done.wait [#allocation5], 256  }
 0x309   :  { %2799 = vsyncadd [#allocation5], 4294967040 }
 0x30a   :  { %2066 = vsyncpa [#allocation4], 1 }
 0x30b   :  { %2067 = vsyncpa [#allocation5], 1 }
 0x30c   :  { %2068 = vsyncpa [#allocation6], 1 }
 0x30d   :  { %2069 = vsyncpa [#allocation9], 1 }
 0x30e   :  { %2070 = vsyncpa [#allocation12], 1 }

</bundles_post_ra>
